<compile_context>
chip_gen: v7x
topology: tpu7x:2x2x1
jax: 0.10.0
libtpu: 0.0.40
codegen_flags: <defaults>
</compile_context>

<pallas_src>
import jax
import jax.numpy as jnp
from jax.experimental import pallas as pl
from jax.experimental.pallas import tpu as pltpu

# ---------------- Model config (small, consistent with ConvLSTM) -----------
BATCH       = 2
IN_LEN      = 64                    # input signal length (B, 1, 64)
CONV_HIDDEN = 32
C1, C2, C3  = CONV_HIDDEN, CONV_HIDDEN * 2, CONV_HIDDEN * 4   # 32, 64, 128
CIN_PAD     = 8                     # stage-1 in-channels (1) zero-padded to 8
HIDDEN      = 32
OUT_SHAPE   = 4
LSTM_LAYERS = 2
SEQ_LEN     = IN_LEN // 8           # 8  (three MaxPool1d(2))
BN_EPS      = 1e-5
PACK_COLS   = 128


def _round_up(n, m):
    return (n + m - 1) // m * m


# -------- Packed bf16 operand: all matmul matrices + baked 0/1 selections ---
_W_SECTIONS = [
    # conv taps (BN folded, transposed to x @ W form)
    ("c1w0", 8, 32), ("c1w1", 8, 32), ("c1w2", 8, 32),
    ("c2w0", 32, 64), ("c2w1", 32, 64), ("c2w2", 32, 64),
    ("c3w0", 64, 128), ("c3w1", 64, 128), ("c3w2", 64, 128),
    # LSTM weights (transposed), fc weight (BN + 1/T folded, lane-padded)
    ("wih0", 128, 128), ("whh0", 32, 128),
    ("wih1", 32, 128), ("whh1", 32, 128),
    ("fcw", 32, 128),
    # selection / permutation constants (exact 0/1 values)
    ("s1m", 128, 128), ("s1p", 128, 128), ("s1e", 64, 128), ("s1o", 64, 128),
    ("s2m", 64, 64), ("s2p", 64, 64), ("s2e", 32, 64), ("s2o", 32, 64),
    ("s3m", 32, 32), ("s3p", 32, 32), ("s3e", 16, 32), ("s3o", 16, 32),
]
_W_LAYOUT = {}
_off = 0
for _name, _nr, _nc in _W_SECTIONS:
    _W_LAYOUT[_name] = (_off, _nr, _nc)
    _off += _round_up(_nr, 16)      # keep every section 16-row aligned (bf16 packing)
W_ROWS = _round_up(_off, 16)

# -------- Small f32 bias operand (kept f32 so VPU adds stay exact) ----------
_B_SECTIONS = [("c1b", 32), ("c2b", 64), ("c3b", 128),
               ("b0", 128), ("b1", 128), ("fcb", 128)]
_B_LAYOUT = {}
_off = 0
for _name, _nc in _B_SECTIONS:
    _B_LAYOUT[_name] = (_off, 1, _nc)
    _off += 8                       # 8-row aligned slots
B_ROWS = _off


# ------------------------------- Kernel ------------------------------------
def convlstm_kernel(x_ref, w_ref, b_ref, out_ref, h0_ref):
    """Whole ConvLSTM forward (eval mode) in one invocation.

    x_ref:   (B*L, CIN_PAD) f32 channel-last input, rows b-major (b*L + l)
    w_ref:   (W_ROWS, 128) bf16 packed weights + baked selection matrices
    b_ref:   (B_ROWS, 128) f32 packed biases (conv BN-folded, LSTM combined)
    out_ref: (B, 128) f32, logits in lanes 0:OUT_SHAPE
    h0_ref:  (T*B, HIDDEN) f32 VMEM scratch holding layer-0 LSTM outputs (t-major)
    """
    B, H, T = BATCH, HIDDEN, SEQ_LEN
    f32 = jnp.float32

    def ldw(name):                           # bf16 section -> f32 value (once per use)
        r, nr, nc = _W_LAYOUT[name]
        return w_ref[r:r + nr, 0:nc].astype(f32)

    def bias(name):
        r, _, nc = _B_LAYOUT[name]
        return b_ref[r:r + 1, 0:nc]

    def mm(a, b):
        return jnp.dot(a, b, preferred_element_type=f32)

    # ---- Conv block: 3 x [Conv1d(k=3,p=1) + BN(folded) + ReLU + MaxPool(2)]
    # All shift / pooling selection matrices come pre-baked from the host.
    # Stage 3's pooling selections also carry the b-major -> t-major permutation.
    def conv_stage(x, stage, wprefix, bname):
        xm = mm(ldw(f"s{stage}m"), x)                    # x[l-1] (0 at segment start)
        xp = mm(ldw(f"s{stage}p"), x)                    # x[l+1] (0 at segment end)
        y = (mm(xm, ldw(wprefix + "0")) + mm(x, ldw(wprefix + "1"))
             + mm(xp, ldw(wprefix + "2")) + bias(bname))
        y = jnp.maximum(y, 0.0)                          # ReLU (BN folded in)
        return jnp.maximum(mm(ldw(f"s{stage}e"), y),     # MaxPool1d(2)
                           mm(ldw(f"s{stage}o"), y))

    a = conv_stage(x_ref[...], 1, "c1w", "c1b")          # (B*L/2, 32)
    a = conv_stage(a, 2, "c2w", "c2b")                   # (B*L/4, 64)
    a = conv_stage(a, 3, "c3w", "c3b")                   # (T*B, 128), t-major

    # ---- 2-layer LSTM, PyTorch gate order [i, f, g, o] ---------------------
    def lstm_scan(xproj, whh, store_ref):
        # xproj: (T*B, 4H) hoisted input projection (combined bias folded in).
        h = jnp.zeros((B, H), f32)
        c = jnp.zeros((B, H), f32)
        h_sum = jnp.zeros((B, H), f32)
        for t in range(T):                               # static unroll (T=8)
            gates = xproj[t * B:(t + 1) * B, :] + mm(h, whh)       # (B, 4H)
            sg = 0.5 * (jnp.tanh(0.5 * gates) + 1.0)     # sigmoid via tanh (EUP only)
            th = jnp.tanh(gates)
            c = sg[:, H:2 * H] * c + sg[:, 0:H] * th[:, 2 * H:3 * H]
            h = sg[:, 3 * H:4 * H] * jnp.tanh(c)
            if store_ref is not None:
                store_ref[t * B:(t + 1) * B, :] = h      # layer 0: spill to scratch
            else:
                h_sum = h_sum + h                        # layer 1: in-loop time sum
        return h_sum

    # layer 0: one batched input projection for all T steps, outputs -> scratch
    xp0 = mm(a, ldw("wih0")) + bias("b0")                # (T*B, 4H)
    lstm_scan(xp0, ldw("whh0"), h0_ref)

    # layer 1: hoisted projection straight from scratch; mean accumulated in-loop
    xp1 = mm(h0_ref[...], ldw("wih1")) + bias("b1")      # (T*B, 4H)
    h_sum = lstm_scan(xp1, ldw("whh1"), None)            # (B, H) = sum_t h_t

    # ---- fc: BatchNorm1d + 1/T folded into fcw; Dropout = identity (eval) --
    # TODO(synk): training-mode Dropout / BatchNorm batch statistics are not
    # implemented; eval-mode semantics only.
    out_ref[...] = mm(h_sum, ldw("fcw")) + bias("fcb")   # (B, 128), lanes 4.. are 0


# ------------------------------ Host glue ----------------------------------
def init_params(key):
    """Deterministic params with the same shapes as the PyTorch module."""
    ks = iter(jax.random.split(key, 40))

    def u(shape, scale):
        return jax.random.uniform(next(ks), shape, jnp.float32, -scale, scale)

    def bn(c):
        return {"g": jax.random.uniform(next(ks), (c,), jnp.float32, 0.5, 1.5),
                "b": u((c,), 0.1),
                "m": u((c,), 0.1),
                "v": jax.random.uniform(next(ks), (c,), jnp.float32, 0.5, 1.5)}

    p = {}
    for idx, (cin, cout) in enumerate([(1, C1), (C1, C2), (C2, C3)], start=1):
        k = 1.0 / jnp.sqrt(jnp.float32(cin * 3))
        p[f"conv{idx}_w"] = u((cout, cin, 3), k)
        p[f"conv{idx}_b"] = u((cout,), k)
        p[f"bn{idx}"] = bn(cout)
    kh = 1.0 / jnp.sqrt(jnp.float32(HIDDEN))
    for l, insz in enumerate([C3, HIDDEN]):
        p[f"wih{l}"] = u((4 * HIDDEN, insz), kh)
        p[f"whh{l}"] = u((4 * HIDDEN, HIDDEN), kh)
        p[f"bih{l}"] = u((4 * HIDDEN,), kh)
        p[f"bhh{l}"] = u((4 * HIDDEN,), kh)
    p["fbn"] = bn(HIDDEN)
    p["fc_w"] = u((OUT_SHAPE, HIDDEN), kh)
    p["fc_b"] = u((OUT_SHAPE,), kh)
    return p


def pack_params(p):
    """Fold eval-mode BatchNorm into conv / fc weights, transpose to `x @ W`
    form, combine LSTM biases, fold the 1/T mean scale into fc, bake all
    selection / permutation constants, and pack into:
      - one (W_ROWS, 128) bf16 buffer  (matmul matrices + 0/1 selections)
      - one (B_ROWS, 128) f32  buffer  (biases)"""
    def bn_scale_shift(q):
        s = q["g"] / jnp.sqrt(q["v"] + BN_EPS)
        return s, q["b"] - q["m"] * s

    wmats, biases = {}, {}
    for idx in (1, 2, 3):
        wc = p[f"conv{idx}_w"]                      # (Cout, Cin, 3)
        bc = p[f"conv{idx}_b"]
        s, t = bn_scale_shift(p[f"bn{idx}"])
        wf = wc * s[:, None, None]
        bf = bc * s + t
        cin = wc.shape[1]
        for k in range(3):
            tap = wf[:, :, k].T                     # (Cin, Cout)
            if idx == 1:                            # pad Cin 1 -> 8 with zeros
                tap = jnp.pad(tap, ((0, CIN_PAD - cin), (0, 0)))
            wmats[f"c{idx}w{k}"] = tap
        biases[f"c{idx}b"] = bf[None, :]

    for l in range(LSTM_LAYERS):
        wmats[f"wih{l}"] = p[f"wih{l}"].T
        wmats[f"whh{l}"] = p[f"whh{l}"].T
        biases[f"b{l}"] = (p[f"bih{l}"] + p[f"bhh{l}"])[None, :]

    s, t = bn_scale_shift(p["fbn"])                 # BatchNorm1d before Linear
    fcw = (p["fc_w"] * s[None, :]).T / SEQ_LEN      # (HIDDEN, OUT); 1/T folded in
    wmats["fcw"] = jnp.pad(fcw, ((0, 0), (0, PACK_COLS - OUT_SHAPE)))
    fcb = (p["fc_b"] + p["fc_w"] @ t)[None, :]
    biases["fcb"] = jnp.pad(fcb, ((0, 0), (0, PACK_COLS - OUT_SHAPE)))

    # ---- baked selection / permutation constants (exact 0/1) ---------------
    def sel(nrows, ncols, fn):
        i = jnp.arange(nrows)[:, None]
        j = jnp.arange(ncols)[None, :]
        return fn(i, j).astype(jnp.float32)

    B, L, T = BATCH, IN_LEN, SEQ_LEN
    rows = B * L
    for stage in (1, 2, 3):
        length = L // (2 ** (stage - 1))
        wmats[f"s{stage}m"] = sel(rows, rows,
                                  lambda i, j: (j == i - 1) & (i % length != 0))
        wmats[f"s{stage}p"] = sel(rows, rows,
                                  lambda i, j: (j == i + 1) & (i % length != length - 1))
        ev = sel(rows // 2, rows, lambda i, j: j == 2 * i)
        od = sel(rows // 2, rows, lambda i, j: j == 2 * i + 1)
        if stage == 3:
            # fold b-major (b*T+t) -> t-major (t*B+b) permutation into pooling
            g = sel(B * T, B * T, lambda i, j: j == (i % B) * T + i // B)
            ev, od = g @ ev, g @ od
        wmats[f"s{stage}e"] = ev
        wmats[f"s{stage}o"] = od
        rows //= 2

    w_packed = jnp.zeros((W_ROWS, PACK_COLS), jnp.bfloat16)
    for name, (r, nr, nc) in _W_LAYOUT.items():
        arr = wmats[name].astype(jnp.bfloat16)
        assert arr.shape == (nr, nc), (name, arr.shape, (nr, nc))
        w_packed = w_packed.at[r:r + nr, 0:nc].set(arr)

    b_packed = jnp.zeros((B_ROWS, PACK_COLS), jnp.float32)
    for name, (r, nr, nc) in _B_LAYOUT.items():
        arr = biases[name].astype(jnp.float32)
        assert arr.shape == (nr, nc), (name, arr.shape, (nr, nc))
        b_packed = b_packed.at[r:r + nr, 0:nc].set(arr)
    return w_packed, b_packed


def convlstm_forward(x, w_packed, b_packed):
    """x: (B, 1, L) like the PyTorch module.  Host side is layout plumbing
    only: channel-last flatten, zero-pad the single input channel to 8, and
    slice the lane-padded logits."""
    B = x.shape[0]
    x2 = jnp.transpose(x, (0, 2, 1)).reshape(B * IN_LEN, 1).astype(jnp.float32)
    x2 = jnp.pad(x2, ((0, 0), (0, CIN_PAD - 1)))

    vmem = pl.BlockSpec(memory_space=pltpu.MemorySpace.VMEM)
    out = pl.pallas_call(
        convlstm_kernel,
        out_shape=jax.ShapeDtypeStruct((B, PACK_COLS), jnp.float32),
        in_specs=[vmem, vmem, vmem],
        out_specs=vmem,
        scratch_shapes=[pltpu.VMEM((SEQ_LEN * B, HIDDEN), jnp.float32)],
    )(x2, w_packed, b_packed)
    return out[:, :OUT_SHAPE]


# ------------------------ Pure-JAX reference (eval) -------------------------
def reference_forward(x, p):
    def bn(y, q, eps=BN_EPS):
        s = q["g"] / jnp.sqrt(q["v"] + eps)
        t = q["b"] - q["m"] * s
        if y.ndim == 3:
            return y * s[None, :, None] + t[None, :, None]
        return y * s[None, :] + t[None, :]

    y = x.astype(jnp.float32)
    for idx in (1, 2, 3):
        y = jax.lax.conv_general_dilated(
            y, p[f"conv{idx}_w"], window_strides=(1,), padding=((1, 1),),
            dimension_numbers=("NCH", "OIH", "NCH"))
        y = y + p[f"conv{idx}_b"][None, :, None]
        y = jnp.maximum(bn(y, p[f"bn{idx}"]), 0.0)
        Bq, C, L = y.shape
        y = y.reshape(Bq, C, L // 2, 2).max(axis=-1)            # MaxPool1d(2)
    y = jnp.transpose(y, (0, 2, 1))                             # (B, T, 128)

    def lstm_layer(seq, wih, whh, bih, bhh):
        Bq, T, _ = seq.shape
        h = jnp.zeros((Bq, HIDDEN), jnp.float32)
        c = jnp.zeros((Bq, HIDDEN), jnp.float32)
        outs = []
        for t in range(T):
            g = seq[:, t, :] @ wih.T + h @ whh.T + bih + bhh
            i = jax.nn.sigmoid(g[:, :HIDDEN])
            f = jax.nn.sigmoid(g[:, HIDDEN:2 * HIDDEN])
            gg = jnp.tanh(g[:, 2 * HIDDEN:3 * HIDDEN])
            o = jax.nn.sigmoid(g[:, 3 * HIDDEN:])
            c = f * c + i * gg
            h = o * jnp.tanh(c)
            outs.append(h)
        return jnp.stack(outs, axis=1)

    s = lstm_layer(y, p["wih0"], p["whh0"], p["bih0"], p["bhh0"])
    s = lstm_layer(s, p["wih1"], p["whh1"], p["bih1"], p["bhh1"])
    hm = s.mean(axis=1)
    hm = bn(hm, p["fbn"])            # Dropout(p=0.5) is identity in eval mode
    return hm @ p["fc_w"].T + p["fc_b"]


if __name__ == "__main__":
    key = jax.random.PRNGKey(0)
    kx, kp = jax.random.split(key)
    x = jax.random.normal(kx, (BATCH, 1, IN_LEN), jnp.float32)
    params = init_params(kp)
    w_packed, b_packed = pack_params(params)

    out = convlstm_forward(x, w_packed, b_packed)
    out = jax.block_until_ready(out)

    ref = reference_forward(x, params)
    assert out.shape == (BATCH, OUT_SHAPE)
    # MXU default precision runs the (exact-in-reference) selection matmuls in
    # bf16 passes, so allow a slightly looser tolerance than pure-f32.
    assert jnp.allclose(out, ref, atol=2e-3, rtol=2e-3), (out, ref)
    print("KERNEL_OK")
</pallas_src>

<mosaic_0001>
module attributes {stable_mosaic.version = 11 : i64} {
  func.func @convlstm_kernel(%arg0: memref<128x8xf32, #tpu.memory_space<vmem>>, %arg1: memref<1264x128xbf16, #tpu.memory_space<vmem>>, %arg2: memref<48x128xf32, #tpu.memory_space<vmem>>, %arg3: memref<2x128xf32, #tpu.memory_space<vmem>>, %arg4: memref<16x32xf32, #tpu.memory_space<vmem>>) attributes {dimension_semantics = [], scalar_prefetch = 0 : i64, scratch_operands = 1 : i64, tpu.core_type = #tpu.core_type<tc>} {
    %c0 = arith.constant 0 : index
    %c0_0 = arith.constant 0 : index
    %0 = vector.load %arg0[%c0, %c0_0] : memref<128x8xf32, #tpu.memory_space<vmem>>, vector<128x8xf32>
    %c592 = arith.constant 592 : index
    %c0_1 = arith.constant 0 : index
    %1 = vector.load %arg1[%c592, %c0_1] : memref<1264x128xbf16, #tpu.memory_space<vmem>>, vector<128x128xbf16>
    %2 = arith.extf %1 : vector<128x128xbf16> to vector<128x128xf32>
    %cst = arith.constant dense<0.000000e+00> : vector<128x8xf32>
    %3 = tpu.matmul %2, %0, %cst {dimension_numbers = #tpu.dot_dimension_numbers<[1], [0], [0], [1], [0, 0, 1, 1], [], []>} : vector<128x128xf32>, vector<128x8xf32>, vector<128x8xf32> -> vector<128x8xf32>
    %c720 = arith.constant 720 : index
    %c0_2 = arith.constant 0 : index
    %4 = vector.load %arg1[%c720, %c0_2] : memref<1264x128xbf16, #tpu.memory_space<vmem>>, vector<128x128xbf16>
    %5 = arith.extf %4 : vector<128x128xbf16> to vector<128x128xf32>
    %cst_3 = arith.constant dense<0.000000e+00> : vector<128x8xf32>
    %6 = tpu.matmul %5, %0, %cst_3 {dimension_numbers = #tpu.dot_dimension_numbers<[1], [0], [0], [1], [0, 0, 1, 1], [], []>} : vector<128x128xf32>, vector<128x8xf32>, vector<128x8xf32> -> vector<128x8xf32>
    %c0_4 = arith.constant 0 : index
    %c0_5 = arith.constant 0 : index
    %7 = vector.load %arg1[%c0_4, %c0_5] : memref<1264x128xbf16, #tpu.memory_space<vmem>>, vector<8x32xbf16>
    %8 = arith.extf %7 : vector<8x32xbf16> to vector<8x32xf32>
    %cst_6 = arith.constant dense<0.000000e+00> : vector<128x32xf32>
    %9 = tpu.matmul %3, %8, %cst_6 {dimension_numbers = #tpu.dot_dimension_numbers<[1], [0], [0], [1], [0, 0, 1, 1], [], []>} : vector<128x8xf32>, vector<8x32xf32>, vector<128x32xf32> -> vector<128x32xf32>
    %c16 = arith.constant 16 : index
    %c0_7 = arith.constant 0 : index
    %10 = vector.load %arg1[%c16, %c0_7] : memref<1264x128xbf16, #tpu.memory_space<vmem>>, vector<8x32xbf16>
    %11 = arith.extf %10 : vector<8x32xbf16> to vector<8x32xf32>
    %cst_8 = arith.constant dense<0.000000e+00> : vector<128x32xf32>
    %12 = tpu.matmul %0, %11, %cst_8 {dimension_numbers = #tpu.dot_dimension_numbers<[1], [0], [0], [1], [0, 0, 1, 1], [], []>} : vector<128x8xf32>, vector<8x32xf32>, vector<128x32xf32> -> vector<128x32xf32>
    %13 = arith.addf %9, %12 : vector<128x32xf32>
    %c32 = arith.constant 32 : index
    %c0_9 = arith.constant 0 : index
    %14 = vector.load %arg1[%c32, %c0_9] : memref<1264x128xbf16, #tpu.memory_space<vmem>>, vector<8x32xbf16>
    %15 = arith.extf %14 : vector<8x32xbf16> to vector<8x32xf32>
    %cst_10 = arith.constant dense<0.000000e+00> : vector<128x32xf32>
    %16 = tpu.matmul %6, %15, %cst_10 {dimension_numbers = #tpu.dot_dimension_numbers<[1], [0], [0], [1], [0, 0, 1, 1], [], []>} : vector<128x8xf32>, vector<8x32xf32>, vector<128x32xf32> -> vector<128x32xf32>
    %17 = arith.addf %13, %16 : vector<128x32xf32>
    %c0_11 = arith.constant 0 : index
    %c0_12 = arith.constant 0 : index
    %18 = vector.load %arg2[%c0_11, %c0_12] : memref<48x128xf32, #tpu.memory_space<vmem>>, vector<1x32xf32>
    %19 = vector.broadcast %18 : vector<1x32xf32> to vector<128x32xf32>
    %20 = arith.addf %17, %19 : vector<128x32xf32>
    %cst_13 = arith.constant 0.000000e+00 : f32
    %21 = vector.broadcast %cst_13 : f32 to vector<128x32xf32>
    %22 = arith.maximumf %20, %21 : vector<128x32xf32>
    %c848 = arith.constant 848 : index
    %c0_14 = arith.constant 0 : index
    %23 = vector.load %arg1[%c848, %c0_14] : memref<1264x128xbf16, #tpu.memory_space<vmem>>, vector<64x128xbf16>
    %24 = arith.extf %23 : vector<64x128xbf16> to vector<64x128xf32>
    %cst_15 = arith.constant dense<0.000000e+00> : vector<64x32xf32>
    %25 = tpu.matmul %24, %22, %cst_15 {dimension_numbers = #tpu.dot_dimension_numbers<[1], [0], [0], [1], [0, 0, 1, 1], [], []>} : vector<64x128xf32>, vector<128x32xf32>, vector<64x32xf32> -> vector<64x32xf32>
    %c912 = arith.constant 912 : index
    %c0_16 = arith.constant 0 : index
    %26 = vector.load %arg1[%c912, %c0_16] : memref<1264x128xbf16, #tpu.memory_space<vmem>>, vector<64x128xbf16>
    %27 = arith.extf %26 : vector<64x128xbf16> to vector<64x128xf32>
    %cst_17 = arith.constant dense<0.000000e+00> : vector<64x32xf32>
    %28 = tpu.matmul %27, %22, %cst_17 {dimension_numbers = #tpu.dot_dimension_numbers<[1], [0], [0], [1], [0, 0, 1, 1], [], []>} : vector<64x128xf32>, vector<128x32xf32>, vector<64x32xf32> -> vector<64x32xf32>
    %29 = arith.maximumf %25, %28 : vector<64x32xf32>
    %c976 = arith.constant 976 : index
    %c0_18 = arith.constant 0 : index
    %30 = vector.load %arg1[%c976, %c0_18] : memref<1264x128xbf16, #tpu.memory_space<vmem>>, vector<64x64xbf16>
    %31 = arith.extf %30 : vector<64x64xbf16> to vector<64x64xf32>
    %cst_19 = arith.constant dense<0.000000e+00> : vector<64x32xf32>
    %32 = tpu.matmul %31, %29, %cst_19 {dimension_numbers = #tpu.dot_dimension_numbers<[1], [0], [0], [1], [0, 0, 1, 1], [], []>} : vector<64x64xf32>, vector<64x32xf32>, vector<64x32xf32> -> vector<64x32xf32>
    %c1040 = arith.constant 1040 : index
    %c0_20 = arith.constant 0 : index
    %33 = vector.load %arg1[%c1040, %c0_20] : memref<1264x128xbf16, #tpu.memory_space<vmem>>, vector<64x64xbf16>
    %34 = arith.extf %33 : vector<64x64xbf16> to vector<64x64xf32>
    %cst_21 = arith.constant dense<0.000000e+00> : vector<64x32xf32>
    %35 = tpu.matmul %34, %29, %cst_21 {dimension_numbers = #tpu.dot_dimension_numbers<[1], [0], [0], [1], [0, 0, 1, 1], [], []>} : vector<64x64xf32>, vector<64x32xf32>, vector<64x32xf32> -> vector<64x32xf32>
    %c48 = arith.constant 48 : index
    %c0_22 = arith.constant 0 : index
    %36 = vector.load %arg1[%c48, %c0_22] : memref<1264x128xbf16, #tpu.memory_space<vmem>>, vector<32x64xbf16>
    %37 = arith.extf %36 : vector<32x64xbf16> to vector<32x64xf32>
    %cst_23 = arith.constant dense<0.000000e+00> : vector<64x64xf32>
    %38 = tpu.matmul %32, %37, %cst_23 {dimension_numbers = #tpu.dot_dimension_numbers<[1], [0], [0], [1], [0, 0, 1, 1], [], []>} : vector<64x32xf32>, vector<32x64xf32>, vector<64x64xf32> -> vector<64x64xf32>
    %c80 = arith.constant 80 : index
    %c0_24 = arith.constant 0 : index
    %39 = vector.load %arg1[%c80, %c0_24] : memref<1264x128xbf16, #tpu.memory_space<vmem>>, vector<32x64xbf16>
    %40 = arith.extf %39 : vector<32x64xbf16> to vector<32x64xf32>
    %cst_25 = arith.constant dense<0.000000e+00> : vector<64x64xf32>
    %41 = tpu.matmul %29, %40, %cst_25 {dimension_numbers = #tpu.dot_dimension_numbers<[1], [0], [0], [1], [0, 0, 1, 1], [], []>} : vector<64x32xf32>, vector<32x64xf32>, vector<64x64xf32> -> vector<64x64xf32>
    %42 = arith.addf %38, %41 : vector<64x64xf32>
    %c112 = arith.constant 112 : index
    %c0_26 = arith.constant 0 : index
    %43 = vector.load %arg1[%c112, %c0_26] : memref<1264x128xbf16, #tpu.memory_space<vmem>>, vector<32x64xbf16>
    %44 = arith.extf %43 : vector<32x64xbf16> to vector<32x64xf32>
    %cst_27 = arith.constant dense<0.000000e+00> : vector<64x64xf32>
    %45 = tpu.matmul %35, %44, %cst_27 {dimension_numbers = #tpu.dot_dimension_numbers<[1], [0], [0], [1], [0, 0, 1, 1], [], []>} : vector<64x32xf32>, vector<32x64xf32>, vector<64x64xf32> -> vector<64x64xf32>
    %46 = arith.addf %42, %45 : vector<64x64xf32>
    %c8 = arith.constant 8 : index
    %c0_28 = arith.constant 0 : index
    %47 = vector.load %arg2[%c8, %c0_28] : memref<48x128xf32, #tpu.memory_space<vmem>>, vector<1x64xf32>
    %48 = vector.broadcast %47 : vector<1x64xf32> to vector<64x64xf32>
    %49 = arith.addf %46, %48 : vector<64x64xf32>
    %cst_29 = arith.constant 0.000000e+00 : f32
    %50 = vector.broadcast %cst_29 : f32 to vector<64x64xf32>
    %51 = arith.maximumf %49, %50 : vector<64x64xf32>
    %c1104 = arith.constant 1104 : index
    %c0_30 = arith.constant 0 : index
    %52 = vector.load %arg1[%c1104, %c0_30] : memref<1264x128xbf16, #tpu.memory_space<vmem>>, vector<32x64xbf16>
    %53 = arith.extf %52 : vector<32x64xbf16> to vector<32x64xf32>
    %cst_31 = arith.constant dense<0.000000e+00> : vector<32x64xf32>
    %54 = tpu.matmul %53, %51, %cst_31 {dimension_numbers = #tpu.dot_dimension_numbers<[1], [0], [0], [1], [0, 0, 1, 1], [], []>} : vector<32x64xf32>, vector<64x64xf32>, vector<32x64xf32> -> vector<32x64xf32>
    %c1136 = arith.constant 1136 : index
    %c0_32 = arith.constant 0 : index
    %55 = vector.load %arg1[%c1136, %c0_32] : memref<1264x128xbf16, #tpu.memory_space<vmem>>, vector<32x64xbf16>
    %56 = arith.extf %55 : vector<32x64xbf16> to vector<32x64xf32>
    %cst_33 = arith.constant dense<0.000000e+00> : vector<32x64xf32>
    %57 = tpu.matmul %56, %51, %cst_33 {dimension_numbers = #tpu.dot_dimension_numbers<[1], [0], [0], [1], [0, 0, 1, 1], [], []>} : vector<32x64xf32>, vector<64x64xf32>, vector<32x64xf32> -> vector<32x64xf32>
    %58 = arith.maximumf %54, %57 : vector<32x64xf32>
    %c1168 = arith.constant 1168 : index
    %c0_34 = arith.constant 0 : index
    %59 = vector.load %arg1[%c1168, %c0_34] : memref<1264x128xbf16, #tpu.memory_space<vmem>>, vector<32x32xbf16>
    %60 = arith.extf %59 : vector<32x32xbf16> to vector<32x32xf32>
    %cst_35 = arith.constant dense<0.000000e+00> : vector<32x64xf32>
    %61 = tpu.matmul %60, %58, %cst_35 {dimension_numbers = #tpu.dot_dimension_numbers<[1], [0], [0], [1], [0, 0, 1, 1], [], []>} : vector<32x32xf32>, vector<32x64xf32>, vector<32x64xf32> -> vector<32x64xf32>
    %c1200 = arith.constant 1200 : index
    %c0_36 = arith.constant 0 : index
    %62 = vector.load %arg1[%c1200, %c0_36] : memref<1264x128xbf16, #tpu.memory_space<vmem>>, vector<32x32xbf16>
    %63 = arith.extf %62 : vector<32x32xbf16> to vector<32x32xf32>
    %cst_37 = arith.constant dense<0.000000e+00> : vector<32x64xf32>
    %64 = tpu.matmul %63, %58, %cst_37 {dimension_numbers = #tpu.dot_dimension_numbers<[1], [0], [0], [1], [0, 0, 1, 1], [], []>} : vector<32x32xf32>, vector<32x64xf32>, vector<32x64xf32> -> vector<32x64xf32>
    %c144 = arith.constant 144 : index
    %c0_38 = arith.constant 0 : index
    %65 = vector.load %arg1[%c144, %c0_38] : memref<1264x128xbf16, #tpu.memory_space<vmem>>, vector<64x128xbf16>
    %66 = arith.extf %65 : vector<64x128xbf16> to vector<64x128xf32>
    %cst_39 = arith.constant dense<0.000000e+00> : vector<32x128xf32>
    %67 = tpu.matmul %61, %66, %cst_39 {dimension_numbers = #tpu.dot_dimension_numbers<[1], [0], [0], [1], [0, 0, 1, 1], [], []>} : vector<32x64xf32>, vector<64x128xf32>, vector<32x128xf32> -> vector<32x128xf32>
    %c208 = arith.constant 208 : index
    %c0_40 = arith.constant 0 : index
    %68 = vector.load %arg1[%c208, %c0_40] : memref<1264x128xbf16, #tpu.memory_space<vmem>>, vector<64x128xbf16>
    %69 = arith.extf %68 : vector<64x128xbf16> to vector<64x128xf32>
    %cst_41 = arith.constant dense<0.000000e+00> : vector<32x128xf32>
    %70 = tpu.matmul %58, %69, %cst_41 {dimension_numbers = #tpu.dot_dimension_numbers<[1], [0], [0], [1], [0, 0, 1, 1], [], []>} : vector<32x64xf32>, vector<64x128xf32>, vector<32x128xf32> -> vector<32x128xf32>
    %71 = arith.addf %67, %70 : vector<32x128xf32>
    %c272 = arith.constant 272 : index
    %c0_42 = arith.constant 0 : index
    %72 = vector.load %arg1[%c272, %c0_42] : memref<1264x128xbf16, #tpu.memory_space<vmem>>, vector<64x128xbf16>
    %73 = arith.extf %72 : vector<64x128xbf16> to vector<64x128xf32>
    %cst_43 = arith.constant dense<0.000000e+00> : vector<32x128xf32>
    %74 = tpu.matmul %64, %73, %cst_43 {dimension_numbers = #tpu.dot_dimension_numbers<[1], [0], [0], [1], [0, 0, 1, 1], [], []>} : vector<32x64xf32>, vector<64x128xf32>, vector<32x128xf32> -> vector<32x128xf32>
    %75 = arith.addf %71, %74 : vector<32x128xf32>
    %c16_44 = arith.constant 16 : index
    %c0_45 = arith.constant 0 : index
    %76 = vector.load %arg2[%c16_44, %c0_45] : memref<48x128xf32, #tpu.memory_space<vmem>>, vector<1x128xf32>
    %77 = vector.broadcast %76 : vector<1x128xf32> to vector<32x128xf32>
    %78 = arith.addf %75, %77 : vector<32x128xf32>
    %cst_46 = arith.constant 0.000000e+00 : f32
    %79 = vector.broadcast %cst_46 : f32 to vector<32x128xf32>
    %80 = arith.maximumf %78, %79 : vector<32x128xf32>
    %c1232 = arith.constant 1232 : index
    %c0_47 = arith.constant 0 : index
    %81 = vector.load %arg1[%c1232, %c0_47] : memref<1264x128xbf16, #tpu.memory_space<vmem>>, vector<16x32xbf16>
    %82 = arith.extf %81 : vector<16x32xbf16> to vector<16x32xf32>
    %cst_48 = arith.constant dense<0.000000e+00> : vector<16x128xf32>
    %83 = tpu.matmul %82, %80, %cst_48 {dimension_numbers = #tpu.dot_dimension_numbers<[1], [0], [0], [1], [0, 0, 1, 1], [], []>} : vector<16x32xf32>, vector<32x128xf32>, vector<16x128xf32> -> vector<16x128xf32>
    %c1248 = arith.constant 1248 : index
    %c0_49 = arith.constant 0 : index
    %84 = vector.load %arg1[%c1248, %c0_49] : memref<1264x128xbf16, #tpu.memory_space<vmem>>, vector<16x32xbf16>
    %85 = arith.extf %84 : vector<16x32xbf16> to vector<16x32xf32>
    %cst_50 = arith.constant dense<0.000000e+00> : vector<16x128xf32>
    %86 = tpu.matmul %85, %80, %cst_50 {dimension_numbers = #tpu.dot_dimension_numbers<[1], [0], [0], [1], [0, 0, 1, 1], [], []>} : vector<16x32xf32>, vector<32x128xf32>, vector<16x128xf32> -> vector<16x128xf32>
    %87 = arith.maximumf %83, %86 : vector<16x128xf32>
    %c336 = arith.constant 336 : index
    %c0_51 = arith.constant 0 : index
    %88 = vector.load %arg1[%c336, %c0_51] : memref<1264x128xbf16, #tpu.memory_space<vmem>>, vector<128x128xbf16>
    %89 = arith.extf %88 : vector<128x128xbf16> to vector<128x128xf32>
    %cst_52 = arith.constant dense<0.000000e+00> : vector<16x128xf32>
    %90 = tpu.matmul %87, %89, %cst_52 {dimension_numbers = #tpu.dot_dimension_numbers<[1], [0], [0], [1], [0, 0, 1, 1], [], []>} : vector<16x128xf32>, vector<128x128xf32>, vector<16x128xf32> -> vector<16x128xf32>
    %c24 = arith.constant 24 : index
    %c0_53 = arith.constant 0 : index
    %91 = vector.load %arg2[%c24, %c0_53] : memref<48x128xf32, #tpu.memory_space<vmem>>, vector<1x128xf32>
    %92 = vector.broadcast %91 : vector<1x128xf32> to vector<16x128xf32>
    %93 = arith.addf %90, %92 : vector<16x128xf32>
    %c464 = arith.constant 464 : index
    %c0_54 = arith.constant 0 : index
    %94 = vector.load %arg1[%c464, %c0_54] : memref<1264x128xbf16, #tpu.memory_space<vmem>>, vector<32x128xbf16>
    %95 = arith.extf %94 : vector<32x128xbf16> to vector<32x128xf32>
    %cst_55 = arith.constant 0.000000e+00 : f32
    %96 = vector.broadcast %cst_55 : f32 to vector<2x32xf32>
    %cst_56 = arith.constant 0.000000e+00 : f32
    %97 = vector.broadcast %cst_56 : f32 to vector<2x32xf32>
    %98 = vector.extract_strided_slice %93 {offsets = [0, 0], sizes = [2, 128], strides = [1, 1]} : vector<16x128xf32> to vector<2x128xf32>
    %cst_57 = arith.constant dense<0.000000e+00> : vector<2x128xf32>
    %99 = tpu.matmul %96, %95, %cst_57 {dimension_numbers = #tpu.dot_dimension_numbers<[1], [0], [0], [1], [0, 0, 1, 1], [], []>} : vector<2x32xf32>, vector<32x128xf32>, vector<2x128xf32> -> vector<2x128xf32>
    %100 = arith.addf %98, %99 : vector<2x128xf32>
    %cst_58 = arith.constant 5.000000e-01 : f32
    %101 = vector.broadcast %cst_58 : f32 to vector<2x128xf32>
    %102 = arith.mulf %101, %100 : vector<2x128xf32>
    %103 = math.tanh %102 : vector<2x128xf32>
    %cst_59 = arith.constant 1.000000e+00 : f32
    %104 = vector.broadcast %cst_59 : f32 to vector<2x128xf32>
    %105 = arith.addf %103, %104 : vector<2x128xf32>
    %cst_60 = arith.constant 5.000000e-01 : f32
    %106 = vector.broadcast %cst_60 : f32 to vector<2x128xf32>
    %107 = arith.mulf %106, %105 : vector<2x128xf32>
    %108 = math.tanh %100 : vector<2x128xf32>
    %109 = vector.extract_strided_slice %107 {offsets = [0, 32], sizes = [2, 32], strides = [1, 1]} : vector<2x128xf32> to vector<2x32xf32>
    %110 = arith.mulf %109, %97 : vector<2x32xf32>
    %111 = vector.extract_strided_slice %107 {offsets = [0, 0], sizes = [2, 32], strides = [1, 1]} : vector<2x128xf32> to vector<2x32xf32>
    %112 = vector.extract_strided_slice %108 {offsets = [0, 64], sizes = [2, 32], strides = [1, 1]} : vector<2x128xf32> to vector<2x32xf32>
    %113 = arith.mulf %111, %112 : vector<2x32xf32>
    %114 = arith.addf %110, %113 : vector<2x32xf32>
    %115 = vector.extract_strided_slice %107 {offsets = [0, 96], sizes = [2, 32], strides = [1, 1]} : vector<2x128xf32> to vector<2x32xf32>
    %116 = math.tanh %114 : vector<2x32xf32>
    %117 = arith.mulf %115, %116 : vector<2x32xf32>
    %c0_61 = arith.constant 0 : index
    %c0_62 = arith.constant 0 : index
    %118 = vector.load %arg4[%c0_61, %c0_62] : memref<16x32xf32, #tpu.memory_space<vmem>>, vector<2x32xf32>
    tpu.vector_store %arg4[%c0_61, %c0_62], %117 {strides = array<i32>} : memref<16x32xf32, #tpu.memory_space<vmem>>, vector<2x32xf32>,
    %119 = vector.extract_strided_slice %93 {offsets = [2, 0], sizes = [2, 128], strides = [1, 1]} : vector<16x128xf32> to vector<2x128xf32>
    %cst_63 = arith.constant dense<0.000000e+00> : vector<2x128xf32>
    %120 = tpu.matmul %117, %95, %cst_63 {dimension_numbers = #tpu.dot_dimension_numbers<[1], [0], [0], [1], [0, 0, 1, 1], [], []>} : vector<2x32xf32>, vector<32x128xf32>, vector<2x128xf32> -> vector<2x128xf32>
    %121 = arith.addf %119, %120 : vector<2x128xf32>
    %cst_64 = arith.constant 5.000000e-01 : f32
    %122 = vector.broadcast %cst_64 : f32 to vector<2x128xf32>
    %123 = arith.mulf %122, %121 : vector<2x128xf32>
    %124 = math.tanh %123 : vector<2x128xf32>
    %cst_65 = arith.constant 1.000000e+00 : f32
    %125 = vector.broadcast %cst_65 : f32 to vector<2x128xf32>
    %126 = arith.addf %124, %125 : vector<2x128xf32>
    %cst_66 = arith.constant 5.000000e-01 : f32
    %127 = vector.broadcast %cst_66 : f32 to vector<2x128xf32>
    %128 = arith.mulf %127, %126 : vector<2x128xf32>
    %129 = math.tanh %121 : vector<2x128xf32>
    %130 = vector.extract_strided_slice %128 {offsets = [0, 32], sizes = [2, 32], strides = [1, 1]} : vector<2x128xf32> to vector<2x32xf32>
    %131 = arith.mulf %130, %114 : vector<2x32xf32>
    %132 = vector.extract_strided_slice %128 {offsets = [0, 0], sizes = [2, 32], strides = [1, 1]} : vector<2x128xf32> to vector<2x32xf32>
    %133 = vector.extract_strided_slice %129 {offsets = [0, 64], sizes = [2, 32], strides = [1, 1]} : vector<2x128xf32> to vector<2x32xf32>
    %134 = arith.mulf %132, %133 : vector<2x32xf32>
    %135 = arith.addf %131, %134 : vector<2x32xf32>
    %136 = vector.extract_strided_slice %128 {offsets = [0, 96], sizes = [2, 32], strides = [1, 1]} : vector<2x128xf32> to vector<2x32xf32>
    %137 = math.tanh %135 : vector<2x32xf32>
    %138 = arith.mulf %136, %137 : vector<2x32xf32>
    %c2 = arith.constant 2 : index
    %c0_67 = arith.constant 0 : index
    %139 = vector.load %arg4[%c2, %c0_67] : memref<16x32xf32, #tpu.memory_space<vmem>>, vector<2x32xf32>
    tpu.vector_store %arg4[%c2, %c0_67], %138 {strides = array<i32>} : memref<16x32xf32, #tpu.memory_space<vmem>>, vector<2x32xf32>,
    %140 = vector.extract_strided_slice %93 {offsets = [4, 0], sizes = [2, 128], strides = [1, 1]} : vector<16x128xf32> to vector<2x128xf32>
    %cst_68 = arith.constant dense<0.000000e+00> : vector<2x128xf32>
    %141 = tpu.matmul %138, %95, %cst_68 {dimension_numbers = #tpu.dot_dimension_numbers<[1], [0], [0], [1], [0, 0, 1, 1], [], []>} : vector<2x32xf32>, vector<32x128xf32>, vector<2x128xf32> -> vector<2x128xf32>
    %142 = arith.addf %140, %141 : vector<2x128xf32>
    %cst_69 = arith.constant 5.000000e-01 : f32
    %143 = vector.broadcast %cst_69 : f32 to vector<2x128xf32>
    %144 = arith.mulf %143, %142 : vector<2x128xf32>
    %145 = math.tanh %144 : vector<2x128xf32>
    %cst_70 = arith.constant 1.000000e+00 : f32
    %146 = vector.broadcast %cst_70 : f32 to vector<2x128xf32>
    %147 = arith.addf %145, %146 : vector<2x128xf32>
    %cst_71 = arith.constant 5.000000e-01 : f32
    %148 = vector.broadcast %cst_71 : f32 to vector<2x128xf32>
    %149 = arith.mulf %148, %147 : vector<2x128xf32>
    %150 = math.tanh %142 : vector<2x128xf32>
    %151 = vector.extract_strided_slice %149 {offsets = [0, 32], sizes = [2, 32], strides = [1, 1]} : vector<2x128xf32> to vector<2x32xf32>
    %152 = arith.mulf %151, %135 : vector<2x32xf32>
    %153 = vector.extract_strided_slice %149 {offsets = [0, 0], sizes = [2, 32], strides = [1, 1]} : vector<2x128xf32> to vector<2x32xf32>
    %154 = vector.extract_strided_slice %150 {offsets = [0, 64], sizes = [2, 32], strides = [1, 1]} : vector<2x128xf32> to vector<2x32xf32>
    %155 = arith.mulf %153, %154 : vector<2x32xf32>
    %156 = arith.addf %152, %155 : vector<2x32xf32>
    %157 = vector.extract_strided_slice %149 {offsets = [0, 96], sizes = [2, 32], strides = [1, 1]} : vector<2x128xf32> to vector<2x32xf32>
    %158 = math.tanh %156 : vector<2x32xf32>
    %159 = arith.mulf %157, %158 : vector<2x32xf32>
    %c4 = arith.constant 4 : index
    %c0_72 = arith.constant 0 : index
    %160 = vector.load %arg4[%c4, %c0_72] : memref<16x32xf32, #tpu.memory_space<vmem>>, vector<2x32xf32>
    tpu.vector_store %arg4[%c4, %c0_72], %159 {strides = array<i32>} : memref<16x32xf32, #tpu.memory_space<vmem>>, vector<2x32xf32>,
    %161 = vector.extract_strided_slice %93 {offsets = [6, 0], sizes = [2, 128], strides = [1, 1]} : vector<16x128xf32> to vector<2x128xf32>
    %cst_73 = arith.constant dense<0.000000e+00> : vector<2x128xf32>
    %162 = tpu.matmul %159, %95, %cst_73 {dimension_numbers = #tpu.dot_dimension_numbers<[1], [0], [0], [1], [0, 0, 1, 1], [], []>} : vector<2x32xf32>, vector<32x128xf32>, vector<2x128xf32> -> vector<2x128xf32>
    %163 = arith.addf %161, %162 : vector<2x128xf32>
    %cst_74 = arith.constant 5.000000e-01 : f32
    %164 = vector.broadcast %cst_74 : f32 to vector<2x128xf32>
    %165 = arith.mulf %164, %163 : vector<2x128xf32>
    %166 = math.tanh %165 : vector<2x128xf32>
    %cst_75 = arith.constant 1.000000e+00 : f32
    %167 = vector.broadcast %cst_75 : f32 to vector<2x128xf32>
    %168 = arith.addf %166, %167 : vector<2x128xf32>
    %cst_76 = arith.constant 5.000000e-01 : f32
    %169 = vector.broadcast %cst_76 : f32 to vector<2x128xf32>
    %170 = arith.mulf %169, %168 : vector<2x128xf32>
    %171 = math.tanh %163 : vector<2x128xf32>
    %172 = vector.extract_strided_slice %170 {offsets = [0, 32], sizes = [2, 32], strides = [1, 1]} : vector<2x128xf32> to vector<2x32xf32>
    %173 = arith.mulf %172, %156 : vector<2x32xf32>
    %174 = vector.extract_strided_slice %170 {offsets = [0, 0], sizes = [2, 32], strides = [1, 1]} : vector<2x128xf32> to vector<2x32xf32>
    %175 = vector.extract_strided_slice %171 {offsets = [0, 64], sizes = [2, 32], strides = [1, 1]} : vector<2x128xf32> to vector<2x32xf32>
    %176 = arith.mulf %174, %175 : vector<2x32xf32>
    %177 = arith.addf %173, %176 : vector<2x32xf32>
    %178 = vector.extract_strided_slice %170 {offsets = [0, 96], sizes = [2, 32], strides = [1, 1]} : vector<2x128xf32> to vector<2x32xf32>
    %179 = math.tanh %177 : vector<2x32xf32>
    %180 = arith.mulf %178, %179 : vector<2x32xf32>
    %c6 = arith.constant 6 : index
    %c0_77 = arith.constant 0 : index
    %181 = vector.load %arg4[%c6, %c0_77] : memref<16x32xf32, #tpu.memory_space<vmem>>, vector<2x32xf32>
    tpu.vector_store %arg4[%c6, %c0_77], %180 {strides = array<i32>} : memref<16x32xf32, #tpu.memory_space<vmem>>, vector<2x32xf32>,
    %182 = vector.extract_strided_slice %93 {offsets = [8, 0], sizes = [2, 128], strides = [1, 1]} : vector<16x128xf32> to vector<2x128xf32>
    %cst_78 = arith.constant dense<0.000000e+00> : vector<2x128xf32>
    %183 = tpu.matmul %180, %95, %cst_78 {dimension_numbers = #tpu.dot_dimension_numbers<[1], [0], [0], [1], [0, 0, 1, 1], [], []>} : vector<2x32xf32>, vector<32x128xf32>, vector<2x128xf32> -> vector<2x128xf32>
    %184 = arith.addf %182, %183 : vector<2x128xf32>
    %cst_79 = arith.constant 5.000000e-01 : f32
    %185 = vector.broadcast %cst_79 : f32 to vector<2x128xf32>
    %186 = arith.mulf %185, %184 : vector<2x128xf32>
    %187 = math.tanh %186 : vector<2x128xf32>
    %cst_80 = arith.constant 1.000000e+00 : f32
    %188 = vector.broadcast %cst_80 : f32 to vector<2x128xf32>
    %189 = arith.addf %187, %188 : vector<2x128xf32>
    %cst_81 = arith.constant 5.000000e-01 : f32
    %190 = vector.broadcast %cst_81 : f32 to vector<2x128xf32>
    %191 = arith.mulf %190, %189 : vector<2x128xf32>
    %192 = math.tanh %184 : vector<2x128xf32>
    %193 = vector.extract_strided_slice %191 {offsets = [0, 32], sizes = [2, 32], strides = [1, 1]} : vector<2x128xf32> to vector<2x32xf32>
    %194 = arith.mulf %193, %177 : vector<2x32xf32>
    %195 = vector.extract_strided_slice %191 {offsets = [0, 0], sizes = [2, 32], strides = [1, 1]} : vector<2x128xf32> to vector<2x32xf32>
    %196 = vector.extract_strided_slice %192 {offsets = [0, 64], sizes = [2, 32], strides = [1, 1]} : vector<2x128xf32> to vector<2x32xf32>
    %197 = arith.mulf %195, %196 : vector<2x32xf32>
    %198 = arith.addf %194, %197 : vector<2x32xf32>
    %199 = vector.extract_strided_slice %191 {offsets = [0, 96], sizes = [2, 32], strides = [1, 1]} : vector<2x128xf32> to vector<2x32xf32>
    %200 = math.tanh %198 : vector<2x32xf32>
    %201 = arith.mulf %199, %200 : vector<2x32xf32>
    %c8_82 = arith.constant 8 : index
    %c0_83 = arith.constant 0 : index
    %202 = vector.load %arg4[%c8_82, %c0_83] : memref<16x32xf32, #tpu.memory_space<vmem>>, vector<2x32xf32>
    tpu.vector_store %arg4[%c8_82, %c0_83], %201 {strides = array<i32>} : memref<16x32xf32, #tpu.memory_space<vmem>>, vector<2x32xf32>,
    %203 = vector.extract_strided_slice %93 {offsets = [10, 0], sizes = [2, 128], strides = [1, 1]} : vector<16x128xf32> to vector<2x128xf32>
    %cst_84 = arith.constant dense<0.000000e+00> : vector<2x128xf32>
    %204 = tpu.matmul %201, %95, %cst_84 {dimension_numbers = #tpu.dot_dimension_numbers<[1], [0], [0], [1], [0, 0, 1, 1], [], []>} : vector<2x32xf32>, vector<32x128xf32>, vector<2x128xf32> -> vector<2x128xf32>
    %205 = arith.addf %203, %204 : vector<2x128xf32>
    %cst_85 = arith.constant 5.000000e-01 : f32
    %206 = vector.broadcast %cst_85 : f32 to vector<2x128xf32>
    %207 = arith.mulf %206, %205 : vector<2x128xf32>
    %208 = math.tanh %207 : vector<2x128xf32>
    %cst_86 = arith.constant 1.000000e+00 : f32
    %209 = vector.broadcast %cst_86 : f32 to vector<2x128xf32>
    %210 = arith.addf %208, %209 : vector<2x128xf32>
    %cst_87 = arith.constant 5.000000e-01 : f32
    %211 = vector.broadcast %cst_87 : f32 to vector<2x128xf32>
    %212 = arith.mulf %211, %210 : vector<2x128xf32>
    %213 = math.tanh %205 : vector<2x128xf32>
    %214 = vector.extract_strided_slice %212 {offsets = [0, 32], sizes = [2, 32], strides = [1, 1]} : vector<2x128xf32> to vector<2x32xf32>
    %215 = arith.mulf %214, %198 : vector<2x32xf32>
    %216 = vector.extract_strided_slice %212 {offsets = [0, 0], sizes = [2, 32], strides = [1, 1]} : vector<2x128xf32> to vector<2x32xf32>
    %217 = vector.extract_strided_slice %213 {offsets = [0, 64], sizes = [2, 32], strides = [1, 1]} : vector<2x128xf32> to vector<2x32xf32>
    %218 = arith.mulf %216, %217 : vector<2x32xf32>
    %219 = arith.addf %215, %218 : vector<2x32xf32>
    %220 = vector.extract_strided_slice %212 {offsets = [0, 96], sizes = [2, 32], strides = [1, 1]} : vector<2x128xf32> to vector<2x32xf32>
    %221 = math.tanh %219 : vector<2x32xf32>
    %222 = arith.mulf %220, %221 : vector<2x32xf32>
    %c10 = arith.constant 10 : index
    %c0_88 = arith.constant 0 : index
    %223 = vector.load %arg4[%c10, %c0_88] : memref<16x32xf32, #tpu.memory_space<vmem>>, vector<2x32xf32>
    tpu.vector_store %arg4[%c10, %c0_88], %222 {strides = array<i32>} : memref<16x32xf32, #tpu.memory_space<vmem>>, vector<2x32xf32>,
    %224 = vector.extract_strided_slice %93 {offsets = [12, 0], sizes = [2, 128], strides = [1, 1]} : vector<16x128xf32> to vector<2x128xf32>
    %cst_89 = arith.constant dense<0.000000e+00> : vector<2x128xf32>
    %225 = tpu.matmul %222, %95, %cst_89 {dimension_numbers = #tpu.dot_dimension_numbers<[1], [0], [0], [1], [0, 0, 1, 1], [], []>} : vector<2x32xf32>, vector<32x128xf32>, vector<2x128xf32> -> vector<2x128xf32>
    %226 = arith.addf %224, %225 : vector<2x128xf32>
    %cst_90 = arith.constant 5.000000e-01 : f32
    %227 = vector.broadcast %cst_90 : f32 to vector<2x128xf32>
    %228 = arith.mulf %227, %226 : vector<2x128xf32>
    %229 = math.tanh %228 : vector<2x128xf32>
    %cst_91 = arith.constant 1.000000e+00 : f32
    %230 = vector.broadcast %cst_91 : f32 to vector<2x128xf32>
    %231 = arith.addf %229, %230 : vector<2x128xf32>
    %cst_92 = arith.constant 5.000000e-01 : f32
    %232 = vector.broadcast %cst_92 : f32 to vector<2x128xf32>
    %233 = arith.mulf %232, %231 : vector<2x128xf32>
    %234 = math.tanh %226 : vector<2x128xf32>
    %235 = vector.extract_strided_slice %233 {offsets = [0, 32], sizes = [2, 32], strides = [1, 1]} : vector<2x128xf32> to vector<2x32xf32>
    %236 = arith.mulf %235, %219 : vector<2x32xf32>
    %237 = vector.extract_strided_slice %233 {offsets = [0, 0], sizes = [2, 32], strides = [1, 1]} : vector<2x128xf32> to vector<2x32xf32>
    %238 = vector.extract_strided_slice %234 {offsets = [0, 64], sizes = [2, 32], strides = [1, 1]} : vector<2x128xf32> to vector<2x32xf32>
    %239 = arith.mulf %237, %238 : vector<2x32xf32>
    %240 = arith.addf %236, %239 : vector<2x32xf32>
    %241 = vector.extract_strided_slice %233 {offsets = [0, 96], sizes = [2, 32], strides = [1, 1]} : vector<2x128xf32> to vector<2x32xf32>
    %242 = math.tanh %240 : vector<2x32xf32>
    %243 = arith.mulf %241, %242 : vector<2x32xf32>
    %c12 = arith.constant 12 : index
    %c0_93 = arith.constant 0 : index
    %244 = vector.load %arg4[%c12, %c0_93] : memref<16x32xf32, #tpu.memory_space<vmem>>, vector<2x32xf32>
    tpu.vector_store %arg4[%c12, %c0_93], %243 {strides = array<i32>} : memref<16x32xf32, #tpu.memory_space<vmem>>, vector<2x32xf32>,
    %245 = vector.extract_strided_slice %93 {offsets = [14, 0], sizes = [2, 128], strides = [1, 1]} : vector<16x128xf32> to vector<2x128xf32>
    %cst_94 = arith.constant dense<0.000000e+00> : vector<2x128xf32>
    %246 = tpu.matmul %243, %95, %cst_94 {dimension_numbers = #tpu.dot_dimension_numbers<[1], [0], [0], [1], [0, 0, 1, 1], [], []>} : vector<2x32xf32>, vector<32x128xf32>, vector<2x128xf32> -> vector<2x128xf32>
    %247 = arith.addf %245, %246 : vector<2x128xf32>
    %cst_95 = arith.constant 5.000000e-01 : f32
    %248 = vector.broadcast %cst_95 : f32 to vector<2x128xf32>
    %249 = arith.mulf %248, %247 : vector<2x128xf32>
    %250 = math.tanh %249 : vector<2x128xf32>
    %cst_96 = arith.constant 1.000000e+00 : f32
    %251 = vector.broadcast %cst_96 : f32 to vector<2x128xf32>
    %252 = arith.addf %250, %251 : vector<2x128xf32>
    %cst_97 = arith.constant 5.000000e-01 : f32
    %253 = vector.broadcast %cst_97 : f32 to vector<2x128xf32>
    %254 = arith.mulf %253, %252 : vector<2x128xf32>
    %255 = math.tanh %247 : vector<2x128xf32>
    %256 = vector.extract_strided_slice %254 {offsets = [0, 32], sizes = [2, 32], strides = [1, 1]} : vector<2x128xf32> to vector<2x32xf32>
    %257 = arith.mulf %256, %240 : vector<2x32xf32>
    %258 = vector.extract_strided_slice %254 {offsets = [0, 0], sizes = [2, 32], strides = [1, 1]} : vector<2x128xf32> to vector<2x32xf32>
    %259 = vector.extract_strided_slice %255 {offsets = [0, 64], sizes = [2, 32], strides = [1, 1]} : vector<2x128xf32> to vector<2x32xf32>
    %260 = arith.mulf %258, %259 : vector<2x32xf32>
    %261 = arith.addf %257, %260 : vector<2x32xf32>
    %262 = vector.extract_strided_slice %254 {offsets = [0, 96], sizes = [2, 32], strides = [1, 1]} : vector<2x128xf32> to vector<2x32xf32>
    %263 = math.tanh %261 : vector<2x32xf32>
    %264 = arith.mulf %262, %263 : vector<2x32xf32>
    %c14 = arith.constant 14 : index
    %c0_98 = arith.constant 0 : index
    %265 = vector.load %arg4[%c14, %c0_98] : memref<16x32xf32, #tpu.memory_space<vmem>>, vector<2x32xf32>
    tpu.vector_store %arg4[%c14, %c0_98], %264 {strides = array<i32>} : memref<16x32xf32, #tpu.memory_space<vmem>>, vector<2x32xf32>,
    %c0_99 = arith.constant 0 : index
    %c0_100 = arith.constant 0 : index
    %266 = vector.load %arg4[%c0_99, %c0_100] : memref<16x32xf32, #tpu.memory_space<vmem>>, vector<16x32xf32>
    %c496 = arith.constant 496 : index
    %c0_101 = arith.constant 0 : index
    %267 = vector.load %arg1[%c496, %c0_101] : memref<1264x128xbf16, #tpu.memory_space<vmem>>, vector<32x128xbf16>
    %268 = arith.extf %267 : vector<32x128xbf16> to vector<32x128xf32>
    %cst_102 = arith.constant dense<0.000000e+00> : vector<16x128xf32>
    %269 = tpu.matmul %266, %268, %cst_102 {dimension_numbers = #tpu.dot_dimension_numbers<[1], [0], [0], [1], [0, 0, 1, 1], [], []>} : vector<16x32xf32>, vector<32x128xf32>, vector<16x128xf32> -> vector<16x128xf32>
    %c32_103 = arith.constant 32 : index
    %c0_104 = arith.constant 0 : index
    %270 = vector.load %arg2[%c32_103, %c0_104] : memref<48x128xf32, #tpu.memory_space<vmem>>, vector<1x128xf32>
    %271 = vector.broadcast %270 : vector<1x128xf32> to vector<16x128xf32>
    %272 = arith.addf %269, %271 : vector<16x128xf32>
    %c528 = arith.constant 528 : index
    %c0_105 = arith.constant 0 : index
    %273 = vector.load %arg1[%c528, %c0_105] : memref<1264x128xbf16, #tpu.memory_space<vmem>>, vector<32x128xbf16>
    %274 = arith.extf %273 : vector<32x128xbf16> to vector<32x128xf32>
    %cst_106 = arith.constant 0.000000e+00 : f32
    %275 = vector.broadcast %cst_106 : f32 to vector<2x32xf32>
    %cst_107 = arith.constant 0.000000e+00 : f32
    %276 = vector.broadcast %cst_107 : f32 to vector<2x32xf32>
    %cst_108 = arith.constant 0.000000e+00 : f32
    %277 = vector.broadcast %cst_108 : f32 to vector<2x32xf32>
    %278 = vector.extract_strided_slice %272 {offsets = [0, 0], sizes = [2, 128], strides = [1, 1]} : vector<16x128xf32> to vector<2x128xf32>
    %cst_109 = arith.constant dense<0.000000e+00> : vector<2x128xf32>
    %279 = tpu.matmul %275, %274, %cst_109 {dimension_numbers = #tpu.dot_dimension_numbers<[1], [0], [0], [1], [0, 0, 1, 1], [], []>} : vector<2x32xf32>, vector<32x128xf32>, vector<2x128xf32> -> vector<2x128xf32>
    %280 = arith.addf %278, %279 : vector<2x128xf32>
    %cst_110 = arith.constant 5.000000e-01 : f32
    %281 = vector.broadcast %cst_110 : f32 to vector<2x128xf32>
    %282 = arith.mulf %281, %280 : vector<2x128xf32>
    %283 = math.tanh %282 : vector<2x128xf32>
    %cst_111 = arith.constant 1.000000e+00 : f32
    %284 = vector.broadcast %cst_111 : f32 to vector<2x128xf32>
    %285 = arith.addf %283, %284 : vector<2x128xf32>
    %cst_112 = arith.constant 5.000000e-01 : f32
    %286 = vector.broadcast %cst_112 : f32 to vector<2x128xf32>
    %287 = arith.mulf %286, %285 : vector<2x128xf32>
    %288 = math.tanh %280 : vector<2x128xf32>
    %289 = vector.extract_strided_slice %287 {offsets = [0, 32], sizes = [2, 32], strides = [1, 1]} : vector<2x128xf32> to vector<2x32xf32>
    %290 = arith.mulf %289, %276 : vector<2x32xf32>
    %291 = vector.extract_strided_slice %287 {offsets = [0, 0], sizes = [2, 32], strides = [1, 1]} : vector<2x128xf32> to vector<2x32xf32>
    %292 = vector.extract_strided_slice %288 {offsets = [0, 64], sizes = [2, 32], strides = [1, 1]} : vector<2x128xf32> to vector<2x32xf32>
    %293 = arith.mulf %291, %292 : vector<2x32xf32>
    %294 = arith.addf %290, %293 : vector<2x32xf32>
    %295 = vector.extract_strided_slice %287 {offsets = [0, 96], sizes = [2, 32], strides = [1, 1]} : vector<2x128xf32> to vector<2x32xf32>
    %296 = math.tanh %294 : vector<2x32xf32>
    %297 = arith.mulf %295, %296 : vector<2x32xf32>
    %298 = arith.addf %277, %297 : vector<2x32xf32>
    %299 = vector.extract_strided_slice %272 {offsets = [2, 0], sizes = [2, 128], strides = [1, 1]} : vector<16x128xf32> to vector<2x128xf32>
    %cst_113 = arith.constant dense<0.000000e+00> : vector<2x128xf32>
    %300 = tpu.matmul %297, %274, %cst_113 {dimension_numbers = #tpu.dot_dimension_numbers<[1], [0], [0], [1], [0, 0, 1, 1], [], []>} : vector<2x32xf32>, vector<32x128xf32>, vector<2x128xf32> -> vector<2x128xf32>
    %301 = arith.addf %299, %300 : vector<2x128xf32>
    %cst_114 = arith.constant 5.000000e-01 : f32
    %302 = vector.broadcast %cst_114 : f32 to vector<2x128xf32>
    %303 = arith.mulf %302, %301 : vector<2x128xf32>
    %304 = math.tanh %303 : vector<2x128xf32>
    %cst_115 = arith.constant 1.000000e+00 : f32
    %305 = vector.broadcast %cst_115 : f32 to vector<2x128xf32>
    %306 = arith.addf %304, %305 : vector<2x128xf32>
    %cst_116 = arith.constant 5.000000e-01 : f32
    %307 = vector.broadcast %cst_116 : f32 to vector<2x128xf32>
    %308 = arith.mulf %307, %306 : vector<2x128xf32>
    %309 = math.tanh %301 : vector<2x128xf32>
    %310 = vector.extract_strided_slice %308 {offsets = [0, 32], sizes = [2, 32], strides = [1, 1]} : vector<2x128xf32> to vector<2x32xf32>
    %311 = arith.mulf %310, %294 : vector<2x32xf32>
    %312 = vector.extract_strided_slice %308 {offsets = [0, 0], sizes = [2, 32], strides = [1, 1]} : vector<2x128xf32> to vector<2x32xf32>
    %313 = vector.extract_strided_slice %309 {offsets = [0, 64], sizes = [2, 32], strides = [1, 1]} : vector<2x128xf32> to vector<2x32xf32>
    %314 = arith.mulf %312, %313 : vector<2x32xf32>
    %315 = arith.addf %311, %314 : vector<2x32xf32>
    %316 = vector.extract_strided_slice %308 {offsets = [0, 96], sizes = [2, 32], strides = [1, 1]} : vector<2x128xf32> to vector<2x32xf32>
    %317 = math.tanh %315 : vector<2x32xf32>
    %318 = arith.mulf %316, %317 : vector<2x32xf32>
    %319 = arith.addf %298, %318 : vector<2x32xf32>
    %320 = vector.extract_strided_slice %272 {offsets = [4, 0], sizes = [2, 128], strides = [1, 1]} : vector<16x128xf32> to vector<2x128xf32>
    %cst_117 = arith.constant dense<0.000000e+00> : vector<2x128xf32>
    %321 = tpu.matmul %318, %274, %cst_117 {dimension_numbers = #tpu.dot_dimension_numbers<[1], [0], [0], [1], [0, 0, 1, 1], [], []>} : vector<2x32xf32>, vector<32x128xf32>, vector<2x128xf32> -> vector<2x128xf32>
    %322 = arith.addf %320, %321 : vector<2x128xf32>
    %cst_118 = arith.constant 5.000000e-01 : f32
    %323 = vector.broadcast %cst_118 : f32 to vector<2x128xf32>
    %324 = arith.mulf %323, %322 : vector<2x128xf32>
    %325 = math.tanh %324 : vector<2x128xf32>
    %cst_119 = arith.constant 1.000000e+00 : f32
    %326 = vector.broadcast %cst_119 : f32 to vector<2x128xf32>
    %327 = arith.addf %325, %326 : vector<2x128xf32>
    %cst_120 = arith.constant 5.000000e-01 : f32
    %328 = vector.broadcast %cst_120 : f32 to vector<2x128xf32>
    %329 = arith.mulf %328, %327 : vector<2x128xf32>
    %330 = math.tanh %322 : vector<2x128xf32>
    %331 = vector.extract_strided_slice %329 {offsets = [0, 32], sizes = [2, 32], strides = [1, 1]} : vector<2x128xf32> to vector<2x32xf32>
    %332 = arith.mulf %331, %315 : vector<2x32xf32>
    %333 = vector.extract_strided_slice %329 {offsets = [0, 0], sizes = [2, 32], strides = [1, 1]} : vector<2x128xf32> to vector<2x32xf32>
    %334 = vector.extract_strided_slice %330 {offsets = [0, 64], sizes = [2, 32], strides = [1, 1]} : vector<2x128xf32> to vector<2x32xf32>
    %335 = arith.mulf %333, %334 : vector<2x32xf32>
    %336 = arith.addf %332, %335 : vector<2x32xf32>
    %337 = vector.extract_strided_slice %329 {offsets = [0, 96], sizes = [2, 32], strides = [1, 1]} : vector<2x128xf32> to vector<2x32xf32>
    %338 = math.tanh %336 : vector<2x32xf32>
    %339 = arith.mulf %337, %338 : vector<2x32xf32>
    %340 = arith.addf %319, %339 : vector<2x32xf32>
    %341 = vector.extract_strided_slice %272 {offsets = [6, 0], sizes = [2, 128], strides = [1, 1]} : vector<16x128xf32> to vector<2x128xf32>
    %cst_121 = arith.constant dense<0.000000e+00> : vector<2x128xf32>
    %342 = tpu.matmul %339, %274, %cst_121 {dimension_numbers = #tpu.dot_dimension_numbers<[1], [0], [0], [1], [0, 0, 1, 1], [], []>} : vector<2x32xf32>, vector<32x128xf32>, vector<2x128xf32> -> vector<2x128xf32>
    %343 = arith.addf %341, %342 : vector<2x128xf32>
    %cst_122 = arith.constant 5.000000e-01 : f32
    %344 = vector.broadcast %cst_122 : f32 to vector<2x128xf32>
    %345 = arith.mulf %344, %343 : vector<2x128xf32>
    %346 = math.tanh %345 : vector<2x128xf32>
    %cst_123 = arith.constant 1.000000e+00 : f32
    %347 = vector.broadcast %cst_123 : f32 to vector<2x128xf32>
    %348 = arith.addf %346, %347 : vector<2x128xf32>
    %cst_124 = arith.constant 5.000000e-01 : f32
    %349 = vector.broadcast %cst_124 : f32 to vector<2x128xf32>
    %350 = arith.mulf %349, %348 : vector<2x128xf32>
    %351 = math.tanh %343 : vector<2x128xf32>
    %352 = vector.extract_strided_slice %350 {offsets = [0, 32], sizes = [2, 32], strides = [1, 1]} : vector<2x128xf32> to vector<2x32xf32>
    %353 = arith.mulf %352, %336 : vector<2x32xf32>
    %354 = vector.extract_strided_slice %350 {offsets = [0, 0], sizes = [2, 32], strides = [1, 1]} : vector<2x128xf32> to vector<2x32xf32>
    %355 = vector.extract_strided_slice %351 {offsets = [0, 64], sizes = [2, 32], strides = [1, 1]} : vector<2x128xf32> to vector<2x32xf32>
    %356 = arith.mulf %354, %355 : vector<2x32xf32>
    %357 = arith.addf %353, %356 : vector<2x32xf32>
    %358 = vector.extract_strided_slice %350 {offsets = [0, 96], sizes = [2, 32], strides = [1, 1]} : vector<2x128xf32> to vector<2x32xf32>
    %359 = math.tanh %357 : vector<2x32xf32>
    %360 = arith.mulf %358, %359 : vector<2x32xf32>
    %361 = arith.addf %340, %360 : vector<2x32xf32>
    %362 = vector.extract_strided_slice %272 {offsets = [8, 0], sizes = [2, 128], strides = [1, 1]} : vector<16x128xf32> to vector<2x128xf32>
    %cst_125 = arith.constant dense<0.000000e+00> : vector<2x128xf32>
    %363 = tpu.matmul %360, %274, %cst_125 {dimension_numbers = #tpu.dot_dimension_numbers<[1], [0], [0], [1], [0, 0, 1, 1], [], []>} : vector<2x32xf32>, vector<32x128xf32>, vector<2x128xf32> -> vector<2x128xf32>
    %364 = arith.addf %362, %363 : vector<2x128xf32>
    %cst_126 = arith.constant 5.000000e-01 : f32
    %365 = vector.broadcast %cst_126 : f32 to vector<2x128xf32>
    %366 = arith.mulf %365, %364 : vector<2x128xf32>
    %367 = math.tanh %366 : vector<2x128xf32>
    %cst_127 = arith.constant 1.000000e+00 : f32
    %368 = vector.broadcast %cst_127 : f32 to vector<2x128xf32>
    %369 = arith.addf %367, %368 : vector<2x128xf32>
    %cst_128 = arith.constant 5.000000e-01 : f32
    %370 = vector.broadcast %cst_128 : f32 to vector<2x128xf32>
    %371 = arith.mulf %370, %369 : vector<2x128xf32>
    %372 = math.tanh %364 : vector<2x128xf32>
    %373 = vector.extract_strided_slice %371 {offsets = [0, 32], sizes = [2, 32], strides = [1, 1]} : vector<2x128xf32> to vector<2x32xf32>
    %374 = arith.mulf %373, %357 : vector<2x32xf32>
    %375 = vector.extract_strided_slice %371 {offsets = [0, 0], sizes = [2, 32], strides = [1, 1]} : vector<2x128xf32> to vector<2x32xf32>
    %376 = vector.extract_strided_slice %372 {offsets = [0, 64], sizes = [2, 32], strides = [1, 1]} : vector<2x128xf32> to vector<2x32xf32>
    %377 = arith.mulf %375, %376 : vector<2x32xf32>
    %378 = arith.addf %374, %377 : vector<2x32xf32>
    %379 = vector.extract_strided_slice %371 {offsets = [0, 96], sizes = [2, 32], strides = [1, 1]} : vector<2x128xf32> to vector<2x32xf32>
    %380 = math.tanh %378 : vector<2x32xf32>
    %381 = arith.mulf %379, %380 : vector<2x32xf32>
    %382 = arith.addf %361, %381 : vector<2x32xf32>
    %383 = vector.extract_strided_slice %272 {offsets = [10, 0], sizes = [2, 128], strides = [1, 1]} : vector<16x128xf32> to vector<2x128xf32>
    %cst_129 = arith.constant dense<0.000000e+00> : vector<2x128xf32>
    %384 = tpu.matmul %381, %274, %cst_129 {dimension_numbers = #tpu.dot_dimension_numbers<[1], [0], [0], [1], [0, 0, 1, 1], [], []>} : vector<2x32xf32>, vector<32x128xf32>, vector<2x128xf32> -> vector<2x128xf32>
    %385 = arith.addf %383, %384 : vector<2x128xf32>
    %cst_130 = arith.constant 5.000000e-01 : f32
    %386 = vector.broadcast %cst_130 : f32 to vector<2x128xf32>
    %387 = arith.mulf %386, %385 : vector<2x128xf32>
    %388 = math.tanh %387 : vector<2x128xf32>
    %cst_131 = arith.constant 1.000000e+00 : f32
    %389 = vector.broadcast %cst_131 : f32 to vector<2x128xf32>
    %390 = arith.addf %388, %389 : vector<2x128xf32>
    %cst_132 = arith.constant 5.000000e-01 : f32
    %391 = vector.broadcast %cst_132 : f32 to vector<2x128xf32>
    %392 = arith.mulf %391, %390 : vector<2x128xf32>
    %393 = math.tanh %385 : vector<2x128xf32>
    %394 = vector.extract_strided_slice %392 {offsets = [0, 32], sizes = [2, 32], strides = [1, 1]} : vector<2x128xf32> to vector<2x32xf32>
    %395 = arith.mulf %394, %378 : vector<2x32xf32>
    %396 = vector.extract_strided_slice %392 {offsets = [0, 0], sizes = [2, 32], strides = [1, 1]} : vector<2x128xf32> to vector<2x32xf32>
    %397 = vector.extract_strided_slice %393 {offsets = [0, 64], sizes = [2, 32], strides = [1, 1]} : vector<2x128xf32> to vector<2x32xf32>
    %398 = arith.mulf %396, %397 : vector<2x32xf32>
    %399 = arith.addf %395, %398 : vector<2x32xf32>
    %400 = vector.extract_strided_slice %392 {offsets = [0, 96], sizes = [2, 32], strides = [1, 1]} : vector<2x128xf32> to vector<2x32xf32>
    %401 = math.tanh %399 : vector<2x32xf32>
    %402 = arith.mulf %400, %401 : vector<2x32xf32>
    %403 = arith.addf %382, %402 : vector<2x32xf32>
    %404 = vector.extract_strided_slice %272 {offsets = [12, 0], sizes = [2, 128], strides = [1, 1]} : vector<16x128xf32> to vector<2x128xf32>
    %cst_133 = arith.constant dense<0.000000e+00> : vector<2x128xf32>
    %405 = tpu.matmul %402, %274, %cst_133 {dimension_numbers = #tpu.dot_dimension_numbers<[1], [0], [0], [1], [0, 0, 1, 1], [], []>} : vector<2x32xf32>, vector<32x128xf32>, vector<2x128xf32> -> vector<2x128xf32>
    %406 = arith.addf %404, %405 : vector<2x128xf32>
    %cst_134 = arith.constant 5.000000e-01 : f32
    %407 = vector.broadcast %cst_134 : f32 to vector<2x128xf32>
    %408 = arith.mulf %407, %406 : vector<2x128xf32>
    %409 = math.tanh %408 : vector<2x128xf32>
    %cst_135 = arith.constant 1.000000e+00 : f32
    %410 = vector.broadcast %cst_135 : f32 to vector<2x128xf32>
    %411 = arith.addf %409, %410 : vector<2x128xf32>
    %cst_136 = arith.constant 5.000000e-01 : f32
    %412 = vector.broadcast %cst_136 : f32 to vector<2x128xf32>
    %413 = arith.mulf %412, %411 : vector<2x128xf32>
    %414 = math.tanh %406 : vector<2x128xf32>
    %415 = vector.extract_strided_slice %413 {offsets = [0, 32], sizes = [2, 32], strides = [1, 1]} : vector<2x128xf32> to vector<2x32xf32>
    %416 = arith.mulf %415, %399 : vector<2x32xf32>
    %417 = vector.extract_strided_slice %413 {offsets = [0, 0], sizes = [2, 32], strides = [1, 1]} : vector<2x128xf32> to vector<2x32xf32>
    %418 = vector.extract_strided_slice %414 {offsets = [0, 64], sizes = [2, 32], strides = [1, 1]} : vector<2x128xf32> to vector<2x32xf32>
    %419 = arith.mulf %417, %418 : vector<2x32xf32>
    %420 = arith.addf %416, %419 : vector<2x32xf32>
    %421 = vector.extract_strided_slice %413 {offsets = [0, 96], sizes = [2, 32], strides = [1, 1]} : vector<2x128xf32> to vector<2x32xf32>
    %422 = math.tanh %420 : vector<2x32xf32>
    %423 = arith.mulf %421, %422 : vector<2x32xf32>
    %424 = arith.addf %403, %423 : vector<2x32xf32>
    %425 = vector.extract_strided_slice %272 {offsets = [14, 0], sizes = [2, 128], strides = [1, 1]} : vector<16x128xf32> to vector<2x128xf32>
    %cst_137 = arith.constant dense<0.000000e+00> : vector<2x128xf32>
    %426 = tpu.matmul %423, %274, %cst_137 {dimension_numbers = #tpu.dot_dimension_numbers<[1], [0], [0], [1], [0, 0, 1, 1], [], []>} : vector<2x32xf32>, vector<32x128xf32>, vector<2x128xf32> -> vector<2x128xf32>
    %427 = arith.addf %425, %426 : vector<2x128xf32>
    %cst_138 = arith.constant 5.000000e-01 : f32
    %428 = vector.broadcast %cst_138 : f32 to vector<2x128xf32>
    %429 = arith.mulf %428, %427 : vector<2x128xf32>
    %430 = math.tanh %429 : vector<2x128xf32>
    %cst_139 = arith.constant 1.000000e+00 : f32
    %431 = vector.broadcast %cst_139 : f32 to vector<2x128xf32>
    %432 = arith.addf %430, %431 : vector<2x128xf32>
    %cst_140 = arith.constant 5.000000e-01 : f32
    %433 = vector.broadcast %cst_140 : f32 to vector<2x128xf32>
    %434 = arith.mulf %433, %432 : vector<2x128xf32>
    %435 = math.tanh %427 : vector<2x128xf32>
    %436 = vector.extract_strided_slice %434 {offsets = [0, 32], sizes = [2, 32], strides = [1, 1]} : vector<2x128xf32> to vector<2x32xf32>
    %437 = arith.mulf %436, %420 : vector<2x32xf32>
    %438 = vector.extract_strided_slice %434 {offsets = [0, 0], sizes = [2, 32], strides = [1, 1]} : vector<2x128xf32> to vector<2x32xf32>
    %439 = vector.extract_strided_slice %435 {offsets = [0, 64], sizes = [2, 32], strides = [1, 1]} : vector<2x128xf32> to vector<2x32xf32>
    %440 = arith.mulf %438, %439 : vector<2x32xf32>
    %441 = arith.addf %437, %440 : vector<2x32xf32>
    %442 = vector.extract_strided_slice %434 {offsets = [0, 96], sizes = [2, 32], strides = [1, 1]} : vector<2x128xf32> to vector<2x32xf32>
    %443 = math.tanh %441 : vector<2x32xf32>
    %444 = arith.mulf %442, %443 : vector<2x32xf32>
    %445 = arith.addf %424, %444 : vector<2x32xf32>
    %c560 = arith.constant 560 : index
    %c0_141 = arith.constant 0 : index
    %446 = vector.load %arg1[%c560, %c0_141] : memref<1264x128xbf16, #tpu.memory_space<vmem>>, vector<32x128xbf16>
    %447 = arith.extf %446 : vector<32x128xbf16> to vector<32x128xf32>
    %cst_142 = arith.constant dense<0.000000e+00> : vector<2x128xf32>
    %448 = tpu.matmul %445, %447, %cst_142 {dimension_numbers = #tpu.dot_dimension_numbers<[1], [0], [0], [1], [0, 0, 1, 1], [], []>} : vector<2x32xf32>, vector<32x128xf32>, vector<2x128xf32> -> vector<2x128xf32>
    %c40 = arith.constant 40 : index
    %c0_143 = arith.constant 0 : index
    %449 = vector.load %arg2[%c40, %c0_143] : memref<48x128xf32, #tpu.memory_space<vmem>>, vector<1x128xf32>
    %450 = vector.broadcast %449 : vector<1x128xf32> to vector<2x128xf32>
    %451 = arith.addf %448, %450 : vector<2x128xf32>
    %c0_144 = arith.constant 0 : index
    %c0_145 = arith.constant 0 : index
    %452 = vector.load %arg3[%c0_144, %c0_145] : memref<2x128xf32, #tpu.memory_space<vmem>>, vector<2x128xf32>
    tpu.vector_store %arg3[%c0_144, %c0_145], %451 {strides = array<i32>} : memref<2x128xf32, #tpu.memory_space<vmem>>, vector<2x128xf32>,
    return
  }
}

</mosaic_0001>

<bundles_post_ra>
// kernel: tpu_custom_call.1
= control target key start
LH: loop header
LB: loop body
LE: loop exit
PB: predicated region body
PF: predicated region fallthrough
CT: control target
= control target key end

     0   :  { %8 = vsyncpa [#allocation4], 0  ;;  %s8014_s0 = inlined_call_operand.vmem [shape: f32[128,8], index: 0, kind: input, shape index: {}]   ;;  %s8015_s1 = inlined_call_operand.hbm [shape: bf16[1264,128], index: 1, kind: input, shape index: {}]   ;;  %s8016_s2 = inlined_call_operand.vmem [shape: f32[48,128], index: 2, kind: input, shape index: {}]   ;;  %s8017_s3 = inlined_call_operand.hbm [shape: f32[2,128], index: 3, kind: output, shape index: {}]  }
   0x1   :  { %9 = vsyncpa [#allocation5], 0  ;;  %s7382_s12 = smov [#allocation3]   ;;  %s7334_s16 = scalar_lea.hbm %s8015_s1, 10112 }
   0x2   :  { %s17_s13 = sshll.u32 %s7382_s12, 4  ;;  %p7335_p0 = scmp.ne.s32.totalorder %s8015_s1, %s7334_s16  ;;  %s18_s13 = int_to_ptr.vmem [resolvable:$true] %s17_s13 }
   0x3   :  { %p7338_p1 = scmp.lt.u32.totalorder %s7334_s16, %s8015_s1 }
   0x5   :  { %p7340_p2 = pnand %p7338_p1, %p7335_p0 }
   0x7   :  { %7343 = shalt.err (!%p7340_p2)
}
   0x8   :  { %s7344_s21 = scalar_lea.vmem %s18_s13, 10112  ;;  %p7349_p4 = scmp.lt.s32.totalorder %s18_s13, %s18_s13 }
   0x9   :  { %p7345_p3 = scmp.ne.s32.totalorder %s18_s13, %s7344_s21  ;;  %p7350_p5 = scmp.lt.s32.totalorder %s7344_s21, %s7344_s21 }
   0xb   :  { %p7351_p6 = por %p7350_p5, %p7349_p4 }
   0xd   :  { %p7352_p7 = pnand %p7351_p6, %p7345_p3 }
   0xf   :  { %7355 = shalt.err (!%p7352_p7)
}
  0x10   :  { %s7383_s22 = smov 64   ;;  %s7384_s23 = smov 4  }
  0x11   :  { %23 = dma.hbm_to_vmem [thread:$0]  %s8015_s1, 10112, %s18_s13, [#allocation4], %s7383_s22, %s7383_s22, %s7384_s23  }
  0x12   :  { %7378 = dma.done.wait [#allocation4], 10112  }
  0x13   :  { %7379 = vsyncadd [#allocation4], 4294957184  ;;  %v7427_v0 = vld [vmem:[%s8014_s0] sm:$0xff]  ;;  %v7432_v1 = vld [vmem:[%s8014_s0 + $0x8] sm:$0xff]  ;;  %vm403_vm0 = vcmask 64512   ;;  %vm1304_vm1 = vcmask 523264  }
  0x14   :  { %v7437_v2 = vld [vmem:[%s8014_s0 + $0x10] sm:$0xff]  ;;  %v6736_v3 = vpack.c.bf16 %v7432_v1, %v7427_v0  ;;  %v7444_v4 = vld [vmem:[%s8014_s0 + $0x18] sm:$0xff]  ;;  %v7451_v6 = vld [vmem:[%s8014_s0 + $0x20] sm:$0xff]  ;;  %vm1595_vm2 = vcmask 261120   ;;  %vm7386_vm3 = vmmov 0   ;;  %s7388_s10 = smov 32  }
  0x15   :  { %v6740_v5 = vpack.c.bf16 %v7444_v4, %v7437_v2  ;;  %v7456_v7 = vld [vmem:[%s8014_s0 + $0x28] sm:$0xff]  ;;  %v7463_v10 = vld [vmem:[%s8014_s0 + $0x30] sm:$0xff]  ;;  %v7468_v11 = vld [vmem:[%s8014_s0 + $0x38] sm:$0xff]  ;;  %vm3192_vm4 = vcmask 254976   ;;  %vm3299_vm5 = vcmask 257026   ;;  %vm3519_vm6 = vcmask 261126  }
  0x16   :  { %6737 = vmatprep.subr.bf16.mxu0 %v6736_v3  ;;  %6769 = vmatprep.subr.bf16.mxu1 %v6736_v3  ;;  %v6744_v8 = vpack.c.bf16 %v7456_v7, %v7451_v6  ;;  %v5445_v9 = vld [vmem:[#allocation3 + $0x128] sm:$0xff]   ;;  %v6748_v14 = vpack.c.bf16 %v7468_v11, %v7463_v10  ;;  %v7475_v15 = vld [vmem:[%s8014_s0 + $0x40] sm:$0xff]  ;;  %v7487_v19 = vld [vmem:[%s8014_s0 + $0x50] sm:$0xff]  ;;  %vm3409_vm7 = vcmask 259076   ;;  %s7389_s15 = smov [#allocation6]  }
  0x17   :  { %6739 = vmatpush3.bf16.msra.mxu0 %v6736_v3  ;;  %6771 = vmatpush3.bf16.msra.mxu1 %v6736_v3  ;;  %v5143_v12 = vunpack.c.l.bf16 %v5445_v9  ;;  %v5453_v13 = vld [vmem:[#allocation3 + $0x168] sm:$0xff]   ;;  %v7492_v20 = vld [vmem:[%s8014_s0 + $0x58] sm:$0xff]  ;;  %v7499_v22 = vld [vmem:[%s8014_s0 + $0x60] sm:$0xff]  ;;  %v5144_v32 = vunpack.c.h.bf16 %v5445_v9  ;;  %s4989_s16 = sshll.u32 %s7389_s15, 4  ;;  %s4990_s16 = int_to_ptr.vmem [resolvable:$true] %s4989_s16 }
  0x18   :  { %6741 = vmatprep.subr.bf16.mxu0 %v6740_v5  ;;  %6773 = vmatprep.subr.bf16.mxu1 %v6740_v5  ;;  %v7480_v16 = vld [vmem:[%s8014_s0 + $0x48] sm:$0xff]  ;;  %v5175_v17 = vunpack.c.l.bf16 %v5453_v13  ;;  %v6756_v21 = vpack.c.bf16 %v7492_v20, %v7487_v19  ;;  %v7511_v25 = vld [vmem:[%s8014_s0 + $0x70] sm:$0xff]  ;;  %v7516_v26 = vld [vmem:[%s8014_s0 + $0x78] sm:$0xff]  ;;  %v5176_v34 = vunpack.c.h.bf16 %v5453_v13  ;;  %p7361_p9 = scmp.lt.s32.totalorder %s4990_s16, %s4990_s16 }
  0x19   :  { %5981 = vmatprep.mubr.f32.mxu0 %v5143_v12  ;;  %v6752_v18 = vpack.c.bf16 %v7480_v16, %v7475_v15  ;;  %v7504_v23 = vld [vmem:[%s8014_s0 + $0x68] sm:$0xff]  ;;  %v6764_v27 = vpack.c.bf16 %v7516_v26, %v7511_v25  ;;  %v5446_v29 = vld [vmem:[#allocation3 + $0x130] sm:$0xff]   ;;  %v5447_v35 = vld [vmem:[#allocation3 + $0x138] sm:$0xff]  }
  0x1a   :  { %6037 = vmatprep.mubr.f32.mxu1 %v5175_v17  ;;  %v6760_v24 = vpack.c.bf16 %v7504_v23, %v7499_v22  ;;  %v7520_v28 = vld [vmem:[#allocation3] ss:$8 sps:$4 sm:$0xff]   ;;  %v5454_v31 = vld [vmem:[#allocation3 + $0x170] sm:$0xff]   ;;  %v5147_v33 = vunpack.c.l.bf16 %v5446_v29  ;;  %v5455_v37 = vld [vmem:[#allocation3 + $0x178] sm:$0xff]   ;;  %v5148_v39 = vunpack.c.h.bf16 %v5446_v29  ;;  %v5151_v40 = vunpack.c.l.bf16 %v5447_v35 }
  0x1b   :  { %6743 = vmatpush3.bf16.msra.mxu0 %v6740_v5  ;;  %6775 = vmatpush3.bf16.msra.mxu1 %v6740_v5  ;;  %v402_v30 = vunpack.c.h.bf16 %v7520_v28  ;;  %v5179_v36 = vunpack.c.l.bf16 %v5454_v31  ;;  %v400_v38 = vunpack.c.l.bf16 %v7520_v28  ;;  %v5180_v41 = vunpack.c.h.bf16 %v5454_v31  ;;  %v5448_v42 = vld [vmem:[#allocation3 + $0x140] sm:$0xff]   ;;  %v5449_v48 = vld [vmem:[#allocation3 + $0x148] sm:$0xff]   ;;  %v5450_v54 = vld [vmem:[#allocation3 + $0x150] sm:$0xff]  }
  0x1c   :  { %6745 = vmatprep.subr.bf16.mxu0 %v6744_v8  ;;  %6777 = vmatprep.subr.bf16.mxu1 %v6744_v8  ;;  %v5183_v43 = vunpack.c.l.bf16 %v5455_v37  ;;  %v5456_v44 = vld [vmem:[#allocation3 + $0x180] sm:$0xff]   ;;  %v5152_v45 = vunpack.c.h.bf16 %v5447_v35  ;;  %v5155_v46 = vunpack.c.l.bf16 %v5448_v42  ;;  %v5184_v47 = vunpack.c.h.bf16 %v5455_v37  ;;  %v5457_v50 = vld [vmem:[#allocation3 + $0x188] sm:$0xff]   ;;  %v5458_v56 = vld [vmem:[#allocation3 + $0x190] sm:$0xff]  }
  0x1d   :  { %v5187_v49 = vunpack.c.l.bf16 %v5456_v44  ;;  %v5156_v51 = vunpack.c.h.bf16 %v5448_v42  ;;  %v5159_v52 = vunpack.c.l.bf16 %v5449_v48  ;;  %v5188_v53 = vunpack.c.h.bf16 %v5456_v44  ;;  %v5451_v60 = vld [vmem:[#allocation3 + $0x158] sm:$0xff]   ;;  %v5460_v12 = vld [vmem:[#allocation3 + $0x1a0] sm:$0xff]  }
  0x1e   :  { %v5191_v55 = vunpack.c.l.bf16 %v5457_v50  ;;  %v5160_v57 = vunpack.c.h.bf16 %v5449_v48  ;;  %v5163_v58 = vunpack.c.l.bf16 %v5450_v54  ;;  %v5192_v59 = vunpack.c.h.bf16 %v5457_v50  ;;  %v5459_v62 = vld [vmem:[#allocation3 + $0x198] sm:$0xff]  }
  0x1f   :  { %6747 = vmatpush3.bf16.msra.mxu0 %v6744_v8  ;;  %6779 = vmatpush3.bf16.msra.mxu1 %v6744_v8  ;;  %v5195_v61 = vunpack.c.l.bf16 %v5458_v56  ;;  %v5164_v63 = vunpack.c.h.bf16 %v5450_v54  ;;  %v5167_v3 = vunpack.c.l.bf16 %v5451_v60  ;;  %v5196_v5 = vunpack.c.h.bf16 %v5458_v56  ;;  %v5452_v8 = vld [vmem:[#allocation3 + $0x160] sm:$0xff]  }
  0x20   :  { %6749 = vmatprep.subr.bf16.mxu0 %v6748_v14  ;;  %6781 = vmatprep.subr.bf16.mxu1 %v6748_v14  ;;  %v5199_v9 = vunpack.c.l.bf16 %v5459_v62  ;;  %v5168_v13 = vunpack.c.h.bf16 %v5451_v60  ;;  %v5200_v17 = vunpack.c.h.bf16 %v5459_v62 }
  0x23   :  { %6751 = vmatpush3.bf16.msra.mxu0 %v6748_v14  ;;  %6783 = vmatpush3.bf16.msra.mxu1 %v6748_v14  ;;  %v5171_v14 = vunpack.c.l.bf16 %v5452_v8 }
  0x24   :  { %6753 = vmatprep.subr.bf16.mxu0 %v6752_v18  ;;  %6785 = vmatprep.subr.bf16.mxu1 %v6752_v18 }
  0x27   :  { %6755 = vmatpush3.bf16.msra.mxu0 %v6752_v18  ;;  %6787 = vmatpush3.bf16.msra.mxu1 %v6752_v18  ;;  %v5203_v18 = vunpack.c.l.bf16 %v5460_v12 }
  0x28   :  { %6757 = vmatprep.subr.bf16.mxu0 %v6756_v21  ;;  %6789 = vmatprep.subr.bf16.mxu1 %v6756_v21 }
  0x2b   :  { %6759 = vmatpush3.bf16.msra.mxu0 %v6756_v21  ;;  %6791 = vmatpush3.bf16.msra.mxu1 %v6756_v21  ;;  %v5172_v21 = vunpack.c.h.bf16 %v5452_v8 }
  0x2c   :  { %6761 = vmatprep.subr.bf16.mxu0 %v6760_v24  ;;  %6793 = vmatprep.subr.bf16.mxu1 %v6760_v24 }
  0x2f   :  { %6763 = vmatpush3.bf16.msra.mxu0 %v6760_v24  ;;  %6795 = vmatpush3.bf16.msra.mxu1 %v6760_v24  ;;  %v5204_v24 = vunpack.c.h.bf16 %v5460_v12 }
  0x30   :  { %6765 = vmatprep.subr.bf16.mxu0 %v6764_v27  ;;  %6797 = vmatprep.subr.bf16.mxu1 %v6764_v27 }
  0x33   :  { %6767 = vmatpush3.bf16.msra.mxu0 %v6764_v27  ;;  %6799 = vmatpush3.bf16.msra.mxu1 %v6764_v27 }
  0x34   :  { %6061 = vmatprep.subr.mxu0 %v402_v30 }
  0x36   :  { %5982 = vmatmul.mubr.f32.vlgmr.msra.gmra.mrb[0].mxu0 %v5144_v32  ;;  %6038 = vmatmul.mubr.f32.vlgmr.msra.gmra.mrb[0].mxu1 %v5176_v34 }
  0x37   :  { %5984 = vmatprep.mubr.f32.mxu0 %v5147_v33  ;;  %6040 = vmatprep.mubr.f32.mxu1 %v5179_v36 }
  0x38   :  { %6062 = vmatpush3.msra.mxu0 %v402_v30 }
  0x39   :  { %6087 = vmatprep.subr.mxu0 %v400_v38 }
  0x3a   :  { %5985 = vmatmul.mubr.f32.gmra.mrb[2].mxu0 %v5148_v39  ;;  %6041 = vmatmul.mubr.f32.gmra.mrb[2].mxu1 %v5180_v41 }
  0x3b   :  { %5987 = vmatprep.mubr.f32.mxu0 %v5151_v40  ;;  %6043 = vmatprep.mubr.f32.mxu1 %v5183_v43 }
  0x3e   :  { %5988 = vmatmul.mubr.f32.gmra.mrb[4].mxu0 %v5152_v45  ;;  %6044 = vmatmul.mubr.f32.gmra.mrb[4].mxu1 %v5184_v47  ;;  %v7592_v45 = vld [vmem:[#allocation3 + $0x1a8] sm:$0xff]   ;;  %v7598_v47 = vld [vmem:[%s8016_s2] ss:$0 sm:$0xff] }
  0x3f   :  { %5990 = vmatprep.mubr.f32.mxu0 %v5155_v46  ;;  %6046 = vmatprep.mubr.f32.mxu1 %v5187_v49  ;;  %v5207_v46 = vunpack.c.l.bf16 %v7592_v45 }
  0x42   :  { %5991 = vmatmul.mubr.f32.gmra.mrb[6].mxu0 %v5156_v51  ;;  %6047 = vmatmul.mubr.f32.gmra.mrb[6].mxu1 %v5188_v53 }
  0x43   :  { %5993 = vmatprep.mubr.f32.mxu0 %v5159_v52  ;;  %6049 = vmatprep.mubr.f32.mxu1 %v5191_v55 }
  0x46   :  { %5994 = vmatmul.mubr.f32.gmra.mrb[8].mxu0 %v5160_v57  ;;  %6050 = vmatmul.mubr.f32.gmra.mrb[8].mxu1 %v5192_v59 }
  0x47   :  { %5996 = vmatprep.mubr.f32.mxu0 %v5163_v58  ;;  %6052 = vmatprep.mubr.f32.mxu1 %v5195_v61 }
  0x4a   :  { %5997 = vmatmul.mubr.f32.gmra.mrb[10].mxu0 %v5164_v63  ;;  %6053 = vmatmul.mubr.f32.gmra.mrb[10].mxu1 %v5196_v5 }
  0x4b   :  { %5999 = vmatprep.mubr.f32.mxu0 %v5167_v3  ;;  %6055 = vmatprep.mubr.f32.mxu1 %v5199_v9 }
  0x4e   :  { %6000 = vmatmul.mubr.f32.gmra.mrb[12].mxu0 %v5168_v13  ;;  %6056 = vmatmul.mubr.f32.gmra.mrb[12].mxu1 %v5200_v17 }
  0x4f   :  { %6002 = vmatprep.mubr.f32.mxu0 %v5171_v14  ;;  %6058 = vmatprep.mubr.f32.mxu1 %v5203_v18 }
  0x52   :  { %6003 = vmatmul.mubr.f32.gmra.mrb[14].mxu0 %v5172_v21  ;;  %6059 = vmatmul.mubr.f32.gmra.mrb[14].mxu1 %v5204_v24 }
  0x53   :  { %6063 = vmatprep.mubr.msk.f32.mxu0 %vm403_vm0, %v7427_v0  ;;  %v790_v0 = vld [vmem:[#allocation3 + $0x10] sm:$0xf]  ;;  %6171 = vmatprep.mubr.f32.mxu1 %v5207_v46 }
  0x56   :  { %6064 = vmatmul.mubr.msk.f32.vlgmr.msra.gmra.mrb[16].mxu0 %vm403_vm0, %v7432_v1  ;;  %v791_v1 = vunpack.c.l.bf16 %v790_v0 }
  0x57   :  { %6066 = vmatprep.mubr.msk.f32.mxu0 %vm403_vm0, %v7437_v2  ;;  %6088 = vmatpush3.msra.mxu0 %v400_v38 }
  0x58   :  { %6113 = vmatprep.subr.mxu0 %v791_v1 }
  0x5a   :  { %6067 = vmatmul.mubr.msk.f32.gmra.mrb[18].mxu0 %vm403_vm0, %v7444_v4 }
  0x5b   :  { %6069 = vmatprep.mubr.msk.f32.mxu0 %vm403_vm0, %v7451_v6 }
  0x5e   :  { %6070 = vmatmul.mubr.msk.f32.gmra.mrb[20].mxu0 %vm403_vm0, %v7456_v7 }
  0x5f   :  { %6072 = vmatprep.mubr.msk.f32.mxu0 %vm403_vm0, %v7463_v10 }
  0x62   :  { %6073 = vmatmul.mubr.msk.f32.gmra.mrb[22].mxu0 %vm403_vm0, %v7468_v11 }
  0x63   :  { %6075 = vmatprep.mubr.msk.f32.mxu0 %vm403_vm0, %v7475_v15 }
  0x66   :  { %6076 = vmatmul.mubr.msk.f32.gmra.mrb[24].mxu0 %vm403_vm0, %v7480_v16 }
  0x67   :  { %6078 = vmatprep.mubr.msk.f32.mxu0 %vm403_vm0, %v7487_v19 }
  0x6a   :  { %6079 = vmatmul.mubr.msk.f32.gmra.mrb[26].mxu0 %vm403_vm0, %v7492_v20 }
  0x6b   :  { %6081 = vmatprep.mubr.msk.f32.mxu0 %vm403_vm0, %v7499_v22 }
  0x6e   :  { %6082 = vmatmul.mubr.msk.f32.gmra.mrb[28].mxu0 %vm403_vm0, %v7504_v23 }
  0x6f   :  { %6084 = vmatprep.mubr.msk.f32.mxu0 %vm403_vm0, %v7511_v25 }
  0x72   :  { %6085 = vmatmul.mubr.msk.f32.gmra.mrb[30].mxu0 %vm403_vm0, %v7516_v26 }
 0x109   :  { %v5983_v2 = vpop.f32.mrb[0].mxu0  ;;  %v6039_v6 = vpop.f32.mrb[0].mxu1 }
 0x10a   :  { %v143_v4 = vpop.f32.mrb[1].mxu0  ;;  %v320_v7 = vpop.f32.mrb[1].mxu1 }
 0x10b   :  { %6089 = vmatprep.mubr.msk.f32.mxu0 %vm403_vm0, %v143_v4 }
 0x10c   :  { %6090 = vmatmul.mubr.msk.f32.vlgmr.msra.gmra.mrb[16].mxu0 %vm403_vm0, %v5983_v2 }
 0x10d   :  { %v5986_v10 = vpop.f32.mrb[2].mxu0  ;;  %6114 = vmatpush3.msra.mxu0 %v791_v1  ;;  %v6042_v15 = vpop.f32.mrb[2].mxu1 }
 0x10e   :  { %v153_v11 = vpop.f32.mrb[3].mxu0  ;;  %v330_v16 = vpop.f32.mrb[3].mxu1 }
 0x10f   :  { %6092 = vmatprep.mubr.msk.f32.mxu0 %vm403_vm0, %v153_v11 }
 0x110   :  { %6093 = vmatmul.mubr.msk.f32.gmra.mrb[18].mxu0 %vm403_vm0, %v5986_v10 }
 0x111   :  { %v5989_v19 = vpop.f32.mrb[4].mxu0  ;;  %v6045_v22 = vpop.f32.mrb[4].mxu1 }
 0x112   :  { %v163_v20 = vpop.f32.mrb[5].mxu0  ;;  %v340_v23 = vpop.f32.mrb[5].mxu1 }
 0x113   :  { %6095 = vmatprep.mubr.msk.f32.mxu0 %vm403_vm0, %v163_v20 }
 0x114   :  { %6096 = vmatmul.mubr.msk.f32.gmra.mrb[20].mxu0 %vm403_vm0, %v5989_v19 }
 0x115   :  { %v5992_v25 = vpop.f32.mrb[6].mxu0  ;;  %v6048_v27 = vpop.f32.mrb[6].mxu1 }
 0x116   :  { %v173_v26 = vpop.f32.mrb[7].mxu0  ;;  %v350_v28 = vpop.f32.mrb[7].mxu1 }
 0x117   :  { %6098 = vmatprep.mubr.msk.f32.mxu0 %vm403_vm0, %v173_v26 }
 0x118   :  { %6099 = vmatmul.mubr.msk.f32.gmra.mrb[22].mxu0 %vm403_vm0, %v5992_v25 }
 0x119   :  { %v5995_v29 = vpop.f32.mrb[8].mxu0  ;;  %v6051_v31 = vpop.f32.mrb[8].mxu1 }
 0x11a   :  { %v183_v30 = vpop.f32.mrb[9].mxu0  ;;  %v360_v32 = vpop.f32.mrb[9].mxu1 }
 0x11b   :  { %6101 = vmatprep.mubr.msk.f32.mxu0 %vm403_vm0, %v183_v30 }
 0x11c   :  { %6102 = vmatmul.mubr.msk.f32.gmra.mrb[24].mxu0 %vm403_vm0, %v5995_v29 }
 0x11d   :  { %v5998_v33 = vpop.f32.mrb[10].mxu0  ;;  %v6054_v35 = vpop.f32.mrb[10].mxu1 }
 0x11e   :  { %v193_v34 = vpop.f32.mrb[11].mxu0  ;;  %v370_v36 = vpop.f32.mrb[11].mxu1 }
 0x11f   :  { %6104 = vmatprep.mubr.msk.f32.mxu0 %vm403_vm0, %v193_v34 }
 0x120   :  { %6105 = vmatmul.mubr.msk.f32.gmra.mrb[26].mxu0 %vm403_vm0, %v5998_v33 }
 0x121   :  { %v6001_v37 = vpop.f32.mrb[12].mxu0  ;;  %v6057_v39 = vpop.f32.mrb[12].mxu1 }
 0x122   :  { %v203_v38 = vpop.f32.mrb[13].mxu0  ;;  %v380_v40 = vpop.f32.mrb[13].mxu1 }
 0x123   :  { %6107 = vmatprep.mubr.msk.f32.mxu0 %vm403_vm0, %v203_v38 }
 0x124   :  { %6108 = vmatmul.mubr.msk.f32.gmra.mrb[28].mxu0 %vm403_vm0, %v6001_v37 }
 0x125   :  { %v6004_v41 = vpop.f32.mrb[14].mxu0  ;;  %v6060_v43 = vpop.f32.mrb[14].mxu1 }
 0x126   :  { %v213_v42 = vpop.f32.mrb[15].mxu0  ;;  %v390_v44 = vpop.f32.mrb[15].mxu1 }
 0x127   :  { %6110 = vmatprep.mubr.msk.f32.mxu0 %vm403_vm0, %v213_v42 }
 0x128   :  { %6111 = vmatmul.mubr.msk.f32.gmra.mrb[30].mxu0 %vm403_vm0, %v6004_v41  ;;  %v5208_v41 = vunpack.c.h.bf16 %v7592_v45 }
 0x129   :  { %6115 = vmatprep.mubr.msk.f32.mxu0 %vm403_vm0, %v320_v7 }
 0x12c   :  { %6116 = vmatmul.mubr.msk.f32.vlgmr.msra.gmra.mrb[16].mxu0 %vm403_vm0, %v6039_v6 }
 0x12d   :  { %6118 = vmatprep.mubr.msk.f32.mxu0 %vm403_vm0, %v330_v16 }
 0x130   :  { %6119 = vmatmul.mubr.msk.f32.gmra.mrb[18].mxu0 %vm403_vm0, %v6042_v15 }
 0x131   :  { %6121 = vmatprep.mubr.msk.f32.mxu0 %vm403_vm0, %v340_v23 }
 0x134   :  { %6122 = vmatmul.mubr.msk.f32.gmra.mrb[20].mxu0 %vm403_vm0, %v6045_v22 }
 0x135   :  { %6124 = vmatprep.mubr.msk.f32.mxu0 %vm403_vm0, %v350_v28 }
 0x138   :  { %6125 = vmatmul.mubr.msk.f32.gmra.mrb[22].mxu0 %vm403_vm0, %v6048_v27 }
 0x139   :  { %6127 = vmatprep.mubr.msk.f32.mxu0 %vm403_vm0, %v360_v32 }
 0x13c   :  { %6128 = vmatmul.mubr.msk.f32.gmra.mrb[24].mxu0 %vm403_vm0, %v6051_v31 }
 0x13d   :  { %6130 = vmatprep.mubr.msk.f32.mxu0 %vm403_vm0, %v370_v36 }
 0x140   :  { %6131 = vmatmul.mubr.msk.f32.gmra.mrb[26].mxu0 %vm403_vm0, %v6054_v35 }
 0x141   :  { %6133 = vmatprep.mubr.msk.f32.mxu0 %vm403_vm0, %v380_v40  ;;  %v5462_v40 = vld [vmem:[#allocation3 + $0x1b0] sm:$0xff]  }
 0x142   :  { %v5211_v42 = vunpack.c.l.bf16 %v5462_v40 }
 0x144   :  { %6134 = vmatmul.mubr.msk.f32.gmra.mrb[28].mxu0 %vm403_vm0, %v6057_v39 }
 0x145   :  { %6136 = vmatprep.mubr.msk.f32.mxu0 %vm403_vm0, %v390_v44  ;;  %v5212_v44 = vunpack.c.h.bf16 %v5462_v40  ;;  %v5474_v40 = vld [vmem:[#allocation3 + $0x210] sm:$0xff]  }
 0x148   :  { %6137 = vmatmul.mubr.msk.f32.gmra.mrb[30].mxu0 %vm403_vm0, %v6060_v43  ;;  %v5463_v43 = vld [vmem:[#allocation3 + $0x1b8] sm:$0xff]  }
 0x149   :  { %v5215_v46 = vunpack.c.l.bf16 %v5463_v43 }
 0x1ff   :  { %v6117_v48 = vpop.f32.mrb[16].mxu0 }
 0x200   :  { %v1007_v49 = vadd.f32 %v6117_v48, %v7598_v47  ;;  %v906_v50 = vpop.f32.mrb[17].mxu0  ;;  %v5216_v48 = vunpack.c.h.bf16 %v5463_v43  ;;  %v5259_v43 = vunpack.c.l.bf16 %v5474_v40 }
 0x201   :  { %v1006_v51 = vadd.f32 %v7598_v47, %v906_v50 }
 0x202   :  { %v1023_v52 = vmax.f32 %v1007_v49, 0.0  ;;  %v5465_v49 = vld [vmem:[#allocation3 + $0x1c8] sm:$0xff]  }
 0x203   :  { %v1022_v53 = vmax.f32 %v1006_v51, 0.0  ;;  %v6120_v54 = vpop.f32.mrb[18].mxu0  ;;  %v5223_v51 = vunpack.c.l.bf16 %v5465_v49 }
 0x204   :  { %v1009_v55 = vadd.f32 %v6120_v54, %v7598_v47  ;;  %v916_v56 = vpop.f32.mrb[19].mxu0 }
 0x205   :  { %v7603_v57 = vpack.c.bf16 %v1023_v52, %v1022_v53  ;;  %v1008_v58 = vadd.f32 %v7598_v47, %v916_v56  ;;  %v5466_v52 = vld [vmem:[#allocation3 + $0x1d0] sm:$0xff]   ;;  %v5224_v53 = vunpack.c.h.bf16 %v5465_v49  ;;  %v5477_v49 = vld [vmem:[#allocation3 + $0x18] sm:$0xff]  }
 0x206   :  { %v1025_v59 = vmax.f32 %v1009_v55, 0.0  ;;  %v5227_v54 = vunpack.c.l.bf16 %v5466_v52  ;;  %v5467_v55 = vld [vmem:[#allocation3 + $0x1d8] sm:$0xff]   ;;  %v5228_v56 = vunpack.c.h.bf16 %v5466_v52 }
 0x207   :  { %v1024_v60 = vmax.f32 %v1008_v58, 0.0  ;;  %v6123_v61 = vpop.f32.mrb[20].mxu0  ;;  %6801 = vmatprep.subr.bf16.mxu1 %v7603_v57  ;;  %v5468_v58 = vld [vmem:[#allocation3 + $0x1e0] sm:$0xff]  }
 0x208   :  { %v1011_v62 = vadd.f32 %v6123_v61, %v7598_v47  ;;  %v926_v63 = vpop.f32.mrb[21].mxu0  ;;  %6803 = vmatpush3.bf16.msra.mxu1 %v7603_v57  ;;  %v5236_v61 = vunpack.c.h.bf16 %v5468_v58 }
 0x209   :  { %v7609_v3 = vpack.c.bf16 %v1025_v59, %v1024_v60  ;;  %v1010_v5 = vadd.f32 %v7598_v47, %v926_v63  ;;  %v5232_v59 = vunpack.c.h.bf16 %v5467_v55  ;;  %v5235_v60 = vunpack.c.l.bf16 %v5468_v58 }
 0x20a   :  { %v1027_v8 = vmax.f32 %v1011_v62, 0.0  ;;  %v5469_v62 = vld [vmem:[#allocation3 + $0x1e8] sm:$0xff]  }
 0x20b   :  { %v1026_v9 = vmax.f32 %v1010_v5, 0.0  ;;  %v6126_v12 = vpop.f32.mrb[22].mxu0  ;;  %6805 = vmatprep.subr.bf16.mxu1 %v7609_v3  ;;  %v5239_v63 = vunpack.c.l.bf16 %v5469_v62 }
 0x20c   :  { %v1013_v13 = vadd.f32 %v6126_v12, %v7598_v47  ;;  %v936_v14 = vpop.f32.mrb[23].mxu0  ;;  %6807 = vmatpush3.bf16.msra.mxu1 %v7609_v3 }
 0x20d   :  { %v7615_v17 = vpack.c.bf16 %v1027_v8, %v1026_v9  ;;  %v1012_v18 = vadd.f32 %v7598_v47, %v936_v14 }
 0x20e   :  { %v1029_v21 = vmax.f32 %v1013_v13, 0.0 }
 0x20f   :  { %v1028_v24 = vmax.f32 %v1012_v18, 0.0  ;;  %v6129_v0 = vpop.f32.mrb[24].mxu0  ;;  %6809 = vmatprep.subr.bf16.mxu1 %v7615_v17 }
 0x210   :  { %v1015_v1 = vadd.f32 %v6129_v0, %v7598_v47  ;;  %v946_v2 = vpop.f32.mrb[25].mxu0  ;;  %6811 = vmatpush3.bf16.msra.mxu1 %v7615_v17 }
 0x211   :  { %v6812_v4 = vpack.c.bf16 %v1029_v21, %v1028_v24  ;;  %v1014_v6 = vadd.f32 %v7598_v47, %v946_v2 }
 0x212   :  { %v1031_v7 = vmax.f32 %v1015_v1, 0.0 }
 0x213   :  { %v1030_v10 = vmax.f32 %v1014_v6, 0.0  ;;  %v6132_v11 = vpop.f32.mrb[26].mxu0  ;;  %6813 = vmatprep.subr.bf16.mxu1 %v6812_v4 }
 0x214   :  { %v1017_v15 = vadd.f32 %v6132_v11, %v7598_v47  ;;  %v956_v16 = vpop.f32.mrb[27].mxu0  ;;  %6815 = vmatpush3.bf16.msra.mxu1 %v6812_v4 }
 0x215   :  { %v6816_v19 = vpack.c.bf16 %v1031_v7, %v1030_v10  ;;  %v1016_v20 = vadd.f32 %v7598_v47, %v956_v16 }
 0x216   :  { %v1033_v22 = vmax.f32 %v1017_v15, 0.0 }
 0x217   :  { %v1032_v23 = vmax.f32 %v1016_v20, 0.0  ;;  %v6135_v25 = vpop.f32.mrb[28].mxu0  ;;  %6817 = vmatprep.subr.bf16.mxu1 %v6816_v19 }
 0x218   :  { %v1019_v26 = vadd.f32 %v6135_v25, %v7598_v47  ;;  %v966_v27 = vpop.f32.mrb[29].mxu0  ;;  %6819 = vmatpush3.bf16.msra.mxu1 %v6816_v19 }
 0x219   :  { %v6820_v28 = vpack.c.bf16 %v1033_v22, %v1032_v23  ;;  %v1018_v29 = vadd.f32 %v7598_v47, %v966_v27 }
 0x21a   :  { %v1035_v30 = vmax.f32 %v1019_v26, 0.0 }
 0x21b   :  { %v1034_v31 = vmax.f32 %v1018_v29, 0.0  ;;  %v6138_v32 = vpop.f32.mrb[30].mxu0  ;;  %6821 = vmatprep.subr.bf16.mxu1 %v6820_v28  ;;  %v5240_v29 = vunpack.c.h.bf16 %v5469_v62 }
 0x21c   :  { %v1021_v33 = vadd.f32 %v6138_v32, %v7598_v47  ;;  %v976_v34 = vpop.f32.mrb[31].mxu0  ;;  %6823 = vmatpush3.bf16.msra.mxu1 %v6820_v28 }
 0x21d   :  { %v6824_v35 = vpack.c.bf16 %v1035_v30, %v1034_v31  ;;  %v1020_v36 = vadd.f32 %v7598_v47, %v976_v34  ;;  %v5464_v47 = vld [vmem:[#allocation3 + $0x1c0] sm:$0xff]   ;;  %v5471_v31 = vld [vmem:[#allocation3 + $0x1f8] sm:$0xff]  }
 0x21e   :  { %v1037_v37 = vmax.f32 %v1021_v33, 0.0  ;;  %v5219_v45 = vunpack.c.l.bf16 %v5464_v47  ;;  %v5220_v50 = vunpack.c.h.bf16 %v5464_v47  ;;  %v5247_v33 = vunpack.c.l.bf16 %v5471_v31  ;;  %v5472_v34 = vld [vmem:[#allocation3 + $0x200] sm:$0xff]  }
 0x21f   :  { %v1036_v38 = vmax.f32 %v1020_v36, 0.0  ;;  %6825 = vmatprep.subr.bf16.mxu1 %v6824_v35  ;;  %v5251_v36 = vunpack.c.l.bf16 %v5472_v34  ;;  %v5260_v47 = vunpack.c.h.bf16 %v5474_v40 }
 0x220   :  { %6827 = vmatpush3.bf16.msra.mxu1 %v6824_v35 }
 0x221   :  { %v6828_v39 = vpack.c.bf16 %v1037_v37, %v1036_v38  ;;  %v5473_v37 = vld [vmem:[#allocation3 + $0x208] sm:$0xff]   ;;  %v5252_v38 = vunpack.c.h.bf16 %v5472_v34 }
 0x223   :  { %6829 = vmatprep.subr.bf16.mxu1 %v6828_v39 }
 0x224   :  { %6831 = vmatpush3.bf16.msra.mxu1 %v6828_v39 }
 0x225   :  { %6833 = vmatprep.subr.bf16.mxu1 %v7603_v57 }
 0x227   :  { %6172 = vmatmul.mubr.f32.vlgmr.msra.gmra.mrb[16].mxu1 %v5208_v41  ;;  %v5479_v41 = vld [vmem:[#allocation3 + $0x28] sm:$0xff]  }
 0x228   :  { %6835 = vmatpush3.bf16.msra.mxu1 %v7603_v57  ;;  %6174 = vmatprep.mubr.f32.mxu1 %v5211_v42  ;;  %v5231_v57 = vunpack.c.l.bf16 %v5467_v55  ;;  %v5256_v42 = vunpack.c.h.bf16 %v5473_v37 }
 0x229   :  { %6837 = vmatprep.subr.bf16.mxu1 %v7609_v3 }
 0x22b   :  { %6175 = vmatmul.mubr.f32.gmra.mrb[18].mxu1 %v5212_v44  ;;  %v5475_v44 = vld [vmem:[#allocation3 + $0x218] sm:$0xff]  }
 0x22c   :  { %6839 = vmatpush3.bf16.msra.mxu1 %v7609_v3  ;;  %6177 = vmatprep.mubr.f32.mxu1 %v5215_v46  ;;  %v5480_v46 = vld [vmem:[#allocation3 + $0x30] sm:$0xff]  }
 0x22d   :  { %6841 = vmatprep.subr.bf16.mxu1 %v7615_v17 }
 0x22f   :  { %6178 = vmatmul.mubr.f32.gmra.mrb[20].mxu1 %v5216_v48  ;;  %v5263_v48 = vunpack.c.l.bf16 %v5475_v44 }
 0x230   :  { %6843 = vmatpush3.bf16.msra.mxu1 %v7615_v17  ;;  %6180 = vmatprep.mubr.f32.mxu1 %v5219_v45  ;;  %v5476_v45 = vld [vmem:[#allocation3 + $0x220] sm:$0xff]  }
 0x231   :  { %6845 = vmatprep.subr.bf16.mxu1 %v6812_v4  ;;  %v5268_v52 = vunpack.c.h.bf16 %v5476_v45 }
 0x233   :  { %6181 = vmatmul.mubr.f32.gmra.mrb[22].mxu1 %v5220_v50  ;;  %v5264_v50 = vunpack.c.h.bf16 %v5475_v44  ;;  %v5485_v44 = vld [vmem:[#allocation3 + $0x238] sm:$0xff]  }
 0x234   :  { %6847 = vmatpush3.bf16.msra.mxu1 %v6812_v4  ;;  %6215 = vmatprep.mubr.f32.mxu1 %v5223_v51  ;;  %v5267_v51 = vunpack.c.l.bf16 %v5476_v45  ;;  %v5304_v45 = vunpack.c.h.bf16 %v5485_v44 }
 0x235   :  { %6849 = vmatprep.subr.bf16.mxu1 %v6816_v19 }
 0x238   :  { %6851 = vmatpush3.bf16.msra.mxu1 %v6816_v19 }
 0x239   :  { %6853 = vmatprep.subr.bf16.mxu1 %v6820_v28 }
 0x23c   :  { %6855 = vmatpush3.bf16.msra.mxu1 %v6820_v28  ;;  %v5470_v28 = vld [vmem:[#allocation3 + $0x1f0] sm:$0xff]  }
 0x23d   :  { %6857 = vmatprep.subr.bf16.mxu1 %v6824_v35  ;;  %v5243_v30 = vunpack.c.l.bf16 %v5470_v28  ;;  %v5244_v32 = vunpack.c.h.bf16 %v5470_v28 }
 0x240   :  { %6859 = vmatpush3.bf16.msra.mxu1 %v6824_v35  ;;  %v5248_v35 = vunpack.c.h.bf16 %v5471_v31 }
 0x241   :  { %6861 = vmatprep.subr.bf16.mxu1 %v6828_v39 }
 0x244   :  { %6863 = vmatpush3.bf16.msra.mxu1 %v6828_v39  ;;  %v5255_v39 = vunpack.c.l.bf16 %v5473_v37 }
 0x247   :  { %6216 = vmatmul.mubr.f32.vlgmr.msra.gmra.mrb[24].mxu1 %v5224_v53  ;;  %v5478_v53 = vld [vmem:[#allocation3 + $0x20] sm:$0xff]  }
 0x248   :  { %6218 = vmatprep.mubr.f32.mxu1 %v5227_v54  ;;  %v5481_v54 = vld [vmem:[#allocation3 + $0x38] sm:$0xff]  }
 0x24b   :  { %6219 = vmatmul.mubr.f32.gmra.mrb[26].mxu1 %v5228_v56 }
 0x24c   :  { %6221 = vmatprep.mubr.f32.mxu1 %v5231_v57  ;;  %v5482_v57 = vld [vmem:[#allocation3 + $0x40] sm:$0xff]  }
 0x24f   :  { %6222 = vmatmul.mubr.f32.gmra.mrb[28].mxu1 %v5232_v59 }
 0x250   :  { %6224 = vmatprep.mubr.f32.mxu1 %v5235_v60 }
 0x253   :  { %6225 = vmatmul.mubr.f32.gmra.mrb[30].mxu1 %v5236_v61 }
 0x254   :  { %6243 = vmatprep.mubr.msk.f32.mxu1 %vm1304_vm1, %v5239_v63 }
 0x2fa   :  { %v6173_v3 = vpop.f32.mrb[16].mxu1 }
 0x2fb   :  { %v1120_v5 = vpop.f32.mrb[17].mxu1 }
 0x2fe   :  { %v6176_v8 = vpop.f32.mrb[18].mxu1 }
 0x2ff   :  { %v1130_v9 = vpop.f32.mrb[19].mxu1 }
 0x302   :  { %v6179_v12 = vpop.f32.mrb[20].mxu1 }
 0x303   :  { %v1140_v13 = vpop.f32.mrb[21].mxu1 }
 0x306   :  { %v6182_v14 = vpop.f32.mrb[22].mxu1 }
 0x307   :  { %v1150_v17 = vpop.f32.mrb[23].mxu1 }
 0x31a   :  { %v6217_v18 = vpop.f32.mrb[24].mxu1 }
 0x31b   :  { %v7636_v21 = vmax.f32 %v6173_v3, %v6217_v18  ;;  %v1241_v24 = vpop.f32.mrb[25].mxu1  ;;  %v5483_v18 = vld [vmem:[#allocation3 + $0x228] sm:$0xff]  }
 0x31c   :  { %v7638_v0 = vmax.f32 %v1120_v5, %v1241_v24  ;;  %v5495_v24 = vld [vmem:[#allocation3 + $0x68] sm:$0xff]  }
 0x31e   :  { %v6864_v1 = vpack.c.bf16 %v7636_v21, %v7638_v0  ;;  %v6220_v2 = vpop.f32.mrb[26].mxu1 }
 0x31f   :  { %v7642_v4 = vmax.f32 %v6176_v8, %v6220_v2  ;;  %v1251_v6 = vpop.f32.mrb[27].mxu1 }
 0x320   :  { %v7644_v7 = vmax.f32 %v1130_v9, %v1251_v6  ;;  %6865 = vmatprep.subr.bf16.mxu1 %v6864_v1 }
 0x321   :  { %6867 = vmatpush3.bf16.msra.mxu1 %v6864_v1 }
 0x322   :  { %v6868_v10 = vpack.c.bf16 %v7642_v4, %v7644_v7  ;;  %v6223_v11 = vpop.f32.mrb[28].mxu1 }
 0x323   :  { %v7648_v15 = vmax.f32 %v6179_v12, %v6223_v11  ;;  %v1261_v16 = vpop.f32.mrb[29].mxu1 }
 0x324   :  { %v7650_v19 = vmax.f32 %v1140_v13, %v1261_v16  ;;  %6869 = vmatprep.subr.bf16.mxu1 %v6868_v10 }
 0x325   :  { %6871 = vmatpush3.bf16.msra.mxu1 %v6868_v10 }
 0x326   :  { %v6872_v20 = vpack.c.bf16 %v7648_v15, %v7650_v19  ;;  %v6226_v22 = vpop.f32.mrb[30].mxu1 }
 0x327   :  { %v7654_v23 = vmax.f32 %v6182_v14, %v6226_v22  ;;  %v1271_v25 = vpop.f32.mrb[31].mxu1 }
 0x328   :  { %v7656_v26 = vmax.f32 %v1150_v17, %v1271_v25  ;;  %6873 = vmatprep.subr.bf16.mxu1 %v6872_v20 }
 0x329   :  { %6875 = vmatpush3.bf16.msra.mxu1 %v6872_v20 }
 0x32a   :  { %v6876_v27 = vpack.c.bf16 %v7654_v23, %v7656_v26 }
 0x32c   :  { %6877 = vmatprep.subr.bf16.mxu1 %v6876_v27 }
 0x32d   :  { %6879 = vmatpush3.bf16.msra.mxu1 %v6876_v27 }
 0x32e   :  { %6881 = vmatprep.subr.bf16.mxu1 %v6864_v1 }
 0x330   :  { %6244 = vmatmul.mubr.msk.f32.vlgmr.msra.gmra.mrb[32].mxu1 %vm1304_vm1, %v5240_v29 }
 0x331   :  { %6883 = vmatpush3.bf16.msra.mxu1 %v6864_v1  ;;  %6246 = vmatprep.mubr.msk.f32.mxu1 %vm1304_vm1, %v5243_v30  ;;  %v5087_v1 = vld [vmem:[%s8016_s2 + $0x8] ss:$0 sm:$0xff] }
 0x332   :  { %6885 = vmatprep.subr.bf16.mxu1 %v6868_v10 }
 0x334   :  { %6247 = vmatmul.mubr.msk.f32.gmra.mrb[34].mxu1 %vm1304_vm1, %v5244_v32 }
 0x335   :  { %6887 = vmatpush3.bf16.msra.mxu1 %v6868_v10  ;;  %6249 = vmatprep.mubr.msk.f32.mxu1 %vm1304_vm1, %v5247_v33 }
 0x336   :  { %6889 = vmatprep.subr.bf16.mxu1 %v6872_v20 }
 0x338   :  { %6250 = vmatmul.mubr.msk.f32.gmra.mrb[36].mxu1 %vm1304_vm1, %v5248_v35 }
 0x339   :  { %6891 = vmatpush3.bf16.msra.mxu1 %v6872_v20  ;;  %6252 = vmatprep.mubr.msk.f32.mxu1 %vm1304_vm1, %v5251_v36 }
 0x33a   :  { %6893 = vmatprep.subr.bf16.mxu1 %v6876_v27 }
 0x33c   :  { %6253 = vmatmul.mubr.msk.f32.gmra.mrb[38].mxu1 %vm1304_vm1, %v5252_v38 }
 0x33d   :  { %6895 = vmatpush3.bf16.msra.mxu1 %v6876_v27  ;;  %6271 = vmatprep.mubr.msk.f32.mxu1 %vm1304_vm1, %v5255_v39 }
 0x33e   :  { %6897 = vmatprep.subr.bf16.mxu1 %v5479_v41 }
 0x340   :  { %6272 = vmatmul.mubr.msk.f32.vlgmr.msra.gmra.mrb[40].mxu1 %vm1304_vm1, %v5256_v42  ;;  %v5296_v42 = vunpack.c.h.bf16 %v5483_v18 }
 0x341   :  { %6274 = vmatprep.mubr.msk.f32.mxu1 %vm1304_vm1, %v5259_v43  ;;  %6899 = vmatpush3.bf16.msra.mxu1 %v5479_v41  ;;  %v5484_v41 = vld [vmem:[#allocation3 + $0x230] sm:$0xff]  }
 0x342   :  { %6901 = vmatprep.subr.bf16.mxu1 %v5480_v46  ;;  %v5299_v43 = vunpack.c.l.bf16 %v5484_v41 }
 0x344   :  { %6275 = vmatmul.mubr.msk.f32.gmra.mrb[42].mxu1 %vm1304_vm1, %v5260_v47  ;;  %v5303_v47 = vunpack.c.l.bf16 %v5485_v44 }
 0x345   :  { %6277 = vmatprep.mubr.msk.f32.mxu1 %vm1304_vm1, %v5263_v48  ;;  %6903 = vmatpush3.bf16.msra.mxu1 %v5480_v46  ;;  %v5300_v46 = vunpack.c.h.bf16 %v5484_v41  ;;  %v5486_v48 = vld [vmem:[#allocation3 + $0x240] sm:$0xff]  }
 0x346   :  { %6905 = vmatprep.subr.bf16.mxu1 %v5477_v49 }
 0x348   :  { %6278 = vmatmul.mubr.msk.f32.gmra.mrb[44].mxu1 %vm1304_vm1, %v5264_v50  ;;  %v5308_v50 = vunpack.c.h.bf16 %v5486_v48 }
 0x349   :  { %6280 = vmatprep.mubr.msk.f32.mxu1 %vm1304_vm1, %v5267_v51  ;;  %v5497_v51 = vld [vmem:[#allocation3 + $0x78] sm:$0xff]  }
 0x34c   :  { %6281 = vmatmul.mubr.msk.f32.gmra.mrb[46].mxu1 %vm1304_vm1, %v5268_v52  ;;  %v5498_v52 = vld [vmem:[#allocation3 + $0x80] sm:$0xff]  }
 0x34d   :  { %6291 = vmatprep.mubr.msk.f32.mxu1 %vm1595_vm2, %v7638_v0  ;;  %v5496_v0 = vld [vmem:[#allocation3 + $0x70] sm:$0xff]  }
 0x350   :  { %6292 = vmatmul.mubr.msk.f32.vlgmr.msra.gmra.mrb[48].mxu1 %vm1595_vm2, %v7636_v21  ;;  %v5295_v21 = vunpack.c.l.bf16 %v5483_v18  ;;  %v5493_v18 = vld [vmem:[#allocation3 + $0x58] sm:$0xff]  }
 0x351   :  { %6294 = vmatprep.mubr.msk.f32.mxu1 %vm1595_vm2, %v7644_v7  ;;  %6907 = vmatpush3.bf16.msra.mxu1 %v5477_v49  ;;  %v5307_v49 = vunpack.c.l.bf16 %v5486_v48 }
 0x352   :  { %6909 = vmatprep.subr.bf16.mxu1 %v5478_v53  ;;  %6359 = vmatprep.mubr.msk.f32.mxu0 %vm1304_vm1, %v5295_v21 }
 0x354   :  { %6295 = vmatmul.mubr.msk.f32.gmra.mrb[50].mxu1 %vm1595_vm2, %v7642_v4 }
 0x355   :  { %6297 = vmatprep.mubr.msk.f32.mxu1 %vm1595_vm2, %v7650_v19  ;;  %6911 = vmatpush3.bf16.msra.mxu1 %v5478_v53  ;;  %v5487_v53 = vld [vmem:[#allocation3 + $0x248] sm:$0xff]  }
 0x356   :  { %6913 = vmatprep.subr.bf16.mxu1 %v5481_v54  ;;  %v5312_v21 = vunpack.c.h.bf16 %v5487_v53 }
 0x358   :  { %6298 = vmatmul.mubr.msk.f32.gmra.mrb[52].mxu1 %vm1595_vm2, %v7648_v15 }
 0x359   :  { %6300 = vmatprep.mubr.msk.f32.mxu1 %vm1595_vm2, %v7656_v26 }
 0x35c   :  { %6301 = vmatmul.mubr.msk.f32.gmra.mrb[54].mxu1 %vm1595_vm2, %v7654_v23 }
 0x403   :  { %v6245_v55 = vpop.f32.mrb[32].mxu1 }
 0x404   :  { %v1395_v56 = vpop.f32.mrb[33].mxu1 }
 0x405   :  { %6311 = vmatprep.mubr.msk.f32.mxu1 %vm1595_vm2, %v1395_v56 }
 0x406   :  { %6312 = vmatmul.mubr.msk.f32.vlgmr.msra.gmra.mrb[48].mxu1 %vm1595_vm2, %v6245_v55  ;;  %v5491_v55 = vld [vmem:[#allocation3 + $0x48] sm:$0xff]  }
 0x407   :  { %v6248_v58 = vpop.f32.mrb[34].mxu1  ;;  %6915 = vmatpush3.bf16.msra.mxu1 %v5481_v54  ;;  %v5311_v54 = vunpack.c.l.bf16 %v5487_v53  ;;  %v5506_v53 = vld [vmem:[#allocation3 + $0xb0] sm:$0xff]  }
 0x408   :  { %v1405_v59 = vpop.f32.mrb[35].mxu1  ;;  %6917 = vmatprep.subr.bf16.mxu1 %v5482_v57 }
 0x409   :  { %6314 = vmatprep.mubr.msk.f32.mxu1 %vm1595_vm2, %v1405_v59 }
 0x40a   :  { %6315 = vmatmul.mubr.msk.f32.gmra.mrb[50].mxu1 %vm1595_vm2, %v6248_v58 }
 0x40b   :  { %v6251_v60 = vpop.f32.mrb[36].mxu1  ;;  %6919 = vmatpush3.bf16.msra.mxu1 %v5482_v57 }
 0x40c   :  { %v1415_v61 = vpop.f32.mrb[37].mxu1  ;;  %6969 = vmatprep.subr.bf16.mxu1 %v5495_v24 }
 0x40d   :  { %6317 = vmatprep.mubr.msk.f32.mxu1 %vm1595_vm2, %v1415_v61 }
 0x40e   :  { %6318 = vmatmul.mubr.msk.f32.gmra.mrb[52].mxu1 %vm1595_vm2, %v6251_v60 }
 0x40f   :  { %v6254_v62 = vpop.f32.mrb[38].mxu1 }
 0x410   :  { %v1425_v63 = vpop.f32.mrb[39].mxu1 }
 0x411   :  { %6320 = vmatprep.mubr.msk.f32.mxu1 %vm1595_vm2, %v1425_v63 }
 0x412   :  { %6321 = vmatmul.mubr.msk.f32.gmra.mrb[54].mxu1 %vm1595_vm2, %v6254_v62 }
 0x413   :  { %v6273_v3 = vpop.f32.mrb[40].mxu1 }
 0x414   :  { %v1540_v5 = vpop.f32.mrb[41].mxu1 }
 0x415   :  { %6331 = vmatprep.mubr.msk.f32.mxu1 %vm1595_vm2, %v1540_v5 }
 0x416   :  { %6332 = vmatmul.mubr.msk.f32.vlgmr.msra.gmra.mrb[48].mxu1 %vm1595_vm2, %v6273_v3 }
 0x417   :  { %v6276_v8 = vpop.f32.mrb[42].mxu1  ;;  %6971 = vmatpush3.bf16.msra.mxu1 %v5495_v24 }
 0x418   :  { %v1550_v9 = vpop.f32.mrb[43].mxu1  ;;  %6973 = vmatprep.subr.bf16.mxu1 %v5496_v0 }
 0x419   :  { %6334 = vmatprep.mubr.msk.f32.mxu1 %vm1595_vm2, %v1550_v9 }
 0x41a   :  { %6335 = vmatmul.mubr.msk.f32.gmra.mrb[50].mxu1 %vm1595_vm2, %v6276_v8  ;;  %v5492_v8 = vld [vmem:[#allocation3 + $0x50] sm:$0xff]  }
 0x41b   :  { %v6279_v12 = vpop.f32.mrb[44].mxu1  ;;  %6975 = vmatpush3.bf16.msra.mxu1 %v5496_v0  ;;  %v5489_v0 = vld [vmem:[#allocation3 + $0x258] sm:$0xff]  }
 0x41c   :  { %v1560_v13 = vpop.f32.mrb[45].mxu1  ;;  %6977 = vmatprep.subr.bf16.mxu1 %v5497_v51 }
 0x41d   :  { %6337 = vmatprep.mubr.msk.f32.mxu1 %vm1595_vm2, %v1560_v13 }
 0x41e   :  { %6338 = vmatmul.mubr.msk.f32.gmra.mrb[52].mxu1 %vm1595_vm2, %v6279_v12 }
 0x41f   :  { %v6282_v14 = vpop.f32.mrb[46].mxu1  ;;  %6979 = vmatpush3.bf16.msra.mxu1 %v5497_v51  ;;  %v5505_v51 = vld [vmem:[#allocation3 + $0xa8] sm:$0xff]  }
 0x420   :  { %v1570_v17 = vpop.f32.mrb[47].mxu1  ;;  %6981 = vmatprep.subr.bf16.mxu1 %v5498_v52 }
 0x421   :  { %6340 = vmatprep.mubr.msk.f32.mxu1 %vm1595_vm2, %v1570_v17  ;;  %v5488_v17 = vld [vmem:[#allocation3 + $0x250] sm:$0xff]  }
 0x422   :  { %6341 = vmatmul.mubr.msk.f32.gmra.mrb[54].mxu1 %vm1595_vm2, %v6282_v14  ;;  %v5315_v24 = vunpack.c.l.bf16 %v5488_v17 }
 0x423   :  { %6983 = vmatpush3.bf16.msra.mxu1 %v5498_v52 }
 0x424   :  { %6985 = vmatprep.subr.bf16.mxu1 %v5491_v55 }
 0x4e9   :  { %v6333_v2 = vpop.f32.mrb[48].mxu1 }
 0x4ea   :  { %v2005_v4 = vadd.f32 %v6333_v2, %v5087_v1  ;;  %v1952_v6 = vpop.f32.mrb[49].mxu1  ;;  %v5316_v2 = vunpack.c.h.bf16 %v5488_v17 }
 0x4eb   :  { %v2004_v7 = vadd.f32 %v5087_v1, %v1952_v6  ;;  %v5490_v6 = vld [vmem:[#allocation3 + $0x260] sm:$0xff]  }
 0x4ec   :  { %v2013_v10 = vmax.f32 %v2005_v4, 0.0  ;;  %v5319_v4 = vunpack.c.l.bf16 %v5489_v0 }
 0x4ed   :  { %v2012_v11 = vmax.f32 %v2004_v7, 0.0  ;;  %v6336_v15 = vpop.f32.mrb[50].mxu1  ;;  %v5320_v7 = vunpack.c.h.bf16 %v5489_v0 }
 0x4ee   :  { %v2007_v16 = vadd.f32 %v6336_v15, %v5087_v1  ;;  %v1962_v19 = vpop.f32.mrb[51].mxu1  ;;  %v5499_v15 = vld [vmem:[#allocation3 + $0x88] sm:$0xff]  }
 0x4ef   :  { %v6920_v20 = vpack.c.bf16 %v2013_v10, %v2012_v11  ;;  %v2006_v22 = vadd.f32 %v5087_v1, %v1962_v19  ;;  %v5323_v10 = vunpack.c.l.bf16 %v5490_v6  ;;  %v5324_v11 = vunpack.c.h.bf16 %v5490_v6 }
 0x4f0   :  { %v2015_v23 = vmax.f32 %v2007_v16, 0.0 }
 0x4f1   :  { %v2014_v25 = vmax.f32 %v2006_v22, 0.0  ;;  %v6339_v26 = vpop.f32.mrb[52].mxu1  ;;  %6921 = vmatprep.subr.bf16.mxu0 %v6920_v20 }
 0x4f2   :  { %v2009_v27 = vadd.f32 %v6339_v26, %v5087_v1  ;;  %v1972_v28 = vpop.f32.mrb[53].mxu1  ;;  %6923 = vmatpush3.bf16.msra.mxu0 %v6920_v20 }
 0x4f3   :  { %v6924_v29 = vpack.c.bf16 %v2015_v23, %v2014_v25  ;;  %v2008_v30 = vadd.f32 %v5087_v1, %v1972_v28  ;;  %v5501_v25 = vld [vmem:[#allocation3 + $0x98] sm:$0xff]   ;;  %v5502_v28 = vld [vmem:[#allocation3 + $0xa0] sm:$0xff]  }
 0x4f4   :  { %v2017_v31 = vmax.f32 %v2009_v27, 0.0 }
 0x4f5   :  { %v2016_v32 = vmax.f32 %v2008_v30, 0.0  ;;  %v6342_v33 = vpop.f32.mrb[54].mxu1  ;;  %6925 = vmatprep.subr.bf16.mxu0 %v6924_v29 }
 0x4f6   :  { %v2011_v34 = vadd.f32 %v6342_v33, %v5087_v1  ;;  %v1982_v35 = vpop.f32.mrb[55].mxu1  ;;  %6927 = vmatpush3.bf16.msra.mxu0 %v6924_v29  ;;  %v5116_v33 = vld [vmem:[%s8016_s2 + $0x10] ss:$0 sm:$0xff] }
 0x4f7   :  { %v6928_v36 = vpack.c.bf16 %v2017_v31, %v2016_v32  ;;  %v2010_v37 = vadd.f32 %v5087_v1, %v1982_v35  ;;  %v5494_v1 = vld [vmem:[#allocation3 + $0x60] sm:$0xff]   ;;  %v5503_v31 = vld [vmem:[#allocation3 + $0x268] sm:$0xff]  }
 0x4f8   :  { %v2019_v38 = vmax.f32 %v2011_v34, 0.0  ;;  %v5375_v32 = vunpack.c.l.bf16 %v5503_v31 }
 0x4f9   :  { %v2018_v39 = vmax.f32 %v2010_v37, 0.0  ;;  %6929 = vmatprep.subr.bf16.mxu0 %v6928_v36 }
 0x4fa   :  { %6931 = vmatpush3.bf16.msra.mxu0 %v6928_v36 }
 0x4fb   :  { %v6932_v40 = vpack.c.bf16 %v2019_v38, %v2018_v39 }
 0x4fd   :  { %6933 = vmatprep.subr.bf16.mxu0 %v6932_v40 }
 0x4fe   :  { %6935 = vmatpush3.bf16.msra.mxu0 %v6932_v40 }
 0x4ff   :  { %6937 = vmatprep.subr.bf16.mxu0 %v6920_v20 }
 0x501   :  { %6360 = vmatmul.mubr.msk.f32.vlgmr.msra.gmra.mrb[32].mxu0 %vm1304_vm1, %v5296_v42 }
 0x502   :  { %6939 = vmatpush3.bf16.msra.mxu0 %v6920_v20  ;;  %6362 = vmatprep.mubr.msk.f32.mxu0 %vm1304_vm1, %v5299_v43  ;;  %v5500_v20 = vld [vmem:[#allocation3 + $0x90] sm:$0xff]  }
 0x503   :  { %6941 = vmatprep.subr.bf16.mxu0 %v6924_v29 }
 0x505   :  { %6363 = vmatmul.mubr.msk.f32.gmra.mrb[34].mxu0 %vm1304_vm1, %v5300_v46 }
 0x506   :  { %6943 = vmatpush3.bf16.msra.mxu0 %v6924_v29  ;;  %6381 = vmatprep.mubr.msk.f32.mxu0 %vm1304_vm1, %v5303_v47 }
 0x507   :  { %6945 = vmatprep.subr.bf16.mxu0 %v6928_v36 }
 0x50a   :  { %6947 = vmatpush3.bf16.msra.mxu0 %v6928_v36 }
 0x50b   :  { %6949 = vmatprep.subr.bf16.mxu0 %v6932_v40 }
 0x50e   :  { %6951 = vmatpush3.bf16.msra.mxu0 %v6932_v40 }
 0x511   :  { %6382 = vmatmul.mubr.msk.f32.vlgmr.msra.gmra.mrb[36].mxu0 %vm1304_vm1, %v5304_v45  ;;  %v5504_v45 = vld [vmem:[#allocation3 + $0x270] sm:$0xff]  }
 0x512   :  { %6384 = vmatprep.mubr.msk.f32.mxu0 %vm1304_vm1, %v5307_v49  ;;  %v5376_v49 = vunpack.c.h.bf16 %v5503_v31  ;;  %v5380_v52 = vunpack.c.h.bf16 %v5504_v45 }
 0x515   :  { %6385 = vmatmul.mubr.msk.f32.gmra.mrb[38].mxu0 %vm1304_vm1, %v5308_v50  ;;  %v5379_v50 = vunpack.c.l.bf16 %v5504_v45 }
 0x516   :  { %6395 = vmatprep.mubr.msk.f32.mxu0 %vm1595_vm2, %v5311_v54  ;;  %v5507_v54 = vld [vmem:[#allocation3 + $0xb8] sm:$0xff]  }
 0x5d4   :  { %v6361_v56 = vpop.f32.mrb[32].mxu0 }
 0x5d5   :  { %v2106_v57 = vpop.f32.mrb[33].mxu0 }
 0x5d8   :  { %v6364_v58 = vpop.f32.mrb[34].mxu0 }
 0x5d9   :  { %v2116_v59 = vpop.f32.mrb[35].mxu0 }
 0x5e4   :  { %v6383_v60 = vpop.f32.mrb[36].mxu0 }
 0x5e5   :  { %v2231_v61 = vmax.f32 %v6361_v56, %v6383_v60  ;;  %v2211_v62 = vpop.f32.mrb[37].mxu0  ;;  %v5509_v56 = vld [vmem:[#allocation3 + $0xc8] sm:$0xff]  }
 0x5e6   :  { %v2230_v63 = vmax.f32 %v2106_v57, %v2211_v62  ;;  %v5510_v57 = vld [vmem:[#allocation3 + $0xd0] sm:$0xff]   ;;  %v7746_v60 = vld [vmem:[#allocation3 + $0xe8] sm:$0xff]  }
 0x5e7   :  { %v7750_v62 = vld [vmem:[#allocation3 + $0xf0] sm:$0xff]  }
 0x5e8   :  { %v6952_v3 = vpack.c.bf16 %v2231_v61, %v2230_v63  ;;  %v6386_v5 = vpop.f32.mrb[38].mxu0  ;;  %6431 = vmatprep.mubr.msk.f32.mxu1 %vm1304_vm1, %v2230_v63  ;;  %v7387_v63 = vmov 0.0  }
 0x5e9   :  { %v2233_v9 = vmax.f32 %v6364_v58, %v6386_v5  ;;  %v2221_v12 = vpop.f32.mrb[39].mxu0  ;;  %6432 = vmatmul.mubr.msk.f32.vlgmr.msra.gmra.mrb[56].mxu1 %vm1304_vm1, %v2231_v61  ;;  %v5511_v58 = vld [vmem:[#allocation3 + $0xd8] sm:$0xff]   ;;  %v5512_v61 = vld [vmem:[#allocation3 + $0xe0] sm:$0xff]  }
 0x5ea   :  { %v2232_v13 = vmax.f32 %v2116_v59, %v2221_v12  ;;  %6953 = vmatprep.subr.bf16.mxu0 %v6952_v3  ;;  %6987 = vmatpush3.bf16.msra.mxu1 %v5491_v55  ;;  %v5508_v55 = vld [vmem:[#allocation3 + $0xc0] sm:$0xff]   ;;  %v7385_v59 = vmov 0.0|0.0  }
 0x5eb   :  { %6955 = vmatpush3.bf16.msra.mxu0 %v6952_v3  ;;  %6989 = vmatprep.subr.bf16.mxu1 %v5492_v8 }
 0x5ec   :  { %v6956_v14 = vpack.c.bf16 %v2233_v9, %v2232_v13  ;;  %6434 = vmatprep.mubr.msk.f32.mxu1 %vm1304_vm1, %v2232_v13 }
 0x5ed   :  { %6435 = vmatmul.mubr.msk.f32.gmra.mrb[58].mxu1 %vm1304_vm1, %v2233_v9 }
 0x5ee   :  { %6957 = vmatprep.subr.bf16.mxu0 %v6956_v14  ;;  %6991 = vmatpush3.bf16.msra.mxu1 %v5492_v8 }
 0x5ef   :  { %6959 = vmatpush3.bf16.msra.mxu0 %v6956_v14  ;;  %6993 = vmatprep.subr.bf16.mxu1 %v5493_v18 }
 0x5f0   :  { %6961 = vmatprep.subr.bf16.mxu0 %v6952_v3 }
 0x5f2   :  { %6396 = vmatmul.mubr.msk.f32.vlgmr.msra.gmra.mrb[40].mxu0 %vm1595_vm2, %v5312_v21  ;;  %6995 = vmatpush3.bf16.msra.mxu1 %v5493_v18  ;;  %v5121_v18 = vld [vmem:[%s8016_s2 + $0x18] ss:$0 sm:$0xff] }
 0x5f3   :  { %6963 = vmatpush3.bf16.msra.mxu0 %v6952_v3  ;;  %6398 = vmatprep.mubr.msk.f32.mxu0 %vm1595_vm2, %v5315_v24 }
 0x5f4   :  { %6965 = vmatprep.subr.bf16.mxu0 %v6956_v14  ;;  %6997 = vmatprep.subr.bf16.mxu1 %v5494_v1 }
 0x5f6   :  { %6399 = vmatmul.mubr.msk.f32.gmra.mrb[42].mxu0 %vm1595_vm2, %v5316_v2  ;;  %6999 = vmatpush3.bf16.msra.mxu1 %v5494_v1 }
 0x5f7   :  { %6967 = vmatpush3.bf16.msra.mxu0 %v6956_v14  ;;  %6409 = vmatprep.mubr.msk.f32.mxu0 %vm1595_vm2, %v5319_v4 }
 0x5f8   :  { %7001 = vmatprep.subr.bf16.mxu1 %v5499_v15 }
 0x5fa   :  { %6410 = vmatmul.mubr.msk.f32.vlgmr.msra.gmra.mrb[44].mxu0 %vm1595_vm2, %v5320_v7 }
 0x5fb   :  { %6412 = vmatprep.mubr.msk.f32.mxu0 %vm1595_vm2, %v5323_v10 }
 0x5fe   :  { %6413 = vmatmul.mubr.msk.f32.gmra.mrb[46].mxu0 %vm1595_vm2, %v5324_v11 }
 0x5ff   :  { %6489 = vmatprep.mubr.msk.f32.mxu0 %vm1595_vm2, %v5375_v32 }
 0x6c5   :  { %v6397_v16 = vpop.f32.mrb[40].mxu0 }
 0x6c6   :  { %v2320_v19 = vpop.f32.mrb[41].mxu0 }
 0x6c7   :  { %6453 = vmatprep.mubr.msk.f32.mxu1 %vm1304_vm1, %v2320_v19 }
 0x6c8   :  { %6454 = vmatmul.mubr.msk.f32.vlgmr.msra.gmra.mrb[56].mxu1 %vm1304_vm1, %v6397_v16 }
 0x6c9   :  { %7003 = vmatpush3.bf16.msra.mxu1 %v5499_v15  ;;  %v6400_v22 = vpop.f32.mrb[42].mxu0 }
 0x6ca   :  { %7005 = vmatprep.subr.bf16.mxu1 %v5500_v20  ;;  %v2330_v23 = vpop.f32.mrb[43].mxu0 }
 0x6cb   :  { %6456 = vmatprep.mubr.msk.f32.mxu1 %vm1304_vm1, %v2330_v23 }
 0x6cc   :  { %6457 = vmatmul.mubr.msk.f32.gmra.mrb[58].mxu1 %vm1304_vm1, %v6400_v22 }
 0x6cd   :  { %7007 = vmatpush3.bf16.msra.mxu1 %v5500_v20  ;;  %v6411_v26 = vpop.f32.mrb[44].mxu0 }
 0x6ce   :  { %7009 = vmatprep.subr.bf16.mxu1 %v5501_v25  ;;  %v2425_v27 = vpop.f32.mrb[45].mxu0 }
 0x6cf   :  { %6475 = vmatprep.mubr.msk.f32.mxu1 %vm1304_vm1, %v2425_v27 }
 0x6d1   :  { %7011 = vmatpush3.bf16.msra.mxu1 %v5501_v25  ;;  %v6414_v29 = vpop.f32.mrb[46].mxu0 }
 0x6d2   :  { %7013 = vmatprep.subr.bf16.mxu1 %v5502_v28  ;;  %v2435_v30 = vpop.f32.mrb[47].mxu0 }
 0x6d5   :  { %7015 = vmatpush3.bf16.msra.mxu1 %v5502_v28 }
 0x6d6   :  { %7064 = vmatprep.subr.bf16.mxu1 %v7385_v59 }
 0x6d8   :  { %6476 = vmatmul.mubr.msk.f32.vlgmr.msra.gmra.mrb[56].mxu1 %vm1304_vm1, %v6411_v26 }
 0x6d9   :  { %6478 = vmatprep.mubr.msk.f32.mxu1 %vm1304_vm1, %v2435_v30  ;;  %7066 = vmatpush3.bf16.msra.mxu1 %v7746_v60 }
 0x6da   :  { %7067 = vmatprep.subr.bf16.mxu1 %v7385_v59 }
 0x6dc   :  { %6479 = vmatmul.mubr.msk.f32.gmra.mrb[58].mxu1 %vm1304_vm1, %v6414_v29 }
 0x6dd   :  { %7069 = vmatpush3.bf16.msra.mxu1 %v7750_v62  ;;  %6546 = vmatprep.mubr.msk.f32.mxu1 %vm7386_vm3, %v7387_v63 }
 0x6de   :  { %7070 = vmatprep.subr.bf16.mxu1 %v7385_v59 }
 0x6e0   :  { %6547 = vmatmul.mubr.f32.vlgmr.msra.gmra.mrb[60].mxu1 %v7387_v63 }
 0x6e1   :  { %7072 = vmatpush3.bf16.msra.mxu1 %v7746_v60  ;;  %6557 = vmatprep.mubr.msk.f32.mxu1 %vm7386_vm3, %v7387_v63 }
 0x6e2   :  { %7073 = vmatprep.subr.bf16.mxu1 %v7385_v59 }
 0x6e5   :  { %7075 = vmatpush3.bf16.msra.mxu1 %v7750_v62 }
 0x6e6   :  { %7082 = vmatprep.subr.bf16.mxu1 %v7385_v59 }
 0x7ab   :  { %v6477_v34 = vpop.f32.mrb[56].mxu1 }
 0x7ac   :  { %v2793_v35 = vadd.f32 %v6477_v34, %v5116_v33  ;;  %v2764_v36 = vpop.f32.mrb[57].mxu1 }
 0x7ad   :  { %v2792_v37 = vadd.f32 %v5116_v33, %v2764_v36 }
 0x7ae   :  { %v2797_v38 = vmax.f32 %v2793_v35, 0.0 }
 0x7af   :  { %v2796_v39 = vmax.f32 %v2792_v37, 0.0  ;;  %v6480_v40 = vpop.f32.mrb[58].mxu1 }
 0x7b0   :  { %v2795_v41 = vadd.f32 %v6480_v40, %v5116_v33  ;;  %v2774_v42 = vpop.f32.mrb[59].mxu1 }
 0x7b1   :  { %v7016_v43 = vpack.c.bf16 %v2797_v38, %v2796_v39  ;;  %v2794_v44 = vadd.f32 %v5116_v33, %v2774_v42 }
 0x7b2   :  { %v2799_v46 = vmax.f32 %v2795_v41, 0.0 }
 0x7b3   :  { %v2798_v47 = vmax.f32 %v2794_v44, 0.0  ;;  %7017 = vmatprep.subr.bf16.mxu0 %v7016_v43  ;;  %v3161_v14 = vpop.f32.mrb[60].mxu1 }
 0x7b4   :  { %7019 = vmatpush3.bf16.msra.mxu0 %v7016_v43  ;;  %v6548_v17 = vpop.f32.mrb[61].mxu1 }
 0x7b5   :  { %v7020_v48 = vpack.c.bf16 %v2799_v46, %v2798_v47 }
 0x7b7   :  { %7021 = vmatprep.subr.bf16.mxu0 %v7020_v48 }
 0x7b8   :  { %7023 = vmatpush3.bf16.msra.mxu0 %v7020_v48 }
 0x7b9   :  { %7025 = vmatprep.subr.bf16.mxu0 %v7016_v43 }
 0x7bb   :  { %6490 = vmatmul.mubr.msk.f32.vlgmr.msra.gmra.mrb[48].mxu0 %vm1595_vm2, %v5376_v49 }
 0x7bc   :  { %7027 = vmatpush3.bf16.msra.mxu0 %v7016_v43  ;;  %6500 = vmatprep.mubr.msk.f32.mxu0 %vm1595_vm2, %v5379_v50 }
 0x7bd   :  { %7029 = vmatprep.subr.bf16.mxu0 %v7020_v48 }
 0x7c0   :  { %7031 = vmatpush3.bf16.msra.mxu0 %v7020_v48 }
 0x7c1   :  { %7033 = vmatprep.subr.bf16.mxu0 %v5505_v51 }
 0x7c3   :  { %6501 = vmatmul.mubr.msk.f32.vlgmr.msra.gmra.mrb[50].mxu0 %vm1595_vm2, %v5380_v52 }
 0x7c4   :  { %7035 = vmatpush3.bf16.msra.mxu0 %v5505_v51 }
 0x7c5   :  { %7037 = vmatprep.subr.bf16.mxu0 %v5506_v53 }
 0x7c8   :  { %7039 = vmatpush3.bf16.msra.mxu0 %v5506_v53 }
 0x7c9   :  { %7041 = vmatprep.subr.bf16.mxu0 %v5507_v54 }
 0x7cc   :  { %7043 = vmatpush3.bf16.msra.mxu0 %v5507_v54 }
 0x7cd   :  { %7045 = vmatprep.subr.bf16.mxu0 %v5508_v55 }
 0x7d0   :  { %7047 = vmatpush3.bf16.msra.mxu0 %v5508_v55 }
 0x7d1   :  { %7049 = vmatprep.subr.bf16.mxu0 %v5509_v56 }
 0x7d4   :  { %7051 = vmatpush3.bf16.msra.mxu0 %v5509_v56 }
 0x7d5   :  { %7053 = vmatprep.subr.bf16.mxu0 %v5510_v57 }
 0x7d8   :  { %7055 = vmatpush3.bf16.msra.mxu0 %v5510_v57 }
 0x7d9   :  { %7057 = vmatprep.subr.bf16.mxu0 %v5511_v58 }
 0x7dc   :  { %7059 = vmatpush3.bf16.msra.mxu0 %v5511_v58 }
 0x7dd   :  { %7061 = vmatprep.subr.bf16.mxu0 %v5512_v61 }
 0x7e0   :  { %7063 = vmatpush3.bf16.msra.mxu0 %v5512_v61 }
 0x7e1   :  { %7076 = vmatprep.subr.bf16.mxu0 %v7385_v59 }
 0x88e   :  { %v6491_v3 = vpop.f32.mrb[48].mxu0 }
 0x88f   :  { %v2876_v5 = vpop.f32.mrb[49].mxu0 }
 0x896   :  { %v6502_v8 = vpop.f32.mrb[50].mxu0 }
 0x897   :  { %v2971_v9 = vmax.f32 %v6491_v3, %v6502_v8  ;;  %v2961_v12 = vpop.f32.mrb[51].mxu0 }
 0x898   :  { %v2970_v13 = vmax.f32 %v2876_v5, %v2961_v12 }
 0x89a   :  { %6535 = vmatprep.mubr.f32.mxu0 %v2970_v13 }
 0x89b   :  { %6536 = vmatmul.mubr.f32.vlgmr.msra.gmra.mrb[52].mxu0 %v2971_v9 }
 0x89c   :  { %7078 = vmatpush3.bf16.msra.mxu0 %v7746_v60  ;;  %6568 = vmatprep.mubr.msk.f32.mxu0 %vm7386_vm3, %v7387_v63 }
 0x89d   :  { %7079 = vmatprep.subr.bf16.mxu0 %v7385_v59 }
 0x8a0   :  { %7081 = vmatpush3.bf16.msra.mxu0 %v7750_v62 }
 0x8a1   :  { %7088 = vmatprep.subr.bf16.mxu0 %v7385_v59 }
 0x96e   :  { %v6537_v21 = vpop.f32.mrb[52].mxu0 }
 0x96f   :  { %v7773_v24 = vadd.f32 %v6537_v21, %v5121_v18  ;;  %v3075_v0 = vpop.f32.mrb[53].mxu0 }
 0x970   :  { %v7775_v1 = vadd.f32 %v5121_v18, %v3075_v0 }
 0x972   :  { %v3165_v2 = vadd.f32 %v3161_v14, %v7775_v1 }
 0x974   :  { %7238 = vtanh.f32 %v3165_v2  ;;  %v3166_v6 = vmul.f32 0.5, %v3165_v2 }
 0x976   :  { %7240 = vtanh.f32 %v3166_v6 }
 0x97e   :  { %v7239_v4 = vpop.eup %7238 }
 0x97f   :  { %3173 = vrot.lane.b32.xlu0 %v7239_v4, %s7383_s22 }
 0x980   :  { %v7241_v7 = vpop.eup %7240 }
 0x981   :  { %v3168_v10 = vadd.f32 1.0, %v7241_v7 }
 0x983   :  { %v3169_v11 = vmul.f32 0.5, %v3168_v10 }
 0x985   :  { %v3171_v19 = vmul.f32 0.0, %v3169_v11 }
 0x9f1   :  { %v3174_v15 = vpop.permute.xlu0 %3173 }
 0x9f2   :  { %v3176_v16 = vmul.f32 %v3174_v15, %v3169_v11 }
 0x9f4   :  { %3178 = vrot.lane.b32.xlu0 %v3176_v16, %s7388_s10 }
 0xa66   :  { %v3179_v20 = vpop.permute.xlu0 %3178 }
 0xa67   :  { %v3181_v22 = vadd.f32 %v3179_v20, %v3171_v19 }
 0xa69   :  { %7242 = vtanh.f32 %v3181_v22  ;;  %v3276_v39 = vrot.slane %v3181_v22, 6 }
 0xa73   :  { %v7243_v23 = vpop.eup %7242 }
 0xa74   :  { %3184 = vrot.lane.b32.xlu1 %v7243_v23, %s7383_s22 }
 0xae6   :  { %v3185_v25 = vpop.permute.xlu1 %3184 }
 0xae7   :  { %v3187_v26 = vmul.f32 %v3185_v25, %v3169_v11 }
 0xae9   :  { %3189 = vrot.lane.b32.xlu1 %v3187_v26, %s7388_s10 }
 0xb5b   :  { %v3190_v27 = vpop.permute.xlu1 %3189 }
 0xb5c   :  { %3193 = vst.msk [vmem:[#allocation2] sm:$0x3] %vm3192_vm4, %v3190_v27  ;;  %6558 = vmatmul.mubr.msk.f32.vlgmr.msra.gmra.mrb[62].mxu1 %vm1595_vm2, %v3190_v27 }
 0xb5d   :  { %7084 = vmatpush3.bf16.msra.mxu1 %v7746_v60  ;;  %6579 = vmatprep.mubr.msk.f32.mxu1 %vm7386_vm3, %v7387_v63 }
 0xb5e   :  { %7085 = vmatprep.subr.bf16.mxu1 %v7385_v59 }
 0xb61   :  { %7087 = vmatpush3.bf16.msra.mxu1 %v7750_v62 }
 0xb62   :  { %7094 = vmatprep.subr.bf16.mxu1 %v7385_v59 }
 0xc2f   :  { %v3262_v28 = vpop.f32.mrb[62].mxu1 }
 0xc30   :  { %v3267_v29 = vrot.slane %v3262_v28, 6  ;;  %v6559_v30 = vpop.f32.mrb[63].mxu1 }
 0xc32   :  { %v3269_v31 = vadd.f32 %v3267_v29, %v7775_v1 }
 0xc34   :  { %7244 = vtanh.f32 %v3269_v31  ;;  %v3270_v33 = vmul.f32 0.5, %v3269_v31 }
 0xc36   :  { %7246 = vtanh.f32 %v3270_v33 }
 0xc3e   :  { %v7245_v32 = vpop.eup %7244 }
 0xc3f   :  { %3280 = vrot.lane.b32.xlu0 %v7245_v32, %s7383_s22 }
 0xc40   :  { %v7247_v34 = vpop.eup %7246 }
 0xc41   :  { %v3272_v35 = vadd.f32 1.0, %v7247_v34 }
 0xc43   :  { %v3273_v36 = vmul.f32 0.5, %v3272_v35 }
 0xc45   :  { %v3278_v40 = vmul.f32 %v3276_v39, %v3273_v36 }
 0xcb1   :  { %v3281_v37 = vpop.permute.xlu0 %3280 }
 0xcb2   :  { %v3283_v38 = vmul.f32 %v3281_v37, %v3273_v36 }
 0xcb4   :  { %3285 = vrot.lane.b32.xlu1 %v3283_v38, %s7388_s10 }
 0xd26   :  { %v3286_v41 = vpop.permute.xlu1 %3285 }
 0xd27   :  { %v3288_v42 = vadd.f32 %v3286_v41, %v3278_v40 }
 0xd29   :  { %7248 = vtanh.f32 %v3288_v42  ;;  %v3386_v61 = vrot.slane %v3288_v42, 6 }
 0xd33   :  { %v7249_v43 = vpop.eup %7248 }
 0xd34   :  { %3291 = vrot.lane.b32.xlu0 %v7249_v43, %s7383_s22 }
 0xda6   :  { %v3292_v44 = vpop.permute.xlu0 %3291 }
 0xda7   :  { %v7794_v46 = vmul.f32 %v3292_v44, %v3273_v36 }
 0xda9   :  { %v3301_v47 = vrot.slane %v7794_v46, 2 }
 0xdab   :  { %3302 = vrot.lane.b32.xlu1 %v3301_v47, %s7388_s10 }
 0xe1d   :  { %v3303_v48 = vpop.permute.xlu1 %3302 }
 0xe1e   :  { %6569 = vmatmul.mubr.msk.f32.vlgmr.msra.gmra.mrb[54].mxu0 %vm1595_vm2, %v3303_v48 }
 0xe1f   :  { %7090 = vmatpush3.bf16.msra.mxu0 %v7746_v60  ;;  %6590 = vmatprep.mubr.msk.f32.mxu0 %vm7386_vm3, %v7387_v63 }
 0xe20   :  { %7091 = vmatprep.subr.bf16.mxu0 %v7385_v59 }
 0xe23   :  { %7093 = vmatpush3.bf16.msra.mxu0 %v7750_v62 }
 0xe24   :  { %7100 = vmatprep.subr.bf16.mxu0 %v7385_v59 }
 0xef1   :  { %v3372_v45 = vpop.f32.mrb[54].mxu0 }
 0xef2   :  { %v3377_v49 = vrot.slane %v3372_v45, 4  ;;  %v6570_v50 = vpop.f32.mrb[55].mxu0 }
 0xef4   :  { %v3379_v51 = vadd.f32 %v3377_v49, %v7775_v1 }
 0xef6   :  { %7250 = vtanh.f32 %v3379_v51  ;;  %v3380_v53 = vmul.f32 0.5, %v3379_v51 }
 0xef8   :  { %7252 = vtanh.f32 %v3380_v53 }
 0xf00   :  { %v7251_v52 = vpop.eup %7250 }
 0xf01   :  { %3390 = vrot.lane.b32.xlu0 %v7251_v52, %s7383_s22 }
 0xf02   :  { %v7253_v54 = vpop.eup %7252 }
 0xf03   :  { %v3382_v55 = vadd.f32 1.0, %v7253_v54 }
 0xf05   :  { %v3383_v56 = vmul.f32 0.5, %v3382_v55 }
 0xf07   :  { %v3388_v3 = vmul.f32 %v3386_v61, %v3383_v56 }
 0xf73   :  { %v3391_v57 = vpop.permute.xlu0 %3390 }
 0xf74   :  { %v3393_v58 = vmul.f32 %v3391_v57, %v3383_v56 }
 0xf76   :  { %3395 = vrot.lane.b32.xlu1 %v3393_v58, %s7388_s10 }
 0xfe8   :  { %v3396_v5 = vpop.permute.xlu1 %3395 }
 0xfe9   :  { %v3398_v8 = vadd.f32 %v3396_v5, %v3388_v3 }
 0xfeb   :  { %7254 = vtanh.f32 %v3398_v8  ;;  %v3496_v19 = vrot.slane %v3398_v8, 6 }
 0xff5   :  { %v7255_v9 = vpop.eup %7254 }
 0xff6   :  { %3401 = vrot.lane.b32.xlu0 %v7255_v9, %s7383_s22 }
0x1068   :  { %v3402_v12 = vpop.permute.xlu0 %3401 }
0x1069   :  { %v7809_v13 = vmul.f32 %v3402_v12, %v3383_v56 }
0x106b   :  { %v3411_v14 = vrot.slane %v7809_v13, 4 }
0x106d   :  { %3412 = vrot.lane.b32.xlu1 %v3411_v14, %s7388_s10 }
0x10df   :  { %v3413_v17 = vpop.permute.xlu1 %3412 }
0x10e0   :  { %6580 = vmatmul.mubr.msk.f32.vlgmr.msra.gmra.mrb[64].mxu1 %vm1595_vm2, %v3413_v17 }
0x10e1   :  { %7096 = vmatpush3.bf16.msra.mxu1 %v7746_v60  ;;  %6601 = vmatprep.mubr.msk.f32.mxu1 %vm7386_vm3, %v7387_v63 }
0x10e2   :  { %7097 = vmatprep.subr.bf16.mxu1 %v7385_v59 }
0x10e5   :  { %7099 = vmatpush3.bf16.msra.mxu1 %v7750_v62 }
0x10e6   :  { %7106 = vmatprep.subr.bf16.mxu1 %v7385_v59 }
0x11b3   :  { %v3482_v18 = vpop.f32.mrb[64].mxu1 }
0x11b4   :  { %v3487_v21 = vrot.slane %v3482_v18, 2  ;;  %v6581_v0 = vpop.f32.mrb[65].mxu1 }
0x11b6   :  { %v3489_v2 = vadd.f32 %v3487_v21, %v7775_v1 }
0x11b8   :  { %7256 = vtanh.f32 %v3489_v2  ;;  %v3490_v6 = vmul.f32 0.5, %v3489_v2 }
0x11ba   :  { %7258 = vtanh.f32 %v3490_v6 }
0x11c2   :  { %v7257_v4 = vpop.eup %7256 }
0x11c3   :  { %3500 = vrot.lane.b32.xlu0 %v7257_v4, %s7383_s22 }
0x11c4   :  { %v7259_v7 = vpop.eup %7258 }
0x11c5   :  { %v3492_v10 = vadd.f32 1.0, %v7259_v7 }
0x11c7   :  { %v3493_v11 = vmul.f32 0.5, %v3492_v10 }
0x11c9   :  { %v3498_v20 = vmul.f32 %v3496_v19, %v3493_v11 }
0x1235   :  { %v3501_v15 = vpop.permute.xlu0 %3500 }
0x1236   :  { %v3503_v16 = vmul.f32 %v3501_v15, %v3493_v11 }
0x1238   :  { %3505 = vrot.lane.b32.xlu1 %v3503_v16, %s7388_s10 }
0x12aa   :  { %v3506_v22 = vpop.permute.xlu1 %3505 }
0x12ab   :  { %v3508_v23 = vadd.f32 %v3506_v22, %v3498_v20 }
0x12ad   :  { %7260 = vtanh.f32 %v3508_v23  ;;  %v3603_v39 = vrot.slane %v3508_v23, 6 }
0x12b7   :  { %v7261_v25 = vpop.eup %7260 }
0x12b8   :  { %3511 = vrot.lane.b32.xlu0 %v7261_v25, %s7383_s22 }
0x132a   :  { %v3512_v1 = vpop.permute.xlu0 %3511 }
0x132b   :  { %v7824_v26 = vmul.f32 %v3512_v1, %v3493_v11 }
0x132d   :  { %v3521_v27 = vrot.slane %v7824_v26, 6 }
0x132f   :  { %3522 = vrot.lane.b32.xlu1 %v3521_v27, %s7388_s10 }
0x13a1   :  { %v3523_v28 = vpop.permute.xlu1 %3522 }
0x13a2   :  { %6591 = vmatmul.mubr.msk.f32.vlgmr.msra.gmra.mrb[56].mxu0 %vm1595_vm2, %v3523_v28 }
0x13a3   :  { %7102 = vmatpush3.bf16.msra.mxu0 %v7746_v60  ;;  %6612 = vmatprep.mubr.msk.f32.mxu0 %vm7386_vm3, %v7387_v63 }
0x13a4   :  { %7103 = vmatprep.subr.bf16.mxu0 %v7385_v59 }
0x13a7   :  { %7105 = vmatpush3.bf16.msra.mxu0 %v7750_v62 }
0x1475   :  { %v3592_v29 = vpop.f32.mrb[56].mxu0 }
0x1476   :  { %v3596_v30 = vadd.f32 %v3592_v29, %v7773_v24  ;;  %v6592_v31 = vpop.f32.mrb[57].mxu0 }
0x1478   :  { %7262 = vtanh.f32 %v3596_v30  ;;  %v3597_v33 = vmul.f32 0.5, %v3596_v30 }
0x147a   :  { %7264 = vtanh.f32 %v3597_v33 }
0x1482   :  { %v7263_v32 = vpop.eup %7262 }
0x1483   :  { %3607 = vrot.lane.b32.xlu0 %v7263_v32, %s7383_s22 }
0x1484   :  { %v7265_v34 = vpop.eup %7264 }
0x1485   :  { %v3599_v35 = vadd.f32 1.0, %v7265_v34 }
0x1487   :  { %v3600_v36 = vmul.f32 0.5, %v3599_v35 }
0x1489   :  { %v3605_v40 = vmul.f32 %v3603_v39, %v3600_v36 }
0x14f5   :  { %v3608_v37 = vpop.permute.xlu0 %3607 }
0x14f6   :  { %v3610_v38 = vmul.f32 %v3608_v37, %v3600_v36 }
0x14f8   :  { %3612 = vrot.lane.b32.xlu1 %v3610_v38, %s7388_s10 }
0x156a   :  { %v3613_v41 = vpop.permute.xlu1 %3612 }
0x156b   :  { %v3615_v42 = vadd.f32 %v3613_v41, %v3605_v40 }
0x156d   :  { %7266 = vtanh.f32 %v3615_v42 }
0x1577   :  { %v7267_v43 = vpop.eup %7266 }
0x1578   :  { %3618 = vrot.lane.b32.xlu0 %v7267_v43, %s7383_s22 }
0x15ea   :  { %v3619_v44 = vpop.permute.xlu0 %3618 }
0x15eb   :  { %v3621_v47 = vmul.f32 %v3619_v44, %v3600_v36 }
0x15ed   :  { %3623 = vrot.lane.b32.xlu1 %v3621_v47, %s7388_s10 }
0x165f   :  { %v3624_v48 = vpop.permute.xlu1 %3623 }
0x1660   :  { %3626 = vst.msk [vmem:[#allocation2 + $0x8] sm:$0x3] %vm3192_vm4, %v3624_v48  ;;  %6602 = vmatmul.mubr.msk.f32.vlgmr.msra.gmra.mrb[66].mxu1 %vm1595_vm2, %v3624_v48  ;;  %v5516_v48 = vld [vmem:[#allocation3 + $0x100] sm:$0xff]  }
0x1661   :  { %7108 = vmatpush3.bf16.msra.mxu1 %v7746_v60  ;;  %6623 = vmatprep.mubr.msk.f32.mxu1 %vm7386_vm3, %v7387_v63 }
0x1662   :  { %7109 = vmatprep.subr.bf16.mxu1 %v7385_v59 }
0x1665   :  { %7111 = vmatpush3.bf16.msra.mxu1 %v7750_v62  ;;  %v3709_v62 = vrot.slane %v3615_v42, 6 }
0x1666   :  { %7120 = vmatprep.subr.bf16.mxu1 %v7385_v59 }
0x1733   :  { %v3695_v45 = vpop.f32.mrb[66].mxu1 }
0x1734   :  { %v3700_v49 = vrot.slane %v3695_v45, 6  ;;  %v6603_v50 = vpop.f32.mrb[67].mxu1  ;;  %v7880_v45 = vld [vmem:[#allocation3 + $0x108] sm:$0xff]  }
0x1736   :  { %v3702_v51 = vadd.f32 %v3700_v49, %v7773_v24  ;;  %v7884_v49 = vld [vmem:[#allocation3 + $0x110] sm:$0xff]  }
0x1738   :  { %7268 = vtanh.f32 %v3702_v51  ;;  %v3703_v53 = vmul.f32 0.5, %v3702_v51 }
0x173a   :  { %7270 = vtanh.f32 %v3703_v53 }
0x1742   :  { %v7269_v52 = vpop.eup %7268 }
0x1743   :  { %3713 = vrot.lane.b32.xlu0 %v7269_v52, %s7383_s22 }
0x1744   :  { %v7271_v60 = vpop.eup %7270 }
0x1745   :  { %v3705_v54 = vadd.f32 1.0, %v7271_v60 }
0x1747   :  { %v3706_v55 = vmul.f32 0.5, %v3705_v54 }
0x1749   :  { %v3711_v58 = vmul.f32 %v3709_v62, %v3706_v55 }
0x17b5   :  { %v3714_v56 = vpop.permute.xlu0 %3713 }
0x17b6   :  { %v3716_v57 = vmul.f32 %v3714_v56, %v3706_v55 }
0x17b8   :  { %3718 = vrot.lane.b32.xlu1 %v3716_v57, %s7388_s10  ;;  %v5129_v57 = vld [vmem:[%s8016_s2 + $0x20] ss:$0 sm:$0xff] }
0x182a   :  { %v3719_v61 = vpop.permute.xlu1 %3718 }
0x182b   :  { %v3721_v3 = vadd.f32 %v3719_v61, %v3711_v58 }
0x182d   :  { %7272 = vtanh.f32 %v3721_v3  ;;  %v3818_v16 = vrot.slane %v3721_v3, 6 }
0x1837   :  { %v7273_v5 = vpop.eup %7272 }
0x1838   :  { %3724 = vrot.lane.b32.xlu0 %v7273_v5, %s7383_s22 }
0x18aa   :  { %v3725_v8 = vpop.permute.xlu0 %3724 }
0x18ab   :  { %v7851_v9 = vmul.f32 %v3725_v8, %v3706_v55 }
0x18ad   :  { %v3733_v12 = vrot.slane %v7851_v9, 2 }
0x18af   :  { %3734 = vrot.lane.b32.xlu1 %v3733_v12, %s7388_s10 }
0x1921   :  { %v3735_v14 = vpop.permute.xlu1 %3734 }
0x1922   :  { %6613 = vmatmul.mubr.msk.f32.vlgmr.msra.gmra.mrb[58].mxu0 %vm1595_vm2, %v3735_v14 }
0x19f5   :  { %v3804_v17 = vpop.f32.mrb[58].mxu0 }
0x19f6   :  { %v3809_v18 = vrot.slane %v3804_v17, 4  ;;  %v6614_v21 = vpop.f32.mrb[59].mxu0 }
0x19f8   :  { %v3811_v0 = vadd.f32 %v3809_v18, %v7773_v24 }
0x19fa   :  { %7274 = vtanh.f32 %v3811_v0  ;;  %v3812_v4 = vmul.f32 0.5, %v3811_v0 }
0x19fc   :  { %7276 = vtanh.f32 %v3812_v4 }
0x1a04   :  { %v7275_v2 = vpop.eup %7274 }
0x1a05   :  { %3822 = vrot.lane.b32.xlu0 %v7275_v2, %s7383_s22 }
0x1a06   :  { %v7277_v6 = vpop.eup %7276 }
0x1a07   :  { %v3814_v7 = vadd.f32 1.0, %v7277_v6 }
0x1a09   :  { %v3815_v10 = vmul.f32 0.5, %v3814_v7 }
0x1a0b   :  { %v3820_v19 = vmul.f32 %v3818_v16, %v3815_v10 }
0x1a77   :  { %v3823_v11 = vpop.permute.xlu0 %3822 }
0x1a78   :  { %v3825_v15 = vmul.f32 %v3823_v11, %v3815_v10 }
0x1a7a   :  { %3827 = vrot.lane.b32.xlu1 %v3825_v15, %s7388_s10 }
0x1aec   :  { %v3828_v20 = vpop.permute.xlu1 %3827 }
0x1aed   :  { %v3830_v22 = vadd.f32 %v3828_v20, %v3820_v19 }
0x1aef   :  { %7278 = vtanh.f32 %v3830_v22 }
0x1af9   :  { %v7279_v23 = vpop.eup %7278 }
0x1afa   :  { %3833 = vrot.lane.b32.xlu0 %v7279_v23, %s7383_s22 }
0x1b6c   :  { %v3834_v25 = vpop.permute.xlu0 %3833 }
0x1b6d   :  { %v3836_v1 = vmul.f32 %v3834_v25, %v3815_v10 }
0x1b6f   :  { %v3842_v27 = vrot.slane %v3836_v1, 4 }
0x1b71   :  { %3843 = vrot.lane.b32.xlu1 %v3842_v27, %s7388_s10 }
0x1be3   :  { %v3844_v28 = vpop.permute.xlu1 %3843 }
0x1be4   :  { %6624 = vmatmul.mubr.msk.f32.vlgmr.msra.gmra.mrb[68].mxu1 %vm1595_vm2, %v3844_v28 }
0x1be5   :  { %6645 = vmatprep.mubr.msk.f32.mxu1 %vm7386_vm3, %v7387_v63  ;;  %7122 = vmatpush3.bf16.msra.mxu1 %v7880_v45 }
0x1be6   :  { %7123 = vmatprep.subr.bf16.mxu1 %v7385_v59 }
0x1be9   :  { %7125 = vmatpush3.bf16.msra.mxu1 %v7884_v49 }
0x1bea   :  { %7132 = vmatprep.subr.bf16.mxu1 %v7385_v59 }
0x1bec   :  { %6646 = vmatmul.mubr.f32.vlgmr.msra.gmra.mrb[70].mxu1 %v7387_v63 }
0x1bed   :  { %7134 = vmatpush3.bf16.msra.mxu1 %v7880_v45  ;;  %6667 = vmatprep.mubr.msk.f32.mxu1 %vm7386_vm3, %v7387_v63 }
0x1bee   :  { %7135 = vmatprep.subr.bf16.mxu1 %v7385_v59 }
0x1bf1   :  { %7137 = vmatpush3.bf16.msra.mxu1 %v7884_v49 }
0x1bf2   :  { %7144 = vmatprep.subr.bf16.mxu1 %v7385_v59 }
0x1cb7   :  { %v3913_v29 = vpop.f32.mrb[68].mxu1 }
0x1cb8   :  { %v3918_v30 = vrot.slane %v3913_v29, 2  ;;  %v6625_v31 = vpop.f32.mrb[69].mxu1 }
0x1cba   :  { %v3920_v32 = vadd.f32 %v3918_v30, %v7773_v24  ;;  %v3927_v24 = vrot.slane %v3830_v22, 6 }
0x1cbc   :  { %7280 = vtanh.f32 %v3920_v32  ;;  %v3921_v34 = vmul.f32 0.5, %v3920_v32 }
0x1cbe   :  { %7282 = vtanh.f32 %v3921_v34 }
0x1cbf   :  { %v4121_v55 = vpop.f32.mrb[70].mxu1 }
0x1cc0   :  { %v6647_v56 = vpop.f32.mrb[71].mxu1 }
0x1cc6   :  { %v7281_v33 = vpop.eup %7280 }
0x1cc7   :  { %3931 = vrot.lane.b32.xlu0 %v7281_v33, %s7383_s22 }
0x1cc8   :  { %v7283_v35 = vpop.eup %7282 }
0x1cc9   :  { %v3923_v36 = vadd.f32 1.0, %v7283_v35 }
0x1ccb   :  { %v3924_v37 = vmul.f32 0.5, %v3923_v36 }
0x1ccd   :  { %v3929_v40 = vmul.f32 %v3927_v24, %v3924_v37 }
0x1d39   :  { %v3932_v38 = vpop.permute.xlu0 %3931 }
0x1d3a   :  { %v3934_v39 = vmul.f32 %v3932_v38, %v3924_v37 }
0x1d3c   :  { %3936 = vrot.lane.b32.xlu1 %v3934_v39, %s7388_s10 }
0x1d40   :  { %3296 = vrot.lane.b32.xlu1 %v7794_v46, %s7388_s10 }
0x1d44   :  { %3516 = vrot.lane.b32.xlu1 %v7824_v26, %s7388_s10  ;;  %v5515_v26 = vld [vmem:[#allocation3 + $0xf8] sm:$0xff]  }
0x1d45   :  { %7113 = vmatprep.subr.bf16.mxu0 %v5515_v26 }
0x1d46   :  { %7115 = vmatpush3.bf16.msra.mxu0 %v5515_v26 }
0x1d47   :  { %7117 = vmatprep.subr.bf16.mxu0 %v5516_v48 }
0x1d48   :  { %3838 = vrot.lane.b32.xlu1 %v3836_v1, %s7388_s10 }
0x1d4a   :  { %7119 = vmatpush3.bf16.msra.mxu0 %v5516_v48 }
0x1d4b   :  { %7126 = vmatprep.subr.bf16.mxu0 %v7385_v59 }
0x1dae   :  { %v3937_v41 = vpop.permute.xlu1 %3936 }
0x1daf   :  { %v3939_v42 = vadd.f32 %v3937_v41, %v3929_v40 }
0x1db1   :  { %7284 = vtanh.f32 %v3939_v42 }
0x1db2   :  { %v3297_v43 = vpop.permute.xlu1 %3296 }
0x1db3   :  { %3300 = vst.msk [vmem:[#allocation2] sm:$0xc] %vm3299_vm5, %v3297_v43 }
0x1db6   :  { %v3517_v44 = vpop.permute.xlu1 %3516 }
0x1db7   :  { %3520 = vst.msk [vmem:[#allocation2] sm:$0xc0] %vm3519_vm6, %v3517_v44 }
0x1dba   :  { %v3839_v46 = vpop.permute.xlu1 %3838 }
0x1dbb   :  { %v7285_v47 = vpop.eup %7284  ;;  %3841 = vst.msk [vmem:[#allocation2 + $0x8] sm:$0x30] %vm3409_vm7, %v3839_v46 }
0x1dbc   :  { %3942 = vrot.lane.b32.xlu0 %v7285_v47, %s7383_s22 }
0x1dc0   :  { %3406 = vrot.lane.b32.xlu0 %v7809_v13, %s7388_s10 }
0x1dc4   :  { %3729 = vrot.lane.b32.xlu0 %v7851_v9, %s7388_s10 }
0x1e2e   :  { %v3943_v13 = vpop.permute.xlu0 %3942 }
0x1e2f   :  { %v3945_v50 = vmul.f32 %v3943_v13, %v3924_v37 }
0x1e31   :  { %3947 = vrot.lane.b32.xlu0 %v3945_v50, %s7388_s10 }
0x1e32   :  { %v3407_v51 = vpop.permute.xlu0 %3406 }
0x1e33   :  { %3410 = vst.msk [vmem:[#allocation2] sm:$0x30] %vm3409_vm7, %v3407_v51 }
0x1e36   :  { %v3730_v52 = vpop.permute.xlu0 %3729 }
0x1e37   :  { %3732 = vst.msk [vmem:[#allocation2 + $0x8] sm:$0xc] %vm3299_vm5, %v3730_v52 }
0x1e3a   :  { %v3951_v53 = vld [vmem:[#allocation2] sm:$0xff] }
0x1e3b   :  { %6634 = vmatprep.mubr.msk.f32.mxu0 %vm1595_vm2, %v3951_v53 }
0x1ea3   :  { %v3948_v60 = vpop.permute.xlu0 %3947 }
0x1ea4   :  { %3950 = vst.msk [vmem:[#allocation2 + $0x8] sm:$0xc0] %vm3519_vm6, %v3948_v60 }
0x1eab   :  { %v3952_v54 = vld [vmem:[#allocation2 + $0x8] sm:$0xff] }
0x1eac   :  { %6635 = vmatmul.mubr.msk.f32.vlgmr.msra.gmra.mrb[60].mxu0 %vm1595_vm2, %v3952_v54 }
0x1ead   :  { %7128 = vmatpush3.bf16.msra.mxu0 %v7880_v45  ;;  %6656 = vmatprep.mubr.msk.f32.mxu0 %vm7386_vm3, %v7387_v63 }
0x1eae   :  { %7129 = vmatprep.subr.bf16.mxu0 %v7385_v59 }
0x1eb1   :  { %7131 = vmatpush3.bf16.msra.mxu0 %v7884_v49 }
0x1eb2   :  { %7138 = vmatprep.subr.bf16.mxu0 %v7385_v59 }
0x1f7f   :  { %v6636_v62 = vpop.f32.mrb[60].mxu0 }
0x1f80   :  { %v7911_v58 = vadd.f32 %v6636_v62, %v5129_v57  ;;  %v4038_v61 = vpop.f32.mrb[61].mxu0 }
0x1f81   :  { %v7913_v3 = vadd.f32 %v5129_v57, %v4038_v61 }
0x1f83   :  { %v4125_v5 = vadd.f32 %v4121_v55, %v7913_v3 }
0x1f85   :  { %7286 = vtanh.f32 %v4125_v5  ;;  %v4126_v9 = vmul.f32 0.5, %v4125_v5 }
0x1f87   :  { %7288 = vtanh.f32 %v4126_v9 }
0x1f8f   :  { %v7287_v8 = vpop.eup %7286 }
0x1f90   :  { %4133 = vrot.lane.b32.xlu1 %v7287_v8, %s7383_s22 }
0x1f91   :  { %v7289_v12 = vpop.eup %7288 }
0x1f92   :  { %v4128_v14 = vadd.f32 1.0, %v7289_v12 }
0x1f94   :  { %v4129_v17 = vmul.f32 0.5, %v4128_v14 }
0x1f96   :  { %v4131_v0 = vmul.f32 0.0, %v4129_v17 }
0x2002   :  { %v4134_v18 = vpop.permute.xlu1 %4133 }
0x2003   :  { %v4136_v21 = vmul.f32 %v4134_v18, %v4129_v17 }
0x2005   :  { %4138 = vrot.lane.b32.xlu0 %v4136_v21, %s7388_s10 }
0x2077   :  { %v4139_v2 = vpop.permute.xlu0 %4138 }
0x2078   :  { %v4141_v4 = vadd.f32 %v4139_v2, %v4131_v0 }
0x207a   :  { %7290 = vtanh.f32 %v4141_v4  ;;  %v4234_v30 = vrot.slane %v4141_v4, 6 }
0x2084   :  { %v7291_v6 = vpop.eup %7290 }
0x2085   :  { %4144 = vrot.lane.b32.xlu1 %v7291_v6, %s7383_s22 }
0x20f7   :  { %v4145_v7 = vpop.permute.xlu1 %4144 }
0x20f8   :  { %v7919_v10 = vmul.f32 %v4145_v7, %v4129_v17 }
0x20fa   :  { %4150 = vrot.lane.b32.xlu0 %v7919_v10, %s7388_s10 }
0x216c   :  { %v4151_v11 = vpop.permute.xlu0 %4150 }
0x216d   :  { %6657 = vmatmul.mubr.msk.f32.vlgmr.msra.gmra.mrb[62].mxu0 %vm1595_vm2, %v4151_v11 }
0x216e   :  { %7140 = vmatpush3.bf16.msra.mxu0 %v7880_v45  ;;  %6678 = vmatprep.mubr.msk.f32.mxu0 %vm7386_vm3, %v7387_v63 }
0x216f   :  { %7141 = vmatprep.subr.bf16.mxu0 %v7385_v59 }
0x2172   :  { %7143 = vmatpush3.bf16.msra.mxu0 %v7884_v49 }
0x2173   :  { %7150 = vmatprep.subr.bf16.mxu0 %v7385_v59 }
0x2240   :  { %v4220_v15 = vpop.f32.mrb[62].mxu0 }
0x2241   :  { %v4225_v16 = vrot.slane %v4220_v15, 6  ;;  %v6658_v19 = vpop.f32.mrb[63].mxu0 }
0x2243   :  { %v4227_v20 = vadd.f32 %v4225_v16, %v7913_v3 }
0x2245   :  { %7292 = vtanh.f32 %v4227_v20  ;;  %v4228_v23 = vmul.f32 0.5, %v4227_v20 }
0x2247   :  { %7294 = vtanh.f32 %v4228_v23 }
0x224f   :  { %v7293_v22 = vpop.eup %7292 }
0x2250   :  { %4238 = vrot.lane.b32.xlu1 %v7293_v22, %s7383_s22 }
0x2251   :  { %v7295_v25 = vpop.eup %7294 }
0x2252   :  { %v4230_v1 = vadd.f32 1.0, %v7295_v25 }
0x2254   :  { %v4231_v27 = vmul.f32 0.5, %v4230_v1 }
0x2256   :  { %v4236_v31 = vmul.f32 %v4234_v30, %v4231_v27 }
0x22c2   :  { %v4239_v28 = vpop.permute.xlu1 %4238 }
0x22c3   :  { %v4241_v29 = vmul.f32 %v4239_v28, %v4231_v27 }
0x22c5   :  { %4243 = vrot.lane.b32.xlu0 %v4241_v29, %s7388_s10 }
0x2337   :  { %v4244_v32 = vpop.permute.xlu0 %4243 }
0x2338   :  { %v4246_v33 = vadd.f32 %v4244_v32, %v4236_v31 }
0x233a   :  { %7296 = vtanh.f32 %v4246_v33  ;;  %v4341_v13 = vrot.slane %v4246_v33, 6 }
0x2344   :  { %v7297_v34 = vpop.eup %7296 }
0x2345   :  { %4249 = vrot.lane.b32.xlu1 %v7297_v34, %s7383_s22 }
0x23b7   :  { %v4250_v35 = vpop.permute.xlu1 %4249 }
0x23b8   :  { %v4252_v36 = vmul.f32 %v4250_v35, %v4231_v27 }
0x23ba   :  { %v4254_v37 = vrot.slane %v4252_v36, 2 }
0x23bc   :  { %4257 = vrot.lane.b32.xlu0 %v4254_v37, %s7388_s10  ;;  %v4256_v55 = vadd.f32 %v4254_v37, %v7919_v10 }
0x242e   :  { %v4258_v38 = vpop.permute.xlu0 %4257 }
0x242f   :  { %6668 = vmatmul.mubr.msk.f32.vlgmr.msra.gmra.mrb[72].mxu1 %vm1595_vm2, %v4258_v38 }
0x2430   :  { %7146 = vmatpush3.bf16.msra.mxu1 %v7880_v45  ;;  %6689 = vmatprep.mubr.msk.f32.mxu1 %vm7386_vm3, %v7387_v63 }
0x2431   :  { %7147 = vmatprep.subr.bf16.mxu1 %v7385_v59 }
0x2434   :  { %7149 = vmatpush3.bf16.msra.mxu1 %v7884_v49 }
0x2435   :  { %7156 = vmatprep.subr.bf16.mxu1 %v7385_v59 }
0x2502   :  { %v4327_v39 = vpop.f32.mrb[72].mxu1 }
0x2503   :  { %v4332_v24 = vrot.slane %v4327_v39, 4  ;;  %v6669_v40 = vpop.f32.mrb[73].mxu1 }
0x2505   :  { %v4334_v41 = vadd.f32 %v4332_v24, %v7913_v3 }
0x2507   :  { %7298 = vtanh.f32 %v4334_v41  ;;  %v4335_v43 = vmul.f32 0.5, %v4334_v41 }
0x2509   :  { %7300 = vtanh.f32 %v4335_v43 }
0x2511   :  { %v7299_v42 = vpop.eup %7298 }
0x2512   :  { %4345 = vrot.lane.b32.xlu1 %v7299_v42, %s7383_s22 }
0x2513   :  { %v7301_v44 = vpop.eup %7300 }
0x2514   :  { %v4337_v46 = vadd.f32 1.0, %v7301_v44 }
0x2516   :  { %v4338_v47 = vmul.f32 0.5, %v4337_v46 }
0x2518   :  { %v4343_v50 = vmul.f32 %v4341_v13, %v4338_v47 }
0x2584   :  { %v4346_v26 = vpop.permute.xlu1 %4345 }
0x2585   :  { %v4348_v48 = vmul.f32 %v4346_v26, %v4338_v47 }
0x2587   :  { %4350 = vrot.lane.b32.xlu0 %v4348_v48, %s7388_s10 }
0x25f9   :  { %v4351_v51 = vpop.permute.xlu0 %4350 }
0x25fa   :  { %v4353_v52 = vadd.f32 %v4351_v51, %v4343_v50 }
0x25fc   :  { %7302 = vtanh.f32 %v4353_v52  ;;  %v4448_v4 = vrot.slane %v4353_v52, 6 }
0x2606   :  { %v7303_v53 = vpop.eup %7302 }
0x2607   :  { %4356 = vrot.lane.b32.xlu1 %v7303_v53, %s7383_s22 }
0x2679   :  { %v4357_v60 = vpop.permute.xlu1 %4356 }
0x267a   :  { %v4359_v54 = vmul.f32 %v4357_v60, %v4338_v47 }
0x267c   :  { %v4361_v56 = vrot.slane %v4359_v54, 4 }
0x267e   :  { %v4363_v57 = vadd.f32 %v4361_v56, %v4256_v55  ;;  %4364 = vrot.lane.b32.xlu0 %v4361_v56, %s7388_s10 }
0x26f0   :  { %v4365_v62 = vpop.permute.xlu0 %4364 }
0x26f1   :  { %6679 = vmatmul.mubr.msk.f32.vlgmr.msra.gmra.mrb[64].mxu0 %vm1595_vm2, %v4365_v62 }
0x26f2   :  { %7152 = vmatpush3.bf16.msra.mxu0 %v7880_v45  ;;  %6700 = vmatprep.mubr.msk.f32.mxu0 %vm7386_vm3, %v7387_v63 }
0x26f3   :  { %7153 = vmatprep.subr.bf16.mxu0 %v7385_v59 }
0x26f6   :  { %7155 = vmatpush3.bf16.msra.mxu0 %v7884_v49 }
0x26f7   :  { %7162 = vmatprep.subr.bf16.mxu0 %v7385_v59 }
0x27c4   :  { %v4434_v61 = vpop.f32.mrb[64].mxu0 }
0x27c5   :  { %v4439_v5 = vrot.slane %v4434_v61, 2  ;;  %v6680_v8 = vpop.f32.mrb[65].mxu0 }
0x27c7   :  { %v4441_v9 = vadd.f32 %v4439_v5, %v7913_v3 }
0x27c9   :  { %7304 = vtanh.f32 %v4441_v9  ;;  %v4442_v14 = vmul.f32 0.5, %v4441_v9 }
0x27cb   :  { %7306 = vtanh.f32 %v4442_v14 }
0x27d3   :  { %v7305_v12 = vpop.eup %7304 }
0x27d4   :  { %4452 = vrot.lane.b32.xlu1 %v7305_v12, %s7383_s22 }
0x27d5   :  { %v7307_v17 = vpop.eup %7306 }
0x27d6   :  { %v4444_v18 = vadd.f32 1.0, %v7307_v17 }
0x27d8   :  { %v4445_v21 = vmul.f32 0.5, %v4444_v18 }
0x27da   :  { %v4450_v6 = vmul.f32 %v4448_v4, %v4445_v21 }
0x2846   :  { %v4453_v0 = vpop.permute.xlu1 %4452 }
0x2847   :  { %v4455_v2 = vmul.f32 %v4453_v0, %v4445_v21 }
0x2849   :  { %4457 = vrot.lane.b32.xlu0 %v4455_v2, %s7388_s10 }
0x28bb   :  { %v4458_v7 = vpop.permute.xlu0 %4457 }
0x28bc   :  { %v4460_v10 = vadd.f32 %v4458_v7, %v4450_v6 }
0x28be   :  { %7308 = vtanh.f32 %v4460_v10  ;;  %v4552_v33 = vrot.slane %v4460_v10, 6 }
0x28c8   :  { %v7309_v11 = vpop.eup %7308 }
0x28c9   :  { %4463 = vrot.lane.b32.xlu1 %v7309_v11, %s7383_s22 }
0x293b   :  { %v4464_v3 = vpop.permute.xlu1 %4463 }
0x293c   :  { %v4466_v15 = vmul.f32 %v4464_v3, %v4445_v21 }
0x293e   :  { %v4468_v16 = vrot.slane %v4466_v15, 6 }
0x2940   :  { %v4470_v19 = vadd.f32 %v4468_v16, %v4363_v57  ;;  %4471 = vrot.lane.b32.xlu0 %v4468_v16, %s7388_s10 }
0x29b2   :  { %v4472_v20 = vpop.permute.xlu0 %4471 }
0x29b3   :  { %6690 = vmatmul.mubr.msk.f32.vlgmr.msra.gmra.mrb[74].mxu1 %vm1595_vm2, %v4472_v20 }
0x29b4   :  { %7158 = vmatpush3.bf16.msra.mxu1 %v7880_v45  ;;  %6711 = vmatprep.mubr.msk.f32.mxu1 %vm7386_vm3, %v7387_v63 }
0x29b5   :  { %7159 = vmatprep.subr.bf16.mxu1 %v7385_v59 }
0x29b8   :  { %7161 = vmatpush3.bf16.msra.mxu1 %v7884_v49 }
0x29b9   :  { %7168 = vmatprep.subr.bf16.mxu1 %v7385_v59 }
0x2a86   :  { %v4541_v22 = vpop.f32.mrb[74].mxu1 }
0x2a87   :  { %v4545_v23 = vadd.f32 %v4541_v22, %v7911_v58  ;;  %v6691_v25 = vpop.f32.mrb[75].mxu1 }
0x2a89   :  { %7310 = vtanh.f32 %v4545_v23  ;;  %v4546_v27 = vmul.f32 0.5, %v4545_v23 }
0x2a8b   :  { %7312 = vtanh.f32 %v4546_v27 }
0x2a93   :  { %v7311_v1 = vpop.eup %7310 }
0x2a94   :  { %4556 = vrot.lane.b32.xlu1 %v7311_v1, %s7383_s22 }
0x2a95   :  { %v7313_v28 = vpop.eup %7312 }
0x2a96   :  { %v4548_v29 = vadd.f32 1.0, %v7313_v28 }
0x2a98   :  { %v4549_v30 = vmul.f32 0.5, %v4548_v29 }
0x2a9a   :  { %v4554_v34 = vmul.f32 %v4552_v33, %v4549_v30 }
0x2b06   :  { %v4557_v31 = vpop.permute.xlu1 %4556 }
0x2b07   :  { %v4559_v32 = vmul.f32 %v4557_v31, %v4549_v30 }
0x2b09   :  { %4561 = vrot.lane.b32.xlu0 %v4559_v32, %s7388_s10 }
0x2b7b   :  { %v4562_v35 = vpop.permute.xlu0 %4561 }
0x2b7c   :  { %v4564_v36 = vadd.f32 %v4562_v35, %v4554_v34 }
0x2b7e   :  { %7314 = vtanh.f32 %v4564_v36  ;;  %v4657_v51 = vrot.slane %v4564_v36, 6 }
0x2b88   :  { %v7315_v37 = vpop.eup %7314 }
0x2b89   :  { %4567 = vrot.lane.b32.xlu1 %v7315_v37, %s7383_s22  ;;  %v5519_v37 = vld [vmem:[#allocation3 + $0x118] sm:$0xff]  }
0x2bfb   :  { %v4568_v38 = vpop.permute.xlu1 %4567 }
0x2bfc   :  { %v4570_v39 = vmul.f32 %v4568_v38, %v4549_v30 }
0x2bfe   :  { %v4571_v24 = vadd.f32 %v4570_v39, %v4470_v19  ;;  %4573 = vrot.lane.b32.xlu0 %v4570_v39, %s7388_s10 }
0x2c70   :  { %v4574_v40 = vpop.permute.xlu0 %4573 }
0x2c71   :  { %6701 = vmatmul.mubr.msk.f32.vlgmr.msra.gmra.mrb[66].mxu0 %vm1595_vm2, %v4574_v40 }
0x2c72   :  { %7164 = vmatpush3.bf16.msra.mxu0 %v7880_v45  ;;  %6722 = vmatprep.mubr.msk.f32.mxu0 %vm7386_vm3, %v7387_v63 }
0x2c73   :  { %7165 = vmatprep.subr.bf16.mxu0 %v7385_v59 }
0x2c76   :  { %7167 = vmatpush3.bf16.msra.mxu0 %v7884_v49 }
0x2d44   :  { %v4643_v41 = vpop.f32.mrb[66].mxu0 }
0x2d45   :  { %v4648_v42 = vrot.slane %v4643_v41, 6  ;;  %v6702_v43 = vpop.f32.mrb[67].mxu0 }
0x2d46   :  { %v5139_v43 = vld [vmem:[%s8016_s2 + $0x28] ss:$0 sm:$0xff] }
0x2d47   :  { %v4650_v44 = vadd.f32 %v4648_v42, %v7911_v58 }
0x2d49   :  { %7316 = vtanh.f32 %v4650_v44  ;;  %v4651_v47 = vmul.f32 0.5, %v4650_v44 }
0x2d4b   :  { %7318 = vtanh.f32 %v4651_v47 }
0x2d53   :  { %v7317_v46 = vpop.eup %7316 }
0x2d54   :  { %4661 = vrot.lane.b32.xlu1 %v7317_v46, %s7383_s22 }
0x2d55   :  { %v7319_v26 = vpop.eup %7318 }
0x2d56   :  { %v4653_v45 = vadd.f32 1.0, %v7319_v26 }
0x2d58   :  { %v4654_v48 = vmul.f32 0.5, %v4653_v45 }
0x2d5a   :  { %v4659_v49 = vmul.f32 %v4657_v51, %v4654_v48 }
0x2dc6   :  { %v4662_v13 = vpop.permute.xlu1 %4661 }
0x2dc7   :  { %v4664_v50 = vmul.f32 %v4662_v13, %v4654_v48 }
0x2dc9   :  { %4666 = vrot.lane.b32.xlu0 %v4664_v50, %s7388_s10 }
0x2e3b   :  { %v4667_v52 = vpop.permute.xlu0 %4666 }
0x2e3c   :  { %v4669_v53 = vadd.f32 %v4667_v52, %v4659_v49 }
0x2e3e   :  { %7320 = vtanh.f32 %v4669_v53  ;;  %v4764_v4 = vrot.slane %v4669_v53, 6 }
0x2e48   :  { %v7321_v60 = vpop.eup %7320 }
0x2e49   :  { %4672 = vrot.lane.b32.xlu1 %v7321_v60, %s7383_s22 }
0x2ebb   :  { %v4673_v54 = vpop.permute.xlu1 %4672 }
0x2ebc   :  { %v4675_v55 = vmul.f32 %v4673_v54, %v4654_v48 }
0x2ebe   :  { %v4677_v56 = vrot.slane %v4675_v55, 2 }
0x2ec0   :  { %v4679_v57 = vadd.f32 %v4677_v56, %v4571_v24  ;;  %4680 = vrot.lane.b32.xlu0 %v4677_v56, %s7388_s10 }
0x2f32   :  { %v4681_v62 = vpop.permute.xlu0 %4680 }
0x2f33   :  { %6712 = vmatmul.mubr.msk.f32.vlgmr.msra.gmra.mrb[76].mxu1 %vm1595_vm2, %v4681_v62 }
0x2f34   :  { %6733 = vmatprep.mubr.msk.f32.mxu1 %vm7386_vm3, %v7387_v63  ;;  %7170 = vmatpush3.bf16.msra.mxu1 %v5519_v37 }
0x2f35   :  { %7171 = vmatprep.subr.bf16.mxu1 %v7385_v59 }
0x3006   :  { %v4750_v61 = vpop.f32.mrb[76].mxu1 }
0x3007   :  { %v4755_v5 = vrot.slane %v4750_v61, 4  ;;  %v6713_v8 = vpop.f32.mrb[77].mxu1 }
0x3009   :  { %v4757_v9 = vadd.f32 %v4755_v5, %v7911_v58 }
0x300b   :  { %7322 = vtanh.f32 %v4757_v9  ;;  %v4758_v14 = vmul.f32 0.5, %v4757_v9 }
0x300d   :  { %7324 = vtanh.f32 %v4758_v14 }
0x3015   :  { %v7323_v12 = vpop.eup %7322 }
0x3016   :  { %4768 = vrot.lane.b32.xlu1 %v7323_v12, %s7383_s22 }
0x3017   :  { %v7325_v17 = vpop.eup %7324 }
0x3018   :  { %v4760_v18 = vadd.f32 1.0, %v7325_v17 }
0x301a   :  { %v4761_v21 = vmul.f32 0.5, %v4760_v18 }
0x301c   :  { %v4766_v63 = vmul.f32 %v4764_v4, %v4761_v21 }
0x3088   :  { %v4769_v0 = vpop.permute.xlu1 %4768 }
0x3089   :  { %v4771_v2 = vmul.f32 %v4769_v0, %v4761_v21 }
0x308b   :  { %4773 = vrot.lane.b32.xlu0 %v4771_v2, %s7388_s10 }
0x30fd   :  { %v4774_v6 = vpop.permute.xlu0 %4773 }
0x30fe   :  { %v4776_v7 = vadd.f32 %v4774_v6, %v4766_v63 }
0x3100   :  { %7326 = vtanh.f32 %v4776_v7  ;;  %v4871_v33 = vrot.slane %v4776_v7, 6 }
0x310a   :  { %v7327_v10 = vpop.eup %7326 }
0x310b   :  { %4779 = vrot.lane.b32.xlu1 %v7327_v10, %s7383_s22 }
0x317d   :  { %v4780_v11 = vpop.permute.xlu1 %4779 }
0x317e   :  { %v4782_v3 = vmul.f32 %v4780_v11, %v4761_v21 }
0x3180   :  { %v4784_v15 = vrot.slane %v4782_v3, 4 }
0x3182   :  { %v4786_v16 = vadd.f32 %v4784_v15, %v4679_v57  ;;  %4787 = vrot.lane.b32.xlu0 %v4784_v15, %s7388_s10 }
0x31f4   :  { %v4788_v19 = vpop.permute.xlu0 %4787 }
0x31f5   :  { %6723 = vmatmul.mubr.msk.f32.vlgmr.msra.gmra.mrb[68].mxu0 %vm1595_vm2, %v4788_v19 }
0x32c8   :  { %v4857_v20 = vpop.f32.mrb[68].mxu0 }
0x32c9   :  { %v4862_v22 = vrot.slane %v4857_v20, 2  ;;  %v6724_v23 = vpop.f32.mrb[69].mxu0 }
0x32cb   :  { %v4864_v25 = vadd.f32 %v4862_v22, %v7911_v58  ;;  %v5520_v58 = vld [vmem:[#allocation3 + $0x120] sm:$0xff]  }
0x32cc   :  { %7173 = vmatpush3.bf16.msra.mxu1 %v5520_v58 }
0x32cd   :  { %7328 = vtanh.f32 %v4864_v25  ;;  %v4865_v27 = vmul.f32 0.5, %v4864_v25 }
0x32cf   :  { %7330 = vtanh.f32 %v4865_v27 }
0x32d7   :  { %v7329_v1 = vpop.eup %7328 }
0x32d8   :  { %4875 = vrot.lane.b32.xlu1 %v7329_v1, %s7383_s22 }
0x32d9   :  { %v7331_v28 = vpop.eup %7330 }
0x32da   :  { %v4867_v29 = vadd.f32 1.0, %v7331_v28 }
0x32dc   :  { %v4868_v30 = vmul.f32 0.5, %v4867_v29 }
0x32de   :  { %v4873_v34 = vmul.f32 %v4871_v33, %v4868_v30 }
0x334a   :  { %v4876_v31 = vpop.permute.xlu1 %4875 }
0x334b   :  { %v4878_v32 = vmul.f32 %v4876_v31, %v4868_v30 }
0x334d   :  { %4880 = vrot.lane.b32.xlu0 %v4878_v32, %s7388_s10 }
0x33bf   :  { %v4881_v35 = vpop.permute.xlu0 %4880 }
0x33c0   :  { %v4883_v36 = vadd.f32 %v4881_v35, %v4873_v34 }
0x33c2   :  { %7332 = vtanh.f32 %v4883_v36 }
0x33cc   :  { %v7333_v38 = vpop.eup %7332 }
0x33cd   :  { %4886 = vrot.lane.b32.xlu1 %v7333_v38, %s7383_s22  ;;  %s7356_s22 = scalar_lea.vmem %s4990_s16, 32 }
0x33ce   :  { %p7357_p8 = scmp.ne.s32.totalorder %s4990_s16, %s7356_s22  ;;  %p7362_p10 = scmp.lt.s32.totalorder %s7356_s22, %s7356_s22 }
0x33d0   :  { %p7363_p11 = por %p7362_p10, %p7361_p9 }
0x33d2   :  { %p7364_p12 = pnand %p7363_p11, %p7357_p8 }
0x343f   :  { %v4887_v39 = vpop.permute.xlu1 %4886 }
0x3440   :  { %v4889_v24 = vmul.f32 %v4887_v39, %v4868_v30 }
0x3442   :  { %v4891_v40 = vrot.slane %v4889_v24, 6 }
0x3444   :  { %v4893_v41 = vadd.f32 %v4891_v40, %v4786_v16 }
0x3446   :  { %4908 = vrot.lane.b32.xlu0 %v4893_v41, %s7388_s10 }
0x34b8   :  { %v4909_v42 = vpop.permute.xlu0 %4908 }
0x34b9   :  { %6734 = vmatmul.mubr.msk.f32.vlgmr.msra.gmra.mrb[78].mxu1 %vm1595_vm2, %v4909_v42 }
0x358c   :  { %v4978_v59 = vpop.f32.mrb[78].mxu1 }
0x358d   :  { %v4979_v44 = vadd.f32 %v5139_v43, %v4978_v59  ;;  %v6735_v46 = vpop.f32.mrb[79].mxu1 }
0x358f   :  { %4982 = vst [vmem:[#allocation6] sm:$0x3] %v4979_v44 }
0x3590   :  { %7367 = shalt.err (!%p7364_p12)
}
0x3591   :  { %s7368_s19 = scalar_lea.hbm %s8017_s3, 32 }
0x3592   :  { %p7369_p13 = scmp.ne.s32.totalorder %s8017_s3, %s7368_s19  ;;  %p7372_p0 = scmp.lt.u32.totalorder %s7368_s19, %s8017_s3 }
0x3594   :  { %p7374_p1 = pnand %p7372_p0, %p7369_p13 }
0x3596   :  { %7377 = shalt.err (!%p7374_p1)
}
0x3597   :  { %4992 = dma.vmem_to_hbm [thread:$0]  %s4990_s16, 32, %s8017_s3, [#allocation5]  }
0x3598   :  { %7380 = dma.done.wait [#allocation5], 32  }
0x3599   :  { %7381 = vsyncadd [#allocation5], 4294967264 }
0x359a   :  { %4996 = vsyncpa [#allocation4], 1 }
0x359b   :  { %4997 = vsyncpa [#allocation5], 1 }

</bundles_post_ra>
